<compile_context>
chip_gen: v5e
topology: v5e:2x2
jax: 0.10.0
libtpu: 0.0.40
codegen_flags: <defaults>
</compile_context>

<pallas_src>
import jax
import jax.numpy as jnp
from jax import lax
from jax.experimental import pallas as pl
from jax.experimental.pallas import tpu as pltpu

# ---------------- Config (mirrors the DNC Config) ----------------
B = 2          # batch
N = 16         # memory slots
M = 8          # memory word size
R = 2          # read heads
TASK_IN = 6    # task_input_size
TASK_OUT = 5   # task_output_size
CTRL_H = 32    # controller LSTM hidden size (4*H = 128 -> one lane width)
MEM_INIT = 1e-6
EPS = 1e-6

CTRL_IN = TASK_IN + R * M                                    # 22
CTRL_OUT = TASK_OUT + R * M + R + R + 3 * M + 1 + 2 + 3 * R  # 58

# packed controller-input layout: [task(6) pad(2) | reads(R*M=16) | h(32)]
READS_OFF = 8
H_OFF = READS_OFF + R * M                                    # 24
XH_W = H_OFF + CTRL_H                                        # 56


def _softplus(x):
    # numerically-stable softplus built from ops that lower cleanly in Mosaic
    return jnp.maximum(x, 0.0) + jnp.log(1.0 + jnp.exp(-jnp.abs(x)))


def _one_plus(x):
    return 1.0 + _softplus(x)


# ======================= Fused sequence kernel =======================
def _dnc_seq_kernel(task_ref, w_lstm_ref, b_lstm_ref, w_out_ref, b_out_ref,
                    w_read_ref, b_read_ref,
                    y_ref,
                    xh_s, c_s, mem_s, link_s, rw_s, ww_s, u_s, p_s):
    t = pl.program_id(0)

    # ---- sequence reset (mirrors DNC.reset() at the start of each sequence)
    @pl.when(t == 0)
    def _():
        xh_s[...] = jnp.zeros(xh_s.shape, jnp.float32)    # prev_reads = 0, h = 0
        c_s[...] = jnp.zeros(c_s.shape, jnp.float32)
        mem_s[...] = jnp.full(mem_s.shape, MEM_INIT, jnp.float32)
        link_s[...] = jnp.zeros(link_s.shape, jnp.float32)
        rw_s[...] = jnp.zeros(rw_s.shape, jnp.float32)
        ww_s[...] = jnp.zeros(ww_s.shape, jnp.float32)
        u_s[...] = jnp.zeros(u_s.shape, jnp.float32)
        p_s[...] = jnp.zeros(p_s.shape, jnp.float32)

    # ---- controller: one fused LSTM-cell matmul on [task | pad | reads | h]
    xh_s[:, 0:TASK_IN] = task_ref[0]                          # (B, TASK_IN)
    gates = (jnp.dot(xh_s[...], w_lstm_ref[...],
                     preferred_element_type=jnp.float32) + b_lstm_ref[...])
    H = CTRL_H
    i_g = jax.nn.sigmoid(gates[:, 0:H])
    f_g = jax.nn.sigmoid(gates[:, H:2 * H])
    g_g = jnp.tanh(gates[:, 2 * H:3 * H])
    o_g = jax.nn.sigmoid(gates[:, 3 * H:4 * H])
    c_new = f_g * c_s[...] + i_g * g_g
    h_new = o_g * jnp.tanh(c_new)
    c_s[...] = c_new
    xh_s[:, H_OFF:H_OFF + CTRL_H] = h_new                     # recurrent h

    ctrl = (jnp.dot(h_new, w_out_ref[...],
                    preferred_element_type=jnp.float32) + b_out_ref[...])  # (B, 58)

    # ---- parse ControllerOuts (all slicing/activations inside the kernel)
    off = 0
    task_output = jax.nn.sigmoid(ctrl[:, off:off + TASK_OUT]); off += TASK_OUT
    rk_off = off; off += R * M
    rb_off = off; off += R
    fg_off = off; off += R
    write_key = jax.nn.sigmoid(ctrl[:, off:off + M]); off += M
    write_beta = _one_plus(ctrl[:, off:off + 1]); off += 1
    erase_v = jax.nn.sigmoid(ctrl[:, off:off + M]); off += M
    write_v = jax.nn.sigmoid(ctrl[:, off:off + M]); off += M
    alloc_g = jax.nn.sigmoid(ctrl[:, off:off + 1]); off += 1
    write_g = jax.nn.sigmoid(ctrl[:, off:off + 1]); off += 1
    modes_off = off; off += 3 * R
    # off == CTRL_OUT

    # ---- shared memory quantities
    mem = mem_s[...]                                               # (B,N,M)
    L = link_s[...]                                                # (B,N,N)
    mem_norm = jnp.sqrt(jnp.sum(mem * mem, axis=-1, keepdims=True))
    mem_hat = mem * pl.reciprocal(mem_norm + EPS, approx=True)

    w_read = w_read_ref[...]                                       # (R*M, TASK_OUT)
    read_logit = jnp.zeros((B, TASK_OUT), jnp.float32) + b_read_ref[...]
    psi = jnp.ones((B, N), jnp.float32)

    # ---- per read head: content addressing, temporal weights, reads
    for r in range(R):
        rkey = jax.nn.sigmoid(ctrl[:, rk_off + r * M: rk_off + (r + 1) * M])  # (B,M)
        rbeta = _one_plus(ctrl[:, rb_off + r: rb_off + r + 1])                 # (B,1)
        fgate = jax.nn.sigmoid(ctrl[:, fg_off + r: fg_off + r + 1])            # (B,1)

        # read modes: softmax over 3 (order: backward, content, forward)
        mlog = ctrl[:, modes_off + 3 * r: modes_off + 3 * (r + 1)]             # (B,3)
        mlog = mlog - jnp.max(mlog, axis=-1, keepdims=True)
        me = jnp.exp(mlog)
        msm = me * pl.reciprocal(jnp.sum(me, axis=-1, keepdims=True), approx=True)
        mode_b = msm[:, 0:1]
        mode_c = msm[:, 1:2]
        mode_f = msm[:, 2:3]

        # content addressing (cosine similarity * beta -> softmax over N)
        rk_norm = jnp.sqrt(jnp.sum(rkey * rkey, axis=-1, keepdims=True))
        rk_hat = rkey * pl.reciprocal(rk_norm + EPS, approx=True)
        cos_r = jnp.sum(rk_hat[:, None, :] * mem_hat, axis=-1)                 # (B,N)
        sc = cos_r * rbeta
        sc = sc - jnp.max(sc, axis=-1, keepdims=True)
        es = jnp.exp(sc)
        content_r = es * pl.reciprocal(jnp.sum(es, axis=-1, keepdims=True), approx=True)

        # temporal forward / backward weights (no explicit transpose of L)
        prw = rw_s[:, r * N:(r + 1) * N]                                       # (B,N)
        fwd = jnp.sum(L * prw[:, None, :], axis=-1)                            # L @ w
        bwd = jnp.sum(L * prw[:, :, None], axis=1)                             # L^T @ w

        # retention contribution for this head (uses PREVIOUS read weights)
        psi = psi * (1.0 - fgate * prw)

        # interpolated read weighting
        read_w = mode_b * bwd + mode_c * content_r + mode_f * fwd              # (B,N)
        rw_s[:, r * N:(r + 1) * N] = read_w

        # read vector + read network contribution (live values, one dot/head)
        reads = jnp.sum(read_w[:, :, None] * mem, axis=1)                      # (B,M)
        xh_s[:, READS_OFF + r * M: READS_OFF + (r + 1) * M] = reads            # next step
        read_logit = read_logit + jnp.dot(reads, w_read[r * M:(r + 1) * M, :],
                                          preferred_element_type=jnp.float32)

    read_output = jax.nn.sigmoid(read_logit)                                   # (B,TASK_OUT)

    # ---- memory retention & usage
    prev_u = u_s[...]
    prev_ww = ww_s[...]
    usage = (prev_u + prev_ww - prev_u * prev_ww) * psi                        # (B,N)
    u_s[...] = usage

    # ---- allocation weighting: exact sort-free masked product (unrolled over N)
    lane = lax.broadcasted_iota(jnp.int32, (B, N), 1)
    prod = jnp.ones((B, N), jnp.float32)
    for j in range(N):
        u_j = usage[:, j:j + 1]                                                # (B,1)
        less = (u_j < usage) | ((u_j == usage) & (lane > j))
        prod = prod * jnp.where(less, u_j, 1.0)
    alloc = (1.0 - usage) * prod                                               # (B,N)

    # ---- write content addressing
    wk_norm = jnp.sqrt(jnp.sum(write_key * write_key, axis=-1, keepdims=True))
    wk_hat = write_key * pl.reciprocal(wk_norm + EPS, approx=True)
    cos_w = jnp.sum(wk_hat[:, None, :] * mem_hat, axis=-1)                     # (B,N)
    sw = cos_w * write_beta
    sw = sw - jnp.max(sw, axis=-1, keepdims=True)
    ew = jnp.exp(sw)
    content_w = ew * pl.reciprocal(jnp.sum(ew, axis=-1, keepdims=True), approx=True)

    # ---- interpolated write weighting
    ww = write_g * (alloc_g * alloc + (1.0 - alloc_g) * content_w)             # (B,N)
    ww_s[...] = ww

    # ---- write to memory: M * (1 - w e^T) + w v^T
    ww_col = ww[:, :, None]
    new_mem = mem * (1.0 - ww_col * erase_v[:, None, :]) + ww_col * write_v[:, None, :]
    mem_s[...] = new_mem

    # ---- precedence (uses new write weights, old precedence)
    prec = p_s[...]
    new_prec = (1.0 - jnp.sum(ww, axis=-1, keepdims=True)) * prec + ww
    p_s[...] = new_prec

    # ---- link matrix update (module passes the just-updated precedence)
    idx_i = lax.broadcasted_iota(jnp.int32, (B, N, N), 1)
    idx_j = lax.broadcasted_iota(jnp.int32, (B, N, N), 2)
    new_L = (1.0 - ww[:, :, None] - ww[:, None, :]) * L + ww[:, :, None] * new_prec[:, None, :]
    new_L = jnp.where(idx_i == idx_j, 0.0, new_L)
    link_s[...] = new_L

    # ---- final output: sigmoid(sigmoid(read_linear) + sigmoid(task_logits))
    y_ref[0] = jax.nn.sigmoid(read_output + task_output)


# ======================= Wrapper =======================
def dnc_forward_seq(params, task_seq):
    """Run a full DNC sequence (state resets at t=0, persists in VMEM across steps)."""
    seq = task_seq.shape[0]
    grid_spec = pltpu.PrefetchScalarGridSpec(
        num_scalar_prefetch=0,
        grid=(seq,),
        in_specs=[
            pl.BlockSpec((1, B, TASK_IN), lambda t: (t, 0, 0)),        # task_seq
            pl.BlockSpec((XH_W, 4 * CTRL_H), lambda t: (0, 0)),        # stacked LSTM weight
            pl.BlockSpec((1, 4 * CTRL_H), lambda t: (0, 0)),           # folded LSTM bias
            pl.BlockSpec((CTRL_H, CTRL_OUT), lambda t: (0, 0)),        # controller out proj
            pl.BlockSpec((1, CTRL_OUT), lambda t: (0, 0)),             # out proj bias
            pl.BlockSpec((R * M, TASK_OUT), lambda t: (0, 0)),         # read network weight
            pl.BlockSpec((1, TASK_OUT), lambda t: (0, 0)),             # read network bias
        ],
        out_specs=pl.BlockSpec((1, B, TASK_OUT), lambda t: (t, 0, 0)),
        scratch_shapes=[
            pltpu.VMEM((B, XH_W), jnp.float32),        # packed [task|reads|h]
            pltpu.VMEM((B, CTRL_H), jnp.float32),      # LSTM cell state
            pltpu.VMEM((B, N, M), jnp.float32),        # memory
            pltpu.VMEM((B, N, N), jnp.float32),        # temporal links
            pltpu.VMEM((B, R * N), jnp.float32),       # read weights (flat)
            pltpu.VMEM((B, N), jnp.float32),           # write weights
            pltpu.VMEM((B, N), jnp.float32),           # usage
            pltpu.VMEM((B, N), jnp.float32),           # precedence
        ],
    )
    return pl.pallas_call(
        _dnc_seq_kernel,
        out_shape=jax.ShapeDtypeStruct((seq, B, TASK_OUT), jnp.float32),
        grid_spec=grid_spec,
        compiler_params=pltpu.CompilerParams(
            dimension_semantics=("arbitrary",)),   # sequential recurrence over time
    )(task_seq, params["w_lstm_t"], params["b_lstm"], params["w_out_t"],
      params["b_out"], params["w_read_t"], params["b_read"])


# ======================= Parameters =======================
def init_params(key):
    ks = jax.random.split(key, 4)
    s = 0.1
    # PyTorch layouts: (out_features, in_features)
    w_ih = jax.random.normal(ks[0], (4 * CTRL_H, CTRL_IN), jnp.float32) * s
    w_hh = jax.random.normal(ks[1], (4 * CTRL_H, CTRL_H), jnp.float32) * s
    w_out = jax.random.normal(ks[2], (CTRL_OUT, CTRL_H), jnp.float32) * s
    w_read = jax.random.normal(ks[3], (TASK_OUT, R * M), jnp.float32) * s
    b_ih = jnp.zeros((4 * CTRL_H,), jnp.float32)
    b_hh = jnp.zeros((4 * CTRL_H,), jnp.float32)

    # stack [w_ih.T ; w_hh.T] into the padded packed-input layout (XH_W, 4H)
    w_ih_t = w_ih.T                                       # (CTRL_IN, 4H): rows = [task | reads]
    w_hh_t = w_hh.T                                       # (CTRL_H, 4H)
    w_lstm = jnp.zeros((XH_W, 4 * CTRL_H), jnp.float32)
    w_lstm = w_lstm.at[0:TASK_IN].set(w_ih_t[0:TASK_IN])
    w_lstm = w_lstm.at[READS_OFF:READS_OFF + R * M].set(w_ih_t[TASK_IN:CTRL_IN])
    w_lstm = w_lstm.at[H_OFF:H_OFF + CTRL_H].set(w_hh_t)

    return dict(
        w_lstm_t=w_lstm,
        b_lstm=(b_ih + b_hh).reshape(1, 4 * CTRL_H),
        w_out_t=w_out.T,                                  # (CTRL_H, CTRL_OUT)
        b_out=jnp.zeros((1, CTRL_OUT), jnp.float32),
        w_read_t=w_read.T,                                # (R*M, TASK_OUT)
        b_read=jnp.zeros((1, TASK_OUT), jnp.float32),
    )


# ======================= Main =======================
if __name__ == "__main__":
    key = jax.random.PRNGKey(0)
    k_params, k_x = jax.random.split(key)
    params = init_params(k_params)

    SEQ = 8
    task_seq = jax.random.normal(k_x, (SEQ, B, TASK_IN), jnp.float32)

    y_seq = jax.jit(dnc_forward_seq)(params, task_seq)
    y_seq = jax.block_until_ready(y_seq)

    assert y_seq.shape == (SEQ, B, TASK_OUT)
    assert bool(jnp.all(jnp.isfinite(y_seq)))
    assert bool(jnp.all((y_seq > 0.0) & (y_seq < 1.0)))   # double-sigmoid output range
    print("KERNEL_OK")
</pallas_src>

<mosaic_0001>
module attributes {stable_mosaic.version = 11 : i64} {
  func.func @_dnc_seq_kernel(%arg0: i32, %arg1: memref<1x2x6xf32, #tpu.memory_space<vmem>>, %arg2: memref<56x128xf32, #tpu.memory_space<vmem>>, %arg3: memref<1x128xf32, #tpu.memory_space<vmem>>, %arg4: memref<32x58xf32, #tpu.memory_space<vmem>>, %arg5: memref<1x58xf32, #tpu.memory_space<vmem>>, %arg6: memref<16x5xf32, #tpu.memory_space<vmem>>, %arg7: memref<1x5xf32, #tpu.memory_space<vmem>>, %arg8: memref<1x2x5xf32, #tpu.memory_space<vmem>>, %arg9: memref<2x56xf32, #tpu.memory_space<vmem>>, %arg10: memref<2x32xf32, #tpu.memory_space<vmem>>, %arg11: memref<2x16x8xf32, #tpu.memory_space<vmem>>, %arg12: memref<2x16x16xf32, #tpu.memory_space<vmem>>, %arg13: memref<2x32xf32, #tpu.memory_space<vmem>>, %arg14: memref<2x16xf32, #tpu.memory_space<vmem>>, %arg15: memref<2x16xf32, #tpu.memory_space<vmem>>, %arg16: memref<2x16xf32, #tpu.memory_space<vmem>>) attributes {dimension_semantics = [#tpu.dimension_semantics<arbitrary>], iteration_bounds = array<i64: 8>, scalar_prefetch = 0 : i64, scratch_operands = 8 : i64, tpu.core_type = #tpu.core_type<tc>, window_params = [{transform_indices = @transform_0, window_bounds = array<i64: 1, 2, 6>}, {pipeline_mode = #tpu.pipeline_mode<synchronous>, transform_indices = @transform_1, window_bounds = array<i64: 56, 128>}, {pipeline_mode = #tpu.pipeline_mode<synchronous>, transform_indices = @transform_2, window_bounds = array<i64: 1, 128>}, {pipeline_mode = #tpu.pipeline_mode<synchronous>, transform_indices = @transform_3, window_bounds = array<i64: 32, 58>}, {pipeline_mode = #tpu.pipeline_mode<synchronous>, transform_indices = @transform_4, window_bounds = array<i64: 1, 58>}, {pipeline_mode = #tpu.pipeline_mode<synchronous>, transform_indices = @transform_5, window_bounds = array<i64: 16, 5>}, {pipeline_mode = #tpu.pipeline_mode<synchronous>, transform_indices = @transform_6, window_bounds = array<i64: 1, 5>}, {transform_indices = @transform_7, window_bounds = array<i64: 1, 2, 5>}]} {
    %c0_i32 = arith.constant 0 : i32
    %0 = arith.cmpi eq, %arg0, %c0_i32 : i32
    %1 = arith.extui %0 : i1 to i32
    %c0_i32_0 = arith.constant 0 : i32
    %2 = arith.cmpi ne, %1, %c0_i32_0 : i32
    scf.if %2 {
      %cst_147 = arith.constant 0.000000e+00 : f32
      %629 = vector.broadcast %cst_147 : f32 to vector<2x56xf32>
      %c0_148 = arith.constant 0 : index
      %c0_149 = arith.constant 0 : index
      %630 = vector.load %arg9[%c0_148, %c0_149] : memref<2x56xf32, #tpu.memory_space<vmem>>, vector<2x56xf32>
      tpu.vector_store %arg9[%c0_148, %c0_149], %629 {strides = array<i32>} : memref<2x56xf32, #tpu.memory_space<vmem>>, vector<2x56xf32>,
      %cst_150 = arith.constant 0.000000e+00 : f32
      %631 = vector.broadcast %cst_150 : f32 to vector<2x32xf32>
      %c0_151 = arith.constant 0 : index
      %c0_152 = arith.constant 0 : index
      %632 = vector.load %arg10[%c0_151, %c0_152] : memref<2x32xf32, #tpu.memory_space<vmem>>, vector<2x32xf32>
      tpu.vector_store %arg10[%c0_151, %c0_152], %631 {strides = array<i32>} : memref<2x32xf32, #tpu.memory_space<vmem>>, vector<2x32xf32>,
      %cst_153 = arith.constant 9.99999997E-7 : f32
      %633 = vector.broadcast %cst_153 : f32 to vector<2x16x8xf32>
      %c0_154 = arith.constant 0 : index
      %c0_155 = arith.constant 0 : index
      %c0_156 = arith.constant 0 : index
      %634 = vector.load %arg11[%c0_154, %c0_155, %c0_156] : memref<2x16x8xf32, #tpu.memory_space<vmem>>, vector<2x16x8xf32>
      tpu.vector_store %arg11[%c0_154, %c0_155, %c0_156], %633 {strides = array<i32>} : memref<2x16x8xf32, #tpu.memory_space<vmem>>, vector<2x16x8xf32>,
      %cst_157 = arith.constant 0.000000e+00 : f32
      %635 = vector.broadcast %cst_157 : f32 to vector<2x16x16xf32>
      %c0_158 = arith.constant 0 : index
      %c0_159 = arith.constant 0 : index
      %c0_160 = arith.constant 0 : index
      %636 = vector.load %arg12[%c0_158, %c0_159, %c0_160] : memref<2x16x16xf32, #tpu.memory_space<vmem>>, vector<2x16x16xf32>
      tpu.vector_store %arg12[%c0_158, %c0_159, %c0_160], %635 {strides = array<i32>} : memref<2x16x16xf32, #tpu.memory_space<vmem>>, vector<2x16x16xf32>,
      %cst_161 = arith.constant 0.000000e+00 : f32
      %637 = vector.broadcast %cst_161 : f32 to vector<2x32xf32>
      %c0_162 = arith.constant 0 : index
      %c0_163 = arith.constant 0 : index
      %638 = vector.load %arg13[%c0_162, %c0_163] : memref<2x32xf32, #tpu.memory_space<vmem>>, vector<2x32xf32>
      tpu.vector_store %arg13[%c0_162, %c0_163], %637 {strides = array<i32>} : memref<2x32xf32, #tpu.memory_space<vmem>>, vector<2x32xf32>,
      %cst_164 = arith.constant 0.000000e+00 : f32
      %639 = vector.broadcast %cst_164 : f32 to vector<2x16xf32>
      %c0_165 = arith.constant 0 : index
      %c0_166 = arith.constant 0 : index
      %640 = vector.load %arg14[%c0_165, %c0_166] : memref<2x16xf32, #tpu.memory_space<vmem>>, vector<2x16xf32>
      tpu.vector_store %arg14[%c0_165, %c0_166], %639 {strides = array<i32>} : memref<2x16xf32, #tpu.memory_space<vmem>>, vector<2x16xf32>,
      %cst_167 = arith.constant 0.000000e+00 : f32
      %641 = vector.broadcast %cst_167 : f32 to vector<2x16xf32>
      %c0_168 = arith.constant 0 : index
      %c0_169 = arith.constant 0 : index
      %642 = vector.load %arg15[%c0_168, %c0_169] : memref<2x16xf32, #tpu.memory_space<vmem>>, vector<2x16xf32>
      tpu.vector_store %arg15[%c0_168, %c0_169], %641 {strides = array<i32>} : memref<2x16xf32, #tpu.memory_space<vmem>>, vector<2x16xf32>,
      %cst_170 = arith.constant 0.000000e+00 : f32
      %643 = vector.broadcast %cst_170 : f32 to vector<2x16xf32>
      %c0_171 = arith.constant 0 : index
      %c0_172 = arith.constant 0 : index
      %644 = vector.load %arg16[%c0_171, %c0_172] : memref<2x16xf32, #tpu.memory_space<vmem>>, vector<2x16xf32>
      tpu.vector_store %arg16[%c0_171, %c0_172], %643 {strides = array<i32>} : memref<2x16xf32, #tpu.memory_space<vmem>>, vector<2x16xf32>,
    } else {
    }
    %c0 = arith.constant 0 : index
    %c0_1 = arith.constant 0 : index
    %c0_2 = arith.constant 0 : index
    %3 = vector.load %arg1[%c0, %c0_1, %c0_2] : memref<1x2x6xf32, #tpu.memory_space<vmem>>, vector<1x2x6xf32>
    %4 = vector.shape_cast %3 : vector<1x2x6xf32> to vector<2x6xf32>
    %c0_3 = arith.constant 0 : index
    %c0_4 = arith.constant 0 : index
    %5 = vector.load %arg9[%c0_3, %c0_4] : memref<2x56xf32, #tpu.memory_space<vmem>>, vector<2x6xf32>
    tpu.vector_store %arg9[%c0_3, %c0_4], %4 {strides = array<i32>} : memref<2x56xf32, #tpu.memory_space<vmem>>, vector<2x6xf32>,
    %c0_5 = arith.constant 0 : index
    %c0_6 = arith.constant 0 : index
    %6 = vector.load %arg9[%c0_5, %c0_6] : memref<2x56xf32, #tpu.memory_space<vmem>>, vector<2x56xf32>
    %c0_7 = arith.constant 0 : index
    %c0_8 = arith.constant 0 : index
    %7 = vector.load %arg2[%c0_7, %c0_8] : memref<56x128xf32, #tpu.memory_space<vmem>>, vector<56x128xf32>
    %cst = arith.constant dense<0.000000e+00> : vector<2x128xf32>
    %8 = tpu.matmul %6, %7, %cst {dimension_numbers = #tpu.dot_dimension_numbers<[1], [0], [0], [1], [0, 0, 1, 1], [], []>} : vector<2x56xf32>, vector<56x128xf32>, vector<2x128xf32> -> vector<2x128xf32>
    %c0_9 = arith.constant 0 : index
    %c0_10 = arith.constant 0 : index
    %9 = vector.load %arg3[%c0_9, %c0_10] : memref<1x128xf32, #tpu.memory_space<vmem>>, vector<1x128xf32>
    %10 = vector.broadcast %9 : vector<1x128xf32> to vector<2x128xf32>
    %11 = arith.addf %8, %10 : vector<2x128xf32>
    %12 = vector.extract_strided_slice %11 {offsets = [0, 0], sizes = [2, 32], strides = [1, 1]} : vector<2x128xf32> to vector<2x32xf32>
    %13 = arith.negf %12 : vector<2x32xf32>
    %14 = math.exp %13 : vector<2x32xf32>
    %cst_11 = arith.constant 1.000000e+00 : f32
    %15 = vector.broadcast %cst_11 : f32 to vector<2x32xf32>
    %16 = arith.addf %15, %14 : vector<2x32xf32>
    %17 = arith.divf %15, %16 : vector<2x32xf32>
    %18 = vector.extract_strided_slice %11 {offsets = [0, 32], sizes = [2, 32], strides = [1, 1]} : vector<2x128xf32> to vector<2x32xf32>
    %19 = arith.negf %18 : vector<2x32xf32>
    %20 = math.exp %19 : vector<2x32xf32>
    %cst_12 = arith.constant 1.000000e+00 : f32
    %21 = vector.broadcast %cst_12 : f32 to vector<2x32xf32>
    %22 = arith.addf %21, %20 : vector<2x32xf32>
    %23 = arith.divf %21, %22 : vector<2x32xf32>
    %24 = vector.extract_strided_slice %11 {offsets = [0, 64], sizes = [2, 32], strides = [1, 1]} : vector<2x128xf32> to vector<2x32xf32>
    %25 = math.tanh %24 : vector<2x32xf32>
    %26 = vector.extract_strided_slice %11 {offsets = [0, 96], sizes = [2, 32], strides = [1, 1]} : vector<2x128xf32> to vector<2x32xf32>
    %27 = arith.negf %26 : vector<2x32xf32>
    %28 = math.exp %27 : vector<2x32xf32>
    %cst_13 = arith.constant 1.000000e+00 : f32
    %29 = vector.broadcast %cst_13 : f32 to vector<2x32xf32>
    %30 = arith.addf %29, %28 : vector<2x32xf32>
    %31 = arith.divf %29, %30 : vector<2x32xf32>
    %c0_14 = arith.constant 0 : index
    %c0_15 = arith.constant 0 : index
    %32 = vector.load %arg10[%c0_14, %c0_15] : memref<2x32xf32, #tpu.memory_space<vmem>>, vector<2x32xf32>
    %33 = arith.mulf %23, %32 : vector<2x32xf32>
    %34 = arith.mulf %17, %25 : vector<2x32xf32>
    %35 = arith.addf %33, %34 : vector<2x32xf32>
    %36 = math.tanh %35 : vector<2x32xf32>
    %37 = arith.mulf %31, %36 : vector<2x32xf32>
    %c0_16 = arith.constant 0 : index
    %c0_17 = arith.constant 0 : index
    %38 = vector.load %arg10[%c0_16, %c0_17] : memref<2x32xf32, #tpu.memory_space<vmem>>, vector<2x32xf32>
    tpu.vector_store %arg10[%c0_16, %c0_17], %35 {strides = array<i32>} : memref<2x32xf32, #tpu.memory_space<vmem>>, vector<2x32xf32>,
    %c0_18 = arith.constant 0 : index
    %c24 = arith.constant 24 : index
    %39 = vector.load %arg9[%c0_18, %c24] : memref<2x56xf32, #tpu.memory_space<vmem>>, vector<2x32xf32>
    tpu.vector_store %arg9[%c0_18, %c24], %37 {strides = array<i32>} : memref<2x56xf32, #tpu.memory_space<vmem>>, vector<2x32xf32>,
    %c0_19 = arith.constant 0 : index
    %c0_20 = arith.constant 0 : index
    %40 = vector.load %arg4[%c0_19, %c0_20] : memref<32x58xf32, #tpu.memory_space<vmem>>, vector<32x58xf32>
    %cst_21 = arith.constant dense<0.000000e+00> : vector<2x58xf32>
    %41 = tpu.matmul %37, %40, %cst_21 {dimension_numbers = #tpu.dot_dimension_numbers<[1], [0], [0], [1], [0, 0, 1, 1], [], []>} : vector<2x32xf32>, vector<32x58xf32>, vector<2x58xf32> -> vector<2x58xf32>
    %c0_22 = arith.constant 0 : index
    %c0_23 = arith.constant 0 : index
    %42 = vector.load %arg5[%c0_22, %c0_23] : memref<1x58xf32, #tpu.memory_space<vmem>>, vector<1x58xf32>
    %43 = vector.broadcast %42 : vector<1x58xf32> to vector<2x58xf32>
    %44 = arith.addf %41, %43 : vector<2x58xf32>
    %45 = vector.extract_strided_slice %44 {offsets = [0, 0], sizes = [2, 5], strides = [1, 1]} : vector<2x58xf32> to vector<2x5xf32>
    %46 = arith.negf %45 : vector<2x5xf32>
    %47 = math.exp %46 : vector<2x5xf32>
    %cst_24 = arith.constant 1.000000e+00 : f32
    %48 = vector.broadcast %cst_24 : f32 to vector<2x5xf32>
    %49 = arith.addf %48, %47 : vector<2x5xf32>
    %50 = arith.divf %48, %49 : vector<2x5xf32>
    %51 = vector.extract_strided_slice %44 {offsets = [0, 25], sizes = [2, 8], strides = [1, 1]} : vector<2x58xf32> to vector<2x8xf32>
    %52 = arith.negf %51 : vector<2x8xf32>
    %53 = math.exp %52 : vector<2x8xf32>
    %cst_25 = arith.constant 1.000000e+00 : f32
    %54 = vector.broadcast %cst_25 : f32 to vector<2x8xf32>
    %55 = arith.addf %54, %53 : vector<2x8xf32>
    %56 = arith.divf %54, %55 : vector<2x8xf32>
    %57 = vector.extract_strided_slice %44 {offsets = [0, 33], sizes = [2, 1], strides = [1, 1]} : vector<2x58xf32> to vector<2x1xf32>
    %cst_26 = arith.constant 0.000000e+00 : f32
    %58 = vector.broadcast %cst_26 : f32 to vector<2x1xf32>
    %59 = arith.maximumf %57, %58 : vector<2x1xf32>
    %60 = math.absf %57 : vector<2x1xf32>
    %cst_27 = arith.constant 0.000000e+00 : f32
    %61 = vector.broadcast %cst_27 : f32 to vector<2x1xf32>
    %62 = arith.subf %61, %60 : vector<2x1xf32>
    %63 = math.exp %62 : vector<2x1xf32>
    %cst_28 = arith.constant 1.000000e+00 : f32
    %64 = vector.broadcast %cst_28 : f32 to vector<2x1xf32>
    %65 = arith.addf %64, %63 : vector<2x1xf32>
    %66 = math.log %65 : vector<2x1xf32>
    %67 = arith.addf %59, %66 : vector<2x1xf32>
    %cst_29 = arith.constant 1.000000e+00 : f32
    %68 = vector.broadcast %cst_29 : f32 to vector<2x1xf32>
    %69 = arith.addf %68, %67 : vector<2x1xf32>
    %70 = vector.extract_strided_slice %44 {offsets = [0, 34], sizes = [2, 8], strides = [1, 1]} : vector<2x58xf32> to vector<2x8xf32>
    %71 = arith.negf %70 : vector<2x8xf32>
    %72 = math.exp %71 : vector<2x8xf32>
    %cst_30 = arith.constant 1.000000e+00 : f32
    %73 = vector.broadcast %cst_30 : f32 to vector<2x8xf32>
    %74 = arith.addf %73, %72 : vector<2x8xf32>
    %75 = arith.divf %73, %74 : vector<2x8xf32>
    %76 = vector.extract_strided_slice %44 {offsets = [0, 42], sizes = [2, 8], strides = [1, 1]} : vector<2x58xf32> to vector<2x8xf32>
    %77 = arith.negf %76 : vector<2x8xf32>
    %78 = math.exp %77 : vector<2x8xf32>
    %cst_31 = arith.constant 1.000000e+00 : f32
    %79 = vector.broadcast %cst_31 : f32 to vector<2x8xf32>
    %80 = arith.addf %79, %78 : vector<2x8xf32>
    %81 = arith.divf %79, %80 : vector<2x8xf32>
    %82 = vector.extract_strided_slice %44 {offsets = [0, 50], sizes = [2, 1], strides = [1, 1]} : vector<2x58xf32> to vector<2x1xf32>
    %83 = arith.negf %82 : vector<2x1xf32>
    %84 = math.exp %83 : vector<2x1xf32>
    %cst_32 = arith.constant 1.000000e+00 : f32
    %85 = vector.broadcast %cst_32 : f32 to vector<2x1xf32>
    %86 = arith.addf %85, %84 : vector<2x1xf32>
    %87 = arith.divf %85, %86 : vector<2x1xf32>
    %88 = vector.extract_strided_slice %44 {offsets = [0, 51], sizes = [2, 1], strides = [1, 1]} : vector<2x58xf32> to vector<2x1xf32>
    %89 = arith.negf %88 : vector<2x1xf32>
    %90 = math.exp %89 : vector<2x1xf32>
    %cst_33 = arith.constant 1.000000e+00 : f32
    %91 = vector.broadcast %cst_33 : f32 to vector<2x1xf32>
    %92 = arith.addf %91, %90 : vector<2x1xf32>
    %93 = arith.divf %91, %92 : vector<2x1xf32>
    %c0_34 = arith.constant 0 : index
    %c0_35 = arith.constant 0 : index
    %c0_36 = arith.constant 0 : index
    %94 = vector.load %arg11[%c0_34, %c0_35, %c0_36] : memref<2x16x8xf32, #tpu.memory_space<vmem>>, vector<2x16x8xf32>
    %c0_37 = arith.constant 0 : index
    %c0_38 = arith.constant 0 : index
    %c0_39 = arith.constant 0 : index
    %95 = vector.load %arg12[%c0_37, %c0_38, %c0_39] : memref<2x16x16xf32, #tpu.memory_space<vmem>>, vector<2x16x16xf32>
    %96 = arith.mulf %94, %94 : vector<2x16x8xf32>
    %cst_40 = arith.constant dense<0.000000e+00> : vector<2x16xf32>
    %97 = vector.multi_reduction <add>, %96, %cst_40 [2] : vector<2x16x8xf32> to vector<2x16xf32>
    %98 = vector.shape_cast %97 : vector<2x16xf32> to vector<2x16x1xf32>
    %99 = math.sqrt %98 : vector<2x16x1xf32>
    %cst_41 = arith.constant 9.99999997E-7 : f32
    %100 = vector.broadcast %cst_41 : f32 to vector<2x16x1xf32>
    %101 = arith.addf %99, %100 : vector<2x16x1xf32>
    %102 = tpu.reciprocal %101 {approx = true} : vector<2x16x1xf32> -> vector<2x16x1xf32>
    %103 = vector.broadcast %102 : vector<2x16x1xf32> to vector<2x16x8xf32>
    %104 = arith.mulf %94, %103 : vector<2x16x8xf32>
    %c0_42 = arith.constant 0 : index
    %c0_43 = arith.constant 0 : index
    %105 = vector.load %arg6[%c0_42, %c0_43] : memref<16x5xf32, #tpu.memory_space<vmem>>, vector<16x5xf32>
    %cst_44 = arith.constant 0.000000e+00 : f32
    %106 = vector.broadcast %cst_44 : f32 to vector<2x5xf32>
    %c0_45 = arith.constant 0 : index
    %c0_46 = arith.constant 0 : index
    %107 = vector.load %arg7[%c0_45, %c0_46] : memref<1x5xf32, #tpu.memory_space<vmem>>, vector<1x5xf32>
    %108 = vector.broadcast %107 : vector<1x5xf32> to vector<2x5xf32>
    %109 = arith.addf %106, %108 : vector<2x5xf32>
    %cst_47 = arith.constant 1.000000e+00 : f32
    %110 = vector.broadcast %cst_47 : f32 to vector<2x16xf32>
    %111 = vector.extract_strided_slice %44 {offsets = [0, 5], sizes = [2, 8], strides = [1, 1]} : vector<2x58xf32> to vector<2x8xf32>
    %112 = arith.negf %111 : vector<2x8xf32>
    %113 = math.exp %112 : vector<2x8xf32>
    %cst_48 = arith.constant 1.000000e+00 : f32
    %114 = vector.broadcast %cst_48 : f32 to vector<2x8xf32>
    %115 = arith.addf %114, %113 : vector<2x8xf32>
    %116 = arith.divf %114, %115 : vector<2x8xf32>
    %117 = vector.extract_strided_slice %44 {offsets = [0, 21], sizes = [2, 1], strides = [1, 1]} : vector<2x58xf32> to vector<2x1xf32>
    %cst_49 = arith.constant 0.000000e+00 : f32
    %118 = vector.broadcast %cst_49 : f32 to vector<2x1xf32>
    %119 = arith.maximumf %117, %118 : vector<2x1xf32>
    %120 = math.absf %117 : vector<2x1xf32>
    %cst_50 = arith.constant 0.000000e+00 : f32
    %121 = vector.broadcast %cst_50 : f32 to vector<2x1xf32>
    %122 = arith.subf %121, %120 : vector<2x1xf32>
    %123 = math.exp %122 : vector<2x1xf32>
    %cst_51 = arith.constant 1.000000e+00 : f32
    %124 = vector.broadcast %cst_51 : f32 to vector<2x1xf32>
    %125 = arith.addf %124, %123 : vector<2x1xf32>
    %126 = math.log %125 : vector<2x1xf32>
    %127 = arith.addf %119, %126 : vector<2x1xf32>
    %cst_52 = arith.constant 1.000000e+00 : f32
    %128 = vector.broadcast %cst_52 : f32 to vector<2x1xf32>
    %129 = arith.addf %128, %127 : vector<2x1xf32>
    %130 = vector.extract_strided_slice %44 {offsets = [0, 23], sizes = [2, 1], strides = [1, 1]} : vector<2x58xf32> to vector<2x1xf32>
    %131 = arith.negf %130 : vector<2x1xf32>
    %132 = math.exp %131 : vector<2x1xf32>
    %cst_53 = arith.constant 1.000000e+00 : f32
    %133 = vector.broadcast %cst_53 : f32 to vector<2x1xf32>
    %134 = arith.addf %133, %132 : vector<2x1xf32>
    %135 = arith.divf %133, %134 : vector<2x1xf32>
    %136 = vector.extract_strided_slice %44 {offsets = [0, 52], sizes = [2, 3], strides = [1, 1]} : vector<2x58xf32> to vector<2x3xf32>
    %cst_54 = arith.constant dense<0xFF800000> : vector<2xf32>
    %137 = vector.multi_reduction <maximumf>, %136, %cst_54 [1] : vector<2x3xf32> to vector<2xf32>
    %138 = vector.shape_cast %137 : vector<2xf32> to vector<2x1xf32>
    %139 = vector.broadcast %138 : vector<2x1xf32> to vector<2x3xf32>
    %140 = arith.subf %136, %139 : vector<2x3xf32>
    %141 = math.exp %140 : vector<2x3xf32>
    %cst_55 = arith.constant dense<0.000000e+00> : vector<2xf32>
    %142 = vector.multi_reduction <add>, %141, %cst_55 [1] : vector<2x3xf32> to vector<2xf32>
    %143 = vector.shape_cast %142 : vector<2xf32> to vector<2x1xf32>
    %144 = tpu.reciprocal %143 {approx = true} : vector<2x1xf32> -> vector<2x1xf32>
    %145 = vector.broadcast %144 : vector<2x1xf32> to vector<2x3xf32>
    %146 = arith.mulf %141, %145 : vector<2x3xf32>
    %147 = vector.extract_strided_slice %146 {offsets = [0, 0], sizes = [2, 1], strides = [1, 1]} : vector<2x3xf32> to vector<2x1xf32>
    %148 = vector.extract_strided_slice %146 {offsets = [0, 1], sizes = [2, 1], strides = [1, 1]} : vector<2x3xf32> to vector<2x1xf32>
    %149 = vector.extract_strided_slice %146 {offsets = [0, 2], sizes = [2, 1], strides = [1, 1]} : vector<2x3xf32> to vector<2x1xf32>
    %150 = arith.mulf %116, %116 : vector<2x8xf32>
    %cst_56 = arith.constant dense<0.000000e+00> : vector<2xf32>
    %151 = vector.multi_reduction <add>, %150, %cst_56 [1] : vector<2x8xf32> to vector<2xf32>
    %152 = vector.shape_cast %151 : vector<2xf32> to vector<2x1xf32>
    %153 = math.sqrt %152 : vector<2x1xf32>
    %cst_57 = arith.constant 9.99999997E-7 : f32
    %154 = vector.broadcast %cst_57 : f32 to vector<2x1xf32>
    %155 = arith.addf %153, %154 : vector<2x1xf32>
    %156 = tpu.reciprocal %155 {approx = true} : vector<2x1xf32> -> vector<2x1xf32>
    %157 = vector.broadcast %156 : vector<2x1xf32> to vector<2x8xf32>
    %158 = arith.mulf %116, %157 : vector<2x8xf32>
    %159 = vector.shape_cast %158 : vector<2x8xf32> to vector<2x1x8xf32>
    %160 = vector.broadcast %159 : vector<2x1x8xf32> to vector<2x16x8xf32>
    %161 = arith.mulf %160, %104 : vector<2x16x8xf32>
    %cst_58 = arith.constant dense<0.000000e+00> : vector<2x16xf32>
    %162 = vector.multi_reduction <add>, %161, %cst_58 [2] : vector<2x16x8xf32> to vector<2x16xf32>
    %163 = vector.broadcast %129 : vector<2x1xf32> to vector<2x16xf32>
    %164 = arith.mulf %162, %163 : vector<2x16xf32>
    %cst_59 = arith.constant dense<0xFF800000> : vector<2xf32>
    %165 = vector.multi_reduction <maximumf>, %164, %cst_59 [1] : vector<2x16xf32> to vector<2xf32>
    %166 = vector.shape_cast %165 : vector<2xf32> to vector<2x1xf32>
    %167 = vector.broadcast %166 : vector<2x1xf32> to vector<2x16xf32>
    %168 = arith.subf %164, %167 : vector<2x16xf32>
    %169 = math.exp %168 : vector<2x16xf32>
    %cst_60 = arith.constant dense<0.000000e+00> : vector<2xf32>
    %170 = vector.multi_reduction <add>, %169, %cst_60 [1] : vector<2x16xf32> to vector<2xf32>
    %171 = vector.shape_cast %170 : vector<2xf32> to vector<2x1xf32>
    %172 = tpu.reciprocal %171 {approx = true} : vector<2x1xf32> -> vector<2x1xf32>
    %173 = vector.broadcast %172 : vector<2x1xf32> to vector<2x16xf32>
    %174 = arith.mulf %169, %173 : vector<2x16xf32>
    %c0_61 = arith.constant 0 : index
    %c0_62 = arith.constant 0 : index
    %175 = vector.load %arg13[%c0_61, %c0_62] : memref<2x32xf32, #tpu.memory_space<vmem>>, vector<2x16xf32>
    %176 = vector.shape_cast %175 : vector<2x16xf32> to vector<2x1x16xf32>
    %177 = vector.broadcast %176 : vector<2x1x16xf32> to vector<2x16x16xf32>
    %178 = arith.mulf %95, %177 : vector<2x16x16xf32>
    %cst_63 = arith.constant dense<0.000000e+00> : vector<2x16xf32>
    %179 = vector.multi_reduction <add>, %178, %cst_63 [2] : vector<2x16x16xf32> to vector<2x16xf32>
    %180 = vector.shape_cast %175 : vector<2x16xf32> to vector<2x16x1xf32>
    %181 = vector.broadcast %180 : vector<2x16x1xf32> to vector<2x16x16xf32>
    %182 = arith.mulf %95, %181 : vector<2x16x16xf32>
    %cst_64 = arith.constant dense<0.000000e+00> : vector<2x16xf32>
    %183 = vector.multi_reduction <add>, %182, %cst_64 [1] : vector<2x16x16xf32> to vector<2x16xf32>
    %184 = vector.broadcast %135 : vector<2x1xf32> to vector<2x16xf32>
    %185 = arith.mulf %184, %175 : vector<2x16xf32>
    %cst_65 = arith.constant 1.000000e+00 : f32
    %186 = vector.broadcast %cst_65 : f32 to vector<2x16xf32>
    %187 = arith.subf %186, %185 : vector<2x16xf32>
    %188 = arith.mulf %110, %187 : vector<2x16xf32>
    %189 = vector.broadcast %147 : vector<2x1xf32> to vector<2x16xf32>
    %190 = arith.mulf %189, %183 : vector<2x16xf32>
    %191 = vector.broadcast %148 : vector<2x1xf32> to vector<2x16xf32>
    %192 = arith.mulf %191, %174 : vector<2x16xf32>
    %193 = arith.addf %190, %192 : vector<2x16xf32>
    %194 = vector.broadcast %149 : vector<2x1xf32> to vector<2x16xf32>
    %195 = arith.mulf %194, %179 : vector<2x16xf32>
    %196 = arith.addf %193, %195 : vector<2x16xf32>
    %c0_66 = arith.constant 0 : index
    %c0_67 = arith.constant 0 : index
    %197 = vector.load %arg13[%c0_66, %c0_67] : memref<2x32xf32, #tpu.memory_space<vmem>>, vector<2x16xf32>
    tpu.vector_store %arg13[%c0_66, %c0_67], %196 {strides = array<i32>} : memref<2x32xf32, #tpu.memory_space<vmem>>, vector<2x16xf32>,
    %198 = vector.shape_cast %196 : vector<2x16xf32> to vector<2x16x1xf32>
    %199 = vector.broadcast %198 : vector<2x16x1xf32> to vector<2x16x8xf32>
    %200 = arith.mulf %199, %94 : vector<2x16x8xf32>
    %cst_68 = arith.constant dense<0.000000e+00> : vector<2x8xf32>
    %201 = vector.multi_reduction <add>, %200, %cst_68 [1] : vector<2x16x8xf32> to vector<2x8xf32>
    %c0_69 = arith.constant 0 : index
    %c8 = arith.constant 8 : index
    %202 = vector.load %arg9[%c0_69, %c8] : memref<2x56xf32, #tpu.memory_space<vmem>>, vector<2x8xf32>
    tpu.vector_store %arg9[%c0_69, %c8], %201 {strides = array<i32>} : memref<2x56xf32, #tpu.memory_space<vmem>>, vector<2x8xf32>,
    %203 = vector.extract_strided_slice %105 {offsets = [0, 0], sizes = [8, 5], strides = [1, 1]} : vector<16x5xf32> to vector<8x5xf32>
    %cst_70 = arith.constant dense<0.000000e+00> : vector<2x5xf32>
    %204 = tpu.matmul %201, %203, %cst_70 {dimension_numbers = #tpu.dot_dimension_numbers<[1], [0], [0], [1], [0, 0, 1, 1], [], []>} : vector<2x8xf32>, vector<8x5xf32>, vector<2x5xf32> -> vector<2x5xf32>
    %205 = arith.addf %109, %204 : vector<2x5xf32>
    %206 = vector.extract_strided_slice %44 {offsets = [0, 13], sizes = [2, 8], strides = [1, 1]} : vector<2x58xf32> to vector<2x8xf32>
    %207 = arith.negf %206 : vector<2x8xf32>
    %208 = math.exp %207 : vector<2x8xf32>
    %cst_71 = arith.constant 1.000000e+00 : f32
    %209 = vector.broadcast %cst_71 : f32 to vector<2x8xf32>
    %210 = arith.addf %209, %208 : vector<2x8xf32>
    %211 = arith.divf %209, %210 : vector<2x8xf32>
    %212 = vector.extract_strided_slice %44 {offsets = [0, 22], sizes = [2, 1], strides = [1, 1]} : vector<2x58xf32> to vector<2x1xf32>
    %cst_72 = arith.constant 0.000000e+00 : f32
    %213 = vector.broadcast %cst_72 : f32 to vector<2x1xf32>
    %214 = arith.maximumf %212, %213 : vector<2x1xf32>
    %215 = math.absf %212 : vector<2x1xf32>
    %cst_73 = arith.constant 0.000000e+00 : f32
    %216 = vector.broadcast %cst_73 : f32 to vector<2x1xf32>
    %217 = arith.subf %216, %215 : vector<2x1xf32>
    %218 = math.exp %217 : vector<2x1xf32>
    %cst_74 = arith.constant 1.000000e+00 : f32
    %219 = vector.broadcast %cst_74 : f32 to vector<2x1xf32>
    %220 = arith.addf %219, %218 : vector<2x1xf32>
    %221 = math.log %220 : vector<2x1xf32>
    %222 = arith.addf %214, %221 : vector<2x1xf32>
    %cst_75 = arith.constant 1.000000e+00 : f32
    %223 = vector.broadcast %cst_75 : f32 to vector<2x1xf32>
    %224 = arith.addf %223, %222 : vector<2x1xf32>
    %225 = vector.extract_strided_slice %44 {offsets = [0, 24], sizes = [2, 1], strides = [1, 1]} : vector<2x58xf32> to vector<2x1xf32>
    %226 = arith.negf %225 : vector<2x1xf32>
    %227 = math.exp %226 : vector<2x1xf32>
    %cst_76 = arith.constant 1.000000e+00 : f32
    %228 = vector.broadcast %cst_76 : f32 to vector<2x1xf32>
    %229 = arith.addf %228, %227 : vector<2x1xf32>
    %230 = arith.divf %228, %229 : vector<2x1xf32>
    %231 = vector.extract_strided_slice %44 {offsets = [0, 55], sizes = [2, 3], strides = [1, 1]} : vector<2x58xf32> to vector<2x3xf32>
    %cst_77 = arith.constant dense<0xFF800000> : vector<2xf32>
    %232 = vector.multi_reduction <maximumf>, %231, %cst_77 [1] : vector<2x3xf32> to vector<2xf32>
    %233 = vector.shape_cast %232 : vector<2xf32> to vector<2x1xf32>
    %234 = vector.broadcast %233 : vector<2x1xf32> to vector<2x3xf32>
    %235 = arith.subf %231, %234 : vector<2x3xf32>
    %236 = math.exp %235 : vector<2x3xf32>
    %cst_78 = arith.constant dense<0.000000e+00> : vector<2xf32>
    %237 = vector.multi_reduction <add>, %236, %cst_78 [1] : vector<2x3xf32> to vector<2xf32>
    %238 = vector.shape_cast %237 : vector<2xf32> to vector<2x1xf32>
    %239 = tpu.reciprocal %238 {approx = true} : vector<2x1xf32> -> vector<2x1xf32>
    %240 = vector.broadcast %239 : vector<2x1xf32> to vector<2x3xf32>
    %241 = arith.mulf %236, %240 : vector<2x3xf32>
    %242 = vector.extract_strided_slice %241 {offsets = [0, 0], sizes = [2, 1], strides = [1, 1]} : vector<2x3xf32> to vector<2x1xf32>
    %243 = vector.extract_strided_slice %241 {offsets = [0, 1], sizes = [2, 1], strides = [1, 1]} : vector<2x3xf32> to vector<2x1xf32>
    %244 = vector.extract_strided_slice %241 {offsets = [0, 2], sizes = [2, 1], strides = [1, 1]} : vector<2x3xf32> to vector<2x1xf32>
    %245 = arith.mulf %211, %211 : vector<2x8xf32>
    %cst_79 = arith.constant dense<0.000000e+00> : vector<2xf32>
    %246 = vector.multi_reduction <add>, %245, %cst_79 [1] : vector<2x8xf32> to vector<2xf32>
    %247 = vector.shape_cast %246 : vector<2xf32> to vector<2x1xf32>
    %248 = math.sqrt %247 : vector<2x1xf32>
    %cst_80 = arith.constant 9.99999997E-7 : f32
    %249 = vector.broadcast %cst_80 : f32 to vector<2x1xf32>
    %250 = arith.addf %248, %249 : vector<2x1xf32>
    %251 = tpu.reciprocal %250 {approx = true} : vector<2x1xf32> -> vector<2x1xf32>
    %252 = vector.broadcast %251 : vector<2x1xf32> to vector<2x8xf32>
    %253 = arith.mulf %211, %252 : vector<2x8xf32>
    %254 = vector.shape_cast %253 : vector<2x8xf32> to vector<2x1x8xf32>
    %255 = vector.broadcast %254 : vector<2x1x8xf32> to vector<2x16x8xf32>
    %256 = arith.mulf %255, %104 : vector<2x16x8xf32>
    %cst_81 = arith.constant dense<0.000000e+00> : vector<2x16xf32>
    %257 = vector.multi_reduction <add>, %256, %cst_81 [2] : vector<2x16x8xf32> to vector<2x16xf32>
    %258 = vector.broadcast %224 : vector<2x1xf32> to vector<2x16xf32>
    %259 = arith.mulf %257, %258 : vector<2x16xf32>
    %cst_82 = arith.constant dense<0xFF800000> : vector<2xf32>
    %260 = vector.multi_reduction <maximumf>, %259, %cst_82 [1] : vector<2x16xf32> to vector<2xf32>
    %261 = vector.shape_cast %260 : vector<2xf32> to vector<2x1xf32>
    %262 = vector.broadcast %261 : vector<2x1xf32> to vector<2x16xf32>
    %263 = arith.subf %259, %262 : vector<2x16xf32>
    %264 = math.exp %263 : vector<2x16xf32>
    %cst_83 = arith.constant dense<0.000000e+00> : vector<2xf32>
    %265 = vector.multi_reduction <add>, %264, %cst_83 [1] : vector<2x16xf32> to vector<2xf32>
    %266 = vector.shape_cast %265 : vector<2xf32> to vector<2x1xf32>
    %267 = tpu.reciprocal %266 {approx = true} : vector<2x1xf32> -> vector<2x1xf32>
    %268 = vector.broadcast %267 : vector<2x1xf32> to vector<2x16xf32>
    %269 = arith.mulf %264, %268 : vector<2x16xf32>
    %c0_84 = arith.constant 0 : index
    %c16 = arith.constant 16 : index
    %270 = vector.load %arg13[%c0_84, %c16] : memref<2x32xf32, #tpu.memory_space<vmem>>, vector<2x16xf32>
    %271 = vector.shape_cast %270 : vector<2x16xf32> to vector<2x1x16xf32>
    %272 = vector.broadcast %271 : vector<2x1x16xf32> to vector<2x16x16xf32>
    %273 = arith.mulf %95, %272 : vector<2x16x16xf32>
    %cst_85 = arith.constant dense<0.000000e+00> : vector<2x16xf32>
    %274 = vector.multi_reduction <add>, %273, %cst_85 [2] : vector<2x16x16xf32> to vector<2x16xf32>
    %275 = vector.shape_cast %270 : vector<2x16xf32> to vector<2x16x1xf32>
    %276 = vector.broadcast %275 : vector<2x16x1xf32> to vector<2x16x16xf32>
    %277 = arith.mulf %95, %276 : vector<2x16x16xf32>
    %cst_86 = arith.constant dense<0.000000e+00> : vector<2x16xf32>
    %278 = vector.multi_reduction <add>, %277, %cst_86 [1] : vector<2x16x16xf32> to vector<2x16xf32>
    %279 = vector.broadcast %230 : vector<2x1xf32> to vector<2x16xf32>
    %280 = arith.mulf %279, %270 : vector<2x16xf32>
    %cst_87 = arith.constant 1.000000e+00 : f32
    %281 = vector.broadcast %cst_87 : f32 to vector<2x16xf32>
    %282 = arith.subf %281, %280 : vector<2x16xf32>
    %283 = arith.mulf %188, %282 : vector<2x16xf32>
    %284 = vector.broadcast %242 : vector<2x1xf32> to vector<2x16xf32>
    %285 = arith.mulf %284, %278 : vector<2x16xf32>
    %286 = vector.broadcast %243 : vector<2x1xf32> to vector<2x16xf32>
    %287 = arith.mulf %286, %269 : vector<2x16xf32>
    %288 = arith.addf %285, %287 : vector<2x16xf32>
    %289 = vector.broadcast %244 : vector<2x1xf32> to vector<2x16xf32>
    %290 = arith.mulf %289, %274 : vector<2x16xf32>
    %291 = arith.addf %288, %290 : vector<2x16xf32>
    %c0_88 = arith.constant 0 : index
    %c16_89 = arith.constant 16 : index
    %292 = vector.load %arg13[%c0_88, %c16_89] : memref<2x32xf32, #tpu.memory_space<vmem>>, vector<2x16xf32>
    tpu.vector_store %arg13[%c0_88, %c16_89], %291 {strides = array<i32>} : memref<2x32xf32, #tpu.memory_space<vmem>>, vector<2x16xf32>,
    %293 = vector.shape_cast %291 : vector<2x16xf32> to vector<2x16x1xf32>
    %294 = vector.broadcast %293 : vector<2x16x1xf32> to vector<2x16x8xf32>
    %295 = arith.mulf %294, %94 : vector<2x16x8xf32>
    %cst_90 = arith.constant dense<0.000000e+00> : vector<2x8xf32>
    %296 = vector.multi_reduction <add>, %295, %cst_90 [1] : vector<2x16x8xf32> to vector<2x8xf32>
    %c0_91 = arith.constant 0 : index
    %c16_92 = arith.constant 16 : index
    %297 = vector.load %arg9[%c0_91, %c16_92] : memref<2x56xf32, #tpu.memory_space<vmem>>, vector<2x8xf32>
    tpu.vector_store %arg9[%c0_91, %c16_92], %296 {strides = array<i32>} : memref<2x56xf32, #tpu.memory_space<vmem>>, vector<2x8xf32>,
    %298 = vector.extract_strided_slice %105 {offsets = [8, 0], sizes = [8, 5], strides = [1, 1]} : vector<16x5xf32> to vector<8x5xf32>
    %cst_93 = arith.constant dense<0.000000e+00> : vector<2x5xf32>
    %299 = tpu.matmul %296, %298, %cst_93 {dimension_numbers = #tpu.dot_dimension_numbers<[1], [0], [0], [1], [0, 0, 1, 1], [], []>} : vector<2x8xf32>, vector<8x5xf32>, vector<2x5xf32> -> vector<2x5xf32>
    %300 = arith.addf %205, %299 : vector<2x5xf32>
    %301 = arith.negf %300 : vector<2x5xf32>
    %302 = math.exp %301 : vector<2x5xf32>
    %cst_94 = arith.constant 1.000000e+00 : f32
    %303 = vector.broadcast %cst_94 : f32 to vector<2x5xf32>
    %304 = arith.addf %303, %302 : vector<2x5xf32>
    %305 = arith.divf %303, %304 : vector<2x5xf32>
    %c0_95 = arith.constant 0 : index
    %c0_96 = arith.constant 0 : index
    %306 = vector.load %arg15[%c0_95, %c0_96] : memref<2x16xf32, #tpu.memory_space<vmem>>, vector<2x16xf32>
    %c0_97 = arith.constant 0 : index
    %c0_98 = arith.constant 0 : index
    %307 = vector.load %arg14[%c0_97, %c0_98] : memref<2x16xf32, #tpu.memory_space<vmem>>, vector<2x16xf32>
    %308 = arith.addf %306, %307 : vector<2x16xf32>
    %309 = arith.mulf %306, %307 : vector<2x16xf32>
    %310 = arith.subf %308, %309 : vector<2x16xf32>
    %311 = arith.mulf %310, %283 : vector<2x16xf32>
    %c0_99 = arith.constant 0 : index
    %c0_100 = arith.constant 0 : index
    %312 = vector.load %arg15[%c0_99, %c0_100] : memref<2x16xf32, #tpu.memory_space<vmem>>, vector<2x16xf32>
    tpu.vector_store %arg15[%c0_99, %c0_100], %311 {strides = array<i32>} : memref<2x16xf32, #tpu.memory_space<vmem>>, vector<2x16xf32>,
    %313 = tpu.iota {dimensions = array<i32: 1>} : vector<2x16xi32>
    %cst_101 = arith.constant 1.000000e+00 : f32
    %314 = vector.broadcast %cst_101 : f32 to vector<2x16xf32>
    %315 = vector.extract_strided_slice %311 {offsets = [0, 0], sizes = [2, 1], strides = [1, 1]} : vector<2x16xf32> to vector<2x1xf32>
    %316 = vector.broadcast %315 : vector<2x1xf32> to vector<2x16xf32>
    %317 = arith.cmpf olt, %316, %311 : vector<2x16xf32>
    %318 = vector.broadcast %315 : vector<2x1xf32> to vector<2x16xf32>
    %319 = arith.cmpf oeq, %318, %311 : vector<2x16xf32>
    %c0_i32_102 = arith.constant 0 : i32
    %320 = vector.broadcast %c0_i32_102 : i32 to vector<2x16xi32>
    %321 = arith.cmpi sgt, %313, %320 : vector<2x16xi32>
    %322 = arith.andi %319, %321 : vector<2x16xi1>
    %323 = arith.ori %317, %322 : vector<2x16xi1>
    %cst_103 = arith.constant 1.000000e+00 : f32
    %324 = vector.shape_cast %315 : vector<2x1xf32> to vector<2x1xf32>
    %325 = vector.broadcast %324 : vector<2x1xf32> to vector<2x16xf32>
    %326 = vector.broadcast %cst_103 : f32 to vector<2x16xf32>
    %327 = arith.select %323, %325, %326 : vector<2x16xi1>, vector<2x16xf32>
    %328 = arith.mulf %314, %327 : vector<2x16xf32>
    %329 = vector.extract_strided_slice %311 {offsets = [0, 1], sizes = [2, 1], strides = [1, 1]} : vector<2x16xf32> to vector<2x1xf32>
    %330 = vector.broadcast %329 : vector<2x1xf32> to vector<2x16xf32>
    %331 = arith.cmpf olt, %330, %311 : vector<2x16xf32>
    %332 = vector.broadcast %329 : vector<2x1xf32> to vector<2x16xf32>
    %333 = arith.cmpf oeq, %332, %311 : vector<2x16xf32>
    %c1_i32 = arith.constant 1 : i32
    %334 = vector.broadcast %c1_i32 : i32 to vector<2x16xi32>
    %335 = arith.cmpi sgt, %313, %334 : vector<2x16xi32>
    %336 = arith.andi %333, %335 : vector<2x16xi1>
    %337 = arith.ori %331, %336 : vector<2x16xi1>
    %cst_104 = arith.constant 1.000000e+00 : f32
    %338 = vector.shape_cast %329 : vector<2x1xf32> to vector<2x1xf32>
    %339 = vector.broadcast %338 : vector<2x1xf32> to vector<2x16xf32>
    %340 = vector.broadcast %cst_104 : f32 to vector<2x16xf32>
    %341 = arith.select %337, %339, %340 : vector<2x16xi1>, vector<2x16xf32>
    %342 = arith.mulf %328, %341 : vector<2x16xf32>
    %343 = vector.extract_strided_slice %311 {offsets = [0, 2], sizes = [2, 1], strides = [1, 1]} : vector<2x16xf32> to vector<2x1xf32>
    %344 = vector.broadcast %343 : vector<2x1xf32> to vector<2x16xf32>
    %345 = arith.cmpf olt, %344, %311 : vector<2x16xf32>
    %346 = vector.broadcast %343 : vector<2x1xf32> to vector<2x16xf32>
    %347 = arith.cmpf oeq, %346, %311 : vector<2x16xf32>
    %c2_i32 = arith.constant 2 : i32
    %348 = vector.broadcast %c2_i32 : i32 to vector<2x16xi32>
    %349 = arith.cmpi sgt, %313, %348 : vector<2x16xi32>
    %350 = arith.andi %347, %349 : vector<2x16xi1>
    %351 = arith.ori %345, %350 : vector<2x16xi1>
    %cst_105 = arith.constant 1.000000e+00 : f32
    %352 = vector.shape_cast %343 : vector<2x1xf32> to vector<2x1xf32>
    %353 = vector.broadcast %352 : vector<2x1xf32> to vector<2x16xf32>
    %354 = vector.broadcast %cst_105 : f32 to vector<2x16xf32>
    %355 = arith.select %351, %353, %354 : vector<2x16xi1>, vector<2x16xf32>
    %356 = arith.mulf %342, %355 : vector<2x16xf32>
    %357 = vector.extract_strided_slice %311 {offsets = [0, 3], sizes = [2, 1], strides = [1, 1]} : vector<2x16xf32> to vector<2x1xf32>
    %358 = vector.broadcast %357 : vector<2x1xf32> to vector<2x16xf32>
    %359 = arith.cmpf olt, %358, %311 : vector<2x16xf32>
    %360 = vector.broadcast %357 : vector<2x1xf32> to vector<2x16xf32>
    %361 = arith.cmpf oeq, %360, %311 : vector<2x16xf32>
    %c3_i32 = arith.constant 3 : i32
    %362 = vector.broadcast %c3_i32 : i32 to vector<2x16xi32>
    %363 = arith.cmpi sgt, %313, %362 : vector<2x16xi32>
    %364 = arith.andi %361, %363 : vector<2x16xi1>
    %365 = arith.ori %359, %364 : vector<2x16xi1>
    %cst_106 = arith.constant 1.000000e+00 : f32
    %366 = vector.shape_cast %357 : vector<2x1xf32> to vector<2x1xf32>
    %367 = vector.broadcast %366 : vector<2x1xf32> to vector<2x16xf32>
    %368 = vector.broadcast %cst_106 : f32 to vector<2x16xf32>
    %369 = arith.select %365, %367, %368 : vector<2x16xi1>, vector<2x16xf32>
    %370 = arith.mulf %356, %369 : vector<2x16xf32>
    %371 = vector.extract_strided_slice %311 {offsets = [0, 4], sizes = [2, 1], strides = [1, 1]} : vector<2x16xf32> to vector<2x1xf32>
    %372 = vector.broadcast %371 : vector<2x1xf32> to vector<2x16xf32>
    %373 = arith.cmpf olt, %372, %311 : vector<2x16xf32>
    %374 = vector.broadcast %371 : vector<2x1xf32> to vector<2x16xf32>
    %375 = arith.cmpf oeq, %374, %311 : vector<2x16xf32>
    %c4_i32 = arith.constant 4 : i32
    %376 = vector.broadcast %c4_i32 : i32 to vector<2x16xi32>
    %377 = arith.cmpi sgt, %313, %376 : vector<2x16xi32>
    %378 = arith.andi %375, %377 : vector<2x16xi1>
    %379 = arith.ori %373, %378 : vector<2x16xi1>
    %cst_107 = arith.constant 1.000000e+00 : f32
    %380 = vector.shape_cast %371 : vector<2x1xf32> to vector<2x1xf32>
    %381 = vector.broadcast %380 : vector<2x1xf32> to vector<2x16xf32>
    %382 = vector.broadcast %cst_107 : f32 to vector<2x16xf32>
    %383 = arith.select %379, %381, %382 : vector<2x16xi1>, vector<2x16xf32>
    %384 = arith.mulf %370, %383 : vector<2x16xf32>
    %385 = vector.extract_strided_slice %311 {offsets = [0, 5], sizes = [2, 1], strides = [1, 1]} : vector<2x16xf32> to vector<2x1xf32>
    %386 = vector.broadcast %385 : vector<2x1xf32> to vector<2x16xf32>
    %387 = arith.cmpf olt, %386, %311 : vector<2x16xf32>
    %388 = vector.broadcast %385 : vector<2x1xf32> to vector<2x16xf32>
    %389 = arith.cmpf oeq, %388, %311 : vector<2x16xf32>
    %c5_i32 = arith.constant 5 : i32
    %390 = vector.broadcast %c5_i32 : i32 to vector<2x16xi32>
    %391 = arith.cmpi sgt, %313, %390 : vector<2x16xi32>
    %392 = arith.andi %389, %391 : vector<2x16xi1>
    %393 = arith.ori %387, %392 : vector<2x16xi1>
    %cst_108 = arith.constant 1.000000e+00 : f32
    %394 = vector.shape_cast %385 : vector<2x1xf32> to vector<2x1xf32>
    %395 = vector.broadcast %394 : vector<2x1xf32> to vector<2x16xf32>
    %396 = vector.broadcast %cst_108 : f32 to vector<2x16xf32>
    %397 = arith.select %393, %395, %396 : vector<2x16xi1>, vector<2x16xf32>
    %398 = arith.mulf %384, %397 : vector<2x16xf32>
    %399 = vector.extract_strided_slice %311 {offsets = [0, 6], sizes = [2, 1], strides = [1, 1]} : vector<2x16xf32> to vector<2x1xf32>
    %400 = vector.broadcast %399 : vector<2x1xf32> to vector<2x16xf32>
    %401 = arith.cmpf olt, %400, %311 : vector<2x16xf32>
    %402 = vector.broadcast %399 : vector<2x1xf32> to vector<2x16xf32>
    %403 = arith.cmpf oeq, %402, %311 : vector<2x16xf32>
    %c6_i32 = arith.constant 6 : i32
    %404 = vector.broadcast %c6_i32 : i32 to vector<2x16xi32>
    %405 = arith.cmpi sgt, %313, %404 : vector<2x16xi32>
    %406 = arith.andi %403, %405 : vector<2x16xi1>
    %407 = arith.ori %401, %406 : vector<2x16xi1>
    %cst_109 = arith.constant 1.000000e+00 : f32
    %408 = vector.shape_cast %399 : vector<2x1xf32> to vector<2x1xf32>
    %409 = vector.broadcast %408 : vector<2x1xf32> to vector<2x16xf32>
    %410 = vector.broadcast %cst_109 : f32 to vector<2x16xf32>
    %411 = arith.select %407, %409, %410 : vector<2x16xi1>, vector<2x16xf32>
    %412 = arith.mulf %398, %411 : vector<2x16xf32>
    %413 = vector.extract_strided_slice %311 {offsets = [0, 7], sizes = [2, 1], strides = [1, 1]} : vector<2x16xf32> to vector<2x1xf32>
    %414 = vector.broadcast %413 : vector<2x1xf32> to vector<2x16xf32>
    %415 = arith.cmpf olt, %414, %311 : vector<2x16xf32>
    %416 = vector.broadcast %413 : vector<2x1xf32> to vector<2x16xf32>
    %417 = arith.cmpf oeq, %416, %311 : vector<2x16xf32>
    %c7_i32 = arith.constant 7 : i32
    %418 = vector.broadcast %c7_i32 : i32 to vector<2x16xi32>
    %419 = arith.cmpi sgt, %313, %418 : vector<2x16xi32>
    %420 = arith.andi %417, %419 : vector<2x16xi1>
    %421 = arith.ori %415, %420 : vector<2x16xi1>
    %cst_110 = arith.constant 1.000000e+00 : f32
    %422 = vector.shape_cast %413 : vector<2x1xf32> to vector<2x1xf32>
    %423 = vector.broadcast %422 : vector<2x1xf32> to vector<2x16xf32>
    %424 = vector.broadcast %cst_110 : f32 to vector<2x16xf32>
    %425 = arith.select %421, %423, %424 : vector<2x16xi1>, vector<2x16xf32>
    %426 = arith.mulf %412, %425 : vector<2x16xf32>
    %427 = vector.extract_strided_slice %311 {offsets = [0, 8], sizes = [2, 1], strides = [1, 1]} : vector<2x16xf32> to vector<2x1xf32>
    %428 = vector.broadcast %427 : vector<2x1xf32> to vector<2x16xf32>
    %429 = arith.cmpf olt, %428, %311 : vector<2x16xf32>
    %430 = vector.broadcast %427 : vector<2x1xf32> to vector<2x16xf32>
    %431 = arith.cmpf oeq, %430, %311 : vector<2x16xf32>
    %c8_i32 = arith.constant 8 : i32
    %432 = vector.broadcast %c8_i32 : i32 to vector<2x16xi32>
    %433 = arith.cmpi sgt, %313, %432 : vector<2x16xi32>
    %434 = arith.andi %431, %433 : vector<2x16xi1>
    %435 = arith.ori %429, %434 : vector<2x16xi1>
    %cst_111 = arith.constant 1.000000e+00 : f32
    %436 = vector.shape_cast %427 : vector<2x1xf32> to vector<2x1xf32>
    %437 = vector.broadcast %436 : vector<2x1xf32> to vector<2x16xf32>
    %438 = vector.broadcast %cst_111 : f32 to vector<2x16xf32>
    %439 = arith.select %435, %437, %438 : vector<2x16xi1>, vector<2x16xf32>
    %440 = arith.mulf %426, %439 : vector<2x16xf32>
    %441 = vector.extract_strided_slice %311 {offsets = [0, 9], sizes = [2, 1], strides = [1, 1]} : vector<2x16xf32> to vector<2x1xf32>
    %442 = vector.broadcast %441 : vector<2x1xf32> to vector<2x16xf32>
    %443 = arith.cmpf olt, %442, %311 : vector<2x16xf32>
    %444 = vector.broadcast %441 : vector<2x1xf32> to vector<2x16xf32>
    %445 = arith.cmpf oeq, %444, %311 : vector<2x16xf32>
    %c9_i32 = arith.constant 9 : i32
    %446 = vector.broadcast %c9_i32 : i32 to vector<2x16xi32>
    %447 = arith.cmpi sgt, %313, %446 : vector<2x16xi32>
    %448 = arith.andi %445, %447 : vector<2x16xi1>
    %449 = arith.ori %443, %448 : vector<2x16xi1>
    %cst_112 = arith.constant 1.000000e+00 : f32
    %450 = vector.shape_cast %441 : vector<2x1xf32> to vector<2x1xf32>
    %451 = vector.broadcast %450 : vector<2x1xf32> to vector<2x16xf32>
    %452 = vector.broadcast %cst_112 : f32 to vector<2x16xf32>
    %453 = arith.select %449, %451, %452 : vector<2x16xi1>, vector<2x16xf32>
    %454 = arith.mulf %440, %453 : vector<2x16xf32>
    %455 = vector.extract_strided_slice %311 {offsets = [0, 10], sizes = [2, 1], strides = [1, 1]} : vector<2x16xf32> to vector<2x1xf32>
    %456 = vector.broadcast %455 : vector<2x1xf32> to vector<2x16xf32>
    %457 = arith.cmpf olt, %456, %311 : vector<2x16xf32>
    %458 = vector.broadcast %455 : vector<2x1xf32> to vector<2x16xf32>
    %459 = arith.cmpf oeq, %458, %311 : vector<2x16xf32>
    %c10_i32 = arith.constant 10 : i32
    %460 = vector.broadcast %c10_i32 : i32 to vector<2x16xi32>
    %461 = arith.cmpi sgt, %313, %460 : vector<2x16xi32>
    %462 = arith.andi %459, %461 : vector<2x16xi1>
    %463 = arith.ori %457, %462 : vector<2x16xi1>
    %cst_113 = arith.constant 1.000000e+00 : f32
    %464 = vector.shape_cast %455 : vector<2x1xf32> to vector<2x1xf32>
    %465 = vector.broadcast %464 : vector<2x1xf32> to vector<2x16xf32>
    %466 = vector.broadcast %cst_113 : f32 to vector<2x16xf32>
    %467 = arith.select %463, %465, %466 : vector<2x16xi1>, vector<2x16xf32>
    %468 = arith.mulf %454, %467 : vector<2x16xf32>
    %469 = vector.extract_strided_slice %311 {offsets = [0, 11], sizes = [2, 1], strides = [1, 1]} : vector<2x16xf32> to vector<2x1xf32>
    %470 = vector.broadcast %469 : vector<2x1xf32> to vector<2x16xf32>
    %471 = arith.cmpf olt, %470, %311 : vector<2x16xf32>
    %472 = vector.broadcast %469 : vector<2x1xf32> to vector<2x16xf32>
    %473 = arith.cmpf oeq, %472, %311 : vector<2x16xf32>
    %c11_i32 = arith.constant 11 : i32
    %474 = vector.broadcast %c11_i32 : i32 to vector<2x16xi32>
    %475 = arith.cmpi sgt, %313, %474 : vector<2x16xi32>
    %476 = arith.andi %473, %475 : vector<2x16xi1>
    %477 = arith.ori %471, %476 : vector<2x16xi1>
    %cst_114 = arith.constant 1.000000e+00 : f32
    %478 = vector.shape_cast %469 : vector<2x1xf32> to vector<2x1xf32>
    %479 = vector.broadcast %478 : vector<2x1xf32> to vector<2x16xf32>
    %480 = vector.broadcast %cst_114 : f32 to vector<2x16xf32>
    %481 = arith.select %477, %479, %480 : vector<2x16xi1>, vector<2x16xf32>
    %482 = arith.mulf %468, %481 : vector<2x16xf32>
    %483 = vector.extract_strided_slice %311 {offsets = [0, 12], sizes = [2, 1], strides = [1, 1]} : vector<2x16xf32> to vector<2x1xf32>
    %484 = vector.broadcast %483 : vector<2x1xf32> to vector<2x16xf32>
    %485 = arith.cmpf olt, %484, %311 : vector<2x16xf32>
    %486 = vector.broadcast %483 : vector<2x1xf32> to vector<2x16xf32>
    %487 = arith.cmpf oeq, %486, %311 : vector<2x16xf32>
    %c12_i32 = arith.constant 12 : i32
    %488 = vector.broadcast %c12_i32 : i32 to vector<2x16xi32>
    %489 = arith.cmpi sgt, %313, %488 : vector<2x16xi32>
    %490 = arith.andi %487, %489 : vector<2x16xi1>
    %491 = arith.ori %485, %490 : vector<2x16xi1>
    %cst_115 = arith.constant 1.000000e+00 : f32
    %492 = vector.shape_cast %483 : vector<2x1xf32> to vector<2x1xf32>
    %493 = vector.broadcast %492 : vector<2x1xf32> to vector<2x16xf32>
    %494 = vector.broadcast %cst_115 : f32 to vector<2x16xf32>
    %495 = arith.select %491, %493, %494 : vector<2x16xi1>, vector<2x16xf32>
    %496 = arith.mulf %482, %495 : vector<2x16xf32>
    %497 = vector.extract_strided_slice %311 {offsets = [0, 13], sizes = [2, 1], strides = [1, 1]} : vector<2x16xf32> to vector<2x1xf32>
    %498 = vector.broadcast %497 : vector<2x1xf32> to vector<2x16xf32>
    %499 = arith.cmpf olt, %498, %311 : vector<2x16xf32>
    %500 = vector.broadcast %497 : vector<2x1xf32> to vector<2x16xf32>
    %501 = arith.cmpf oeq, %500, %311 : vector<2x16xf32>
    %c13_i32 = arith.constant 13 : i32
    %502 = vector.broadcast %c13_i32 : i32 to vector<2x16xi32>
    %503 = arith.cmpi sgt, %313, %502 : vector<2x16xi32>
    %504 = arith.andi %501, %503 : vector<2x16xi1>
    %505 = arith.ori %499, %504 : vector<2x16xi1>
    %cst_116 = arith.constant 1.000000e+00 : f32
    %506 = vector.shape_cast %497 : vector<2x1xf32> to vector<2x1xf32>
    %507 = vector.broadcast %506 : vector<2x1xf32> to vector<2x16xf32>
    %508 = vector.broadcast %cst_116 : f32 to vector<2x16xf32>
    %509 = arith.select %505, %507, %508 : vector<2x16xi1>, vector<2x16xf32>
    %510 = arith.mulf %496, %509 : vector<2x16xf32>
    %511 = vector.extract_strided_slice %311 {offsets = [0, 14], sizes = [2, 1], strides = [1, 1]} : vector<2x16xf32> to vector<2x1xf32>
    %512 = vector.broadcast %511 : vector<2x1xf32> to vector<2x16xf32>
    %513 = arith.cmpf olt, %512, %311 : vector<2x16xf32>
    %514 = vector.broadcast %511 : vector<2x1xf32> to vector<2x16xf32>
    %515 = arith.cmpf oeq, %514, %311 : vector<2x16xf32>
    %c14_i32 = arith.constant 14 : i32
    %516 = vector.broadcast %c14_i32 : i32 to vector<2x16xi32>
    %517 = arith.cmpi sgt, %313, %516 : vector<2x16xi32>
    %518 = arith.andi %515, %517 : vector<2x16xi1>
    %519 = arith.ori %513, %518 : vector<2x16xi1>
    %cst_117 = arith.constant 1.000000e+00 : f32
    %520 = vector.shape_cast %511 : vector<2x1xf32> to vector<2x1xf32>
    %521 = vector.broadcast %520 : vector<2x1xf32> to vector<2x16xf32>
    %522 = vector.broadcast %cst_117 : f32 to vector<2x16xf32>
    %523 = arith.select %519, %521, %522 : vector<2x16xi1>, vector<2x16xf32>
    %524 = arith.mulf %510, %523 : vector<2x16xf32>
    %525 = vector.extract_strided_slice %311 {offsets = [0, 15], sizes = [2, 1], strides = [1, 1]} : vector<2x16xf32> to vector<2x1xf32>
    %526 = vector.broadcast %525 : vector<2x1xf32> to vector<2x16xf32>
    %527 = arith.cmpf olt, %526, %311 : vector<2x16xf32>
    %528 = vector.broadcast %525 : vector<2x1xf32> to vector<2x16xf32>
    %529 = arith.cmpf oeq, %528, %311 : vector<2x16xf32>
    %c15_i32 = arith.constant 15 : i32
    %530 = vector.broadcast %c15_i32 : i32 to vector<2x16xi32>
    %531 = arith.cmpi sgt, %313, %530 : vector<2x16xi32>
    %532 = arith.andi %529, %531 : vector<2x16xi1>
    %533 = arith.ori %527, %532 : vector<2x16xi1>
    %cst_118 = arith.constant 1.000000e+00 : f32
    %534 = vector.shape_cast %525 : vector<2x1xf32> to vector<2x1xf32>
    %535 = vector.broadcast %534 : vector<2x1xf32> to vector<2x16xf32>
    %536 = vector.broadcast %cst_118 : f32 to vector<2x16xf32>
    %537 = arith.select %533, %535, %536 : vector<2x16xi1>, vector<2x16xf32>
    %538 = arith.mulf %524, %537 : vector<2x16xf32>
    %cst_119 = arith.constant 1.000000e+00 : f32
    %539 = vector.broadcast %cst_119 : f32 to vector<2x16xf32>
    %540 = arith.subf %539, %311 : vector<2x16xf32>
    %541 = arith.mulf %540, %538 : vector<2x16xf32>
    %542 = arith.mulf %56, %56 : vector<2x8xf32>
    %cst_120 = arith.constant dense<0.000000e+00> : vector<2xf32>
    %543 = vector.multi_reduction <add>, %542, %cst_120 [1] : vector<2x8xf32> to vector<2xf32>
    %544 = vector.shape_cast %543 : vector<2xf32> to vector<2x1xf32>
    %545 = math.sqrt %544 : vector<2x1xf32>
    %cst_121 = arith.constant 9.99999997E-7 : f32
    %546 = vector.broadcast %cst_121 : f32 to vector<2x1xf32>
    %547 = arith.addf %545, %546 : vector<2x1xf32>
    %548 = tpu.reciprocal %547 {approx = true} : vector<2x1xf32> -> vector<2x1xf32>
    %549 = vector.broadcast %548 : vector<2x1xf32> to vector<2x8xf32>
    %550 = arith.mulf %56, %549 : vector<2x8xf32>
    %551 = vector.shape_cast %550 : vector<2x8xf32> to vector<2x1x8xf32>
    %552 = vector.broadcast %551 : vector<2x1x8xf32> to vector<2x16x8xf32>
    %553 = arith.mulf %552, %104 : vector<2x16x8xf32>
    %cst_122 = arith.constant dense<0.000000e+00> : vector<2x16xf32>
    %554 = vector.multi_reduction <add>, %553, %cst_122 [2] : vector<2x16x8xf32> to vector<2x16xf32>
    %555 = vector.broadcast %69 : vector<2x1xf32> to vector<2x16xf32>
    %556 = arith.mulf %554, %555 : vector<2x16xf32>
    %cst_123 = arith.constant dense<0xFF800000> : vector<2xf32>
    %557 = vector.multi_reduction <maximumf>, %556, %cst_123 [1] : vector<2x16xf32> to vector<2xf32>
    %558 = vector.shape_cast %557 : vector<2xf32> to vector<2x1xf32>
    %559 = vector.broadcast %558 : vector<2x1xf32> to vector<2x16xf32>
    %560 = arith.subf %556, %559 : vector<2x16xf32>
    %561 = math.exp %560 : vector<2x16xf32>
    %cst_124 = arith.constant dense<0.000000e+00> : vector<2xf32>
    %562 = vector.multi_reduction <add>, %561, %cst_124 [1] : vector<2x16xf32> to vector<2xf32>
    %563 = vector.shape_cast %562 : vector<2xf32> to vector<2x1xf32>
    %564 = tpu.reciprocal %563 {approx = true} : vector<2x1xf32> -> vector<2x1xf32>
    %565 = vector.broadcast %564 : vector<2x1xf32> to vector<2x16xf32>
    %566 = arith.mulf %561, %565 : vector<2x16xf32>
    %567 = vector.broadcast %87 : vector<2x1xf32> to vector<2x16xf32>
    %568 = arith.mulf %567, %541 : vector<2x16xf32>
    %cst_125 = arith.constant 1.000000e+00 : f32
    %569 = vector.broadcast %cst_125 : f32 to vector<2x1xf32>
    %570 = arith.subf %569, %87 : vector<2x1xf32>
    %571 = vector.broadcast %570 : vector<2x1xf32> to vector<2x16xf32>
    %572 = arith.mulf %571, %566 : vector<2x16xf32>
    %573 = arith.addf %568, %572 : vector<2x16xf32>
    %574 = vector.broadcast %93 : vector<2x1xf32> to vector<2x16xf32>
    %575 = arith.mulf %574, %573 : vector<2x16xf32>
    %c0_126 = arith.constant 0 : index
    %c0_127 = arith.constant 0 : index
    %576 = vector.load %arg14[%c0_126, %c0_127] : memref<2x16xf32, #tpu.memory_space<vmem>>, vector<2x16xf32>
    tpu.vector_store %arg14[%c0_126, %c0_127], %575 {strides = array<i32>} : memref<2x16xf32, #tpu.memory_space<vmem>>, vector<2x16xf32>,
    %577 = vector.shape_cast %575 : vector<2x16xf32> to vector<2x16x1xf32>
    %578 = vector.shape_cast %75 : vector<2x8xf32> to vector<2x1x8xf32>
    %579 = vector.broadcast %577 : vector<2x16x1xf32> to vector<2x16x8xf32>
    %580 = vector.broadcast %578 : vector<2x1x8xf32> to vector<2x16x8xf32>
    %581 = arith.mulf %579, %580 : vector<2x16x8xf32>
    %cst_128 = arith.constant 1.000000e+00 : f32
    %582 = vector.broadcast %cst_128 : f32 to vector<2x16x8xf32>
    %583 = arith.subf %582, %581 : vector<2x16x8xf32>
    %584 = arith.mulf %94, %583 : vector<2x16x8xf32>
    %585 = vector.shape_cast %81 : vector<2x8xf32> to vector<2x1x8xf32>
    %586 = vector.broadcast %577 : vector<2x16x1xf32> to vector<2x16x8xf32>
    %587 = vector.broadcast %585 : vector<2x1x8xf32> to vector<2x16x8xf32>
    %588 = arith.mulf %586, %587 : vector<2x16x8xf32>
    %589 = arith.addf %584, %588 : vector<2x16x8xf32>
    %c0_129 = arith.constant 0 : index
    %c0_130 = arith.constant 0 : index
    %c0_131 = arith.constant 0 : index
    %590 = vector.load %arg11[%c0_129, %c0_130, %c0_131] : memref<2x16x8xf32, #tpu.memory_space<vmem>>, vector<2x16x8xf32>
    tpu.vector_store %arg11[%c0_129, %c0_130, %c0_131], %589 {strides = array<i32>} : memref<2x16x8xf32, #tpu.memory_space<vmem>>, vector<2x16x8xf32>,
    %c0_132 = arith.constant 0 : index
    %c0_133 = arith.constant 0 : index
    %591 = vector.load %arg16[%c0_132, %c0_133] : memref<2x16xf32, #tpu.memory_space<vmem>>, vector<2x16xf32>
    %cst_134 = arith.constant dense<0.000000e+00> : vector<2xf32>
    %592 = vector.multi_reduction <add>, %575, %cst_134 [1] : vector<2x16xf32> to vector<2xf32>
    %593 = vector.shape_cast %592 : vector<2xf32> to vector<2x1xf32>
    %cst_135 = arith.constant 1.000000e+00 : f32
    %594 = vector.broadcast %cst_135 : f32 to vector<2x1xf32>
    %595 = arith.subf %594, %593 : vector<2x1xf32>
    %596 = vector.broadcast %595 : vector<2x1xf32> to vector<2x16xf32>
    %597 = arith.mulf %596, %591 : vector<2x16xf32>
    %598 = arith.addf %597, %575 : vector<2x16xf32>
    %c0_136 = arith.constant 0 : index
    %c0_137 = arith.constant 0 : index
    %599 = vector.load %arg16[%c0_136, %c0_137] : memref<2x16xf32, #tpu.memory_space<vmem>>, vector<2x16xf32>
    tpu.vector_store %arg16[%c0_136, %c0_137], %598 {strides = array<i32>} : memref<2x16xf32, #tpu.memory_space<vmem>>, vector<2x16xf32>,
    %600 = tpu.iota {dimensions = array<i32: 1>} : vector<2x16x16xi32>
    %601 = tpu.iota {dimensions = array<i32: 2>} : vector<2x16x16xi32>
    %602 = vector.shape_cast %575 : vector<2x16xf32> to vector<2x16x1xf32>
    %cst_138 = arith.constant 1.000000e+00 : f32
    %603 = vector.broadcast %cst_138 : f32 to vector<2x16x1xf32>
    %604 = arith.subf %603, %602 : vector<2x16x1xf32>
    %605 = vector.shape_cast %575 : vector<2x16xf32> to vector<2x1x16xf32>
    %606 = vector.broadcast %604 : vector<2x16x1xf32> to vector<2x16x16xf32>
    %607 = vector.broadcast %605 : vector<2x1x16xf32> to vector<2x16x16xf32>
    %608 = arith.subf %606, %607 : vector<2x16x16xf32>
    %609 = arith.mulf %608, %95 : vector<2x16x16xf32>
    %610 = vector.shape_cast %575 : vector<2x16xf32> to vector<2x16x1xf32>
    %611 = vector.shape_cast %598 : vector<2x16xf32> to vector<2x1x16xf32>
    %612 = vector.broadcast %610 : vector<2x16x1xf32> to vector<2x16x16xf32>
    %613 = vector.broadcast %611 : vector<2x1x16xf32> to vector<2x16x16xf32>
    %614 = arith.mulf %612, %613 : vector<2x16x16xf32>
    %615 = arith.addf %609, %614 : vector<2x16x16xf32>
    %616 = arith.cmpi eq, %600, %601 : vector<2x16x16xi32>
    %cst_139 = arith.constant 0.000000e+00 : f32
    %617 = vector.broadcast %cst_139 : f32 to vector<2x16x16xf32>
    %618 = arith.select %616, %617, %615 : vector<2x16x16xi1>, vector<2x16x16xf32>
    %c0_140 = arith.constant 0 : index
    %c0_141 = arith.constant 0 : index
    %c0_142 = arith.constant 0 : index
    %619 = vector.load %arg12[%c0_140, %c0_141, %c0_142] : memref<2x16x16xf32, #tpu.memory_space<vmem>>, vector<2x16x16xf32>
    tpu.vector_store %arg12[%c0_140, %c0_141, %c0_142], %618 {strides = array<i32>} : memref<2x16x16xf32, #tpu.memory_space<vmem>>, vector<2x16x16xf32>,
    %620 = arith.addf %305, %50 : vector<2x5xf32>
    %621 = arith.negf %620 : vector<2x5xf32>
    %622 = math.exp %621 : vector<2x5xf32>
    %cst_143 = arith.constant 1.000000e+00 : f32
    %623 = vector.broadcast %cst_143 : f32 to vector<2x5xf32>
    %624 = arith.addf %623, %622 : vector<2x5xf32>
    %625 = arith.divf %623, %624 : vector<2x5xf32>
    %c0_144 = arith.constant 0 : index
    %c0_145 = arith.constant 0 : index
    %c0_146 = arith.constant 0 : index
    %626 = vector.load %arg8[%c0_144, %c0_145, %c0_146] : memref<1x2x5xf32, #tpu.memory_space<vmem>>, vector<1x2x5xf32>
    %627 = vector.shape_cast %626 : vector<1x2x5xf32> to vector<2x5xf32>
    %628 = vector.shape_cast %625 : vector<2x5xf32> to vector<1x2x5xf32>
    tpu.vector_store %arg8[%c0_144, %c0_145, %c0_146], %628 {strides = array<i32>} : memref<1x2x5xf32, #tpu.memory_space<vmem>>, vector<1x2x5xf32>,
    return
  }
  func.func @transform_0(%arg0: i32) -> (i32, i32, i32) {
    %c0_i32 = arith.constant 0 : i32
    %c0_i32_0 = arith.constant 0 : i32
    %c0_i32_1 = arith.constant 0 : i32
    return %arg0, %c0_i32, %c0_i32_0 : i32, i32, i32
  }
  func.func @transform_1(%arg0: i32) -> (i32, i32) {
    %c0_i32 = arith.constant 0 : i32
    %c0_i32_0 = arith.constant 0 : i32
    %c0_i32_1 = arith.constant 0 : i32
    return %c0_i32, %c0_i32_0 : i32, i32
  }
  func.func @transform_2(%arg0: i32) -> (i32, i32) {
    %c0_i32 = arith.constant 0 : i32
    %c0_i32_0 = arith.constant 0 : i32
    %c0_i32_1 = arith.constant 0 : i32
    return %c0_i32, %c0_i32_0 : i32, i32
  }
  func.func @transform_3(%arg0: i32) -> (i32, i32) {
    %c0_i32 = arith.constant 0 : i32
    %c0_i32_0 = arith.constant 0 : i32
    %c0_i32_1 = arith.constant 0 : i32
    return %c0_i32, %c0_i32_0 : i32, i32
  }
  func.func @transform_4(%arg0: i32) -> (i32, i32) {
    %c0_i32 = arith.constant 0 : i32
    %c0_i32_0 = arith.constant 0 : i32
    %c0_i32_1 = arith.constant 0 : i32
    return %c0_i32, %c0_i32_0 : i32, i32
  }
  func.func @transform_5(%arg0: i32) -> (i32, i32) {
    %c0_i32 = arith.constant 0 : i32
    %c0_i32_0 = arith.constant 0 : i32
    %c0_i32_1 = arith.constant 0 : i32
    return %c0_i32, %c0_i32_0 : i32, i32
  }
  func.func @transform_6(%arg0: i32) -> (i32, i32) {
    %c0_i32 = arith.constant 0 : i32
    %c0_i32_0 = arith.constant 0 : i32
    %c0_i32_1 = arith.constant 0 : i32
    return %c0_i32, %c0_i32_0 : i32, i32
  }
  func.func @transform_7(%arg0: i32) -> (i32, i32, i32) {
    %c0_i32 = arith.constant 0 : i32
    %c0_i32_0 = arith.constant 0 : i32
    %c0_i32_1 = arith.constant 0 : i32
    return %arg0, %c0_i32, %c0_i32_0 : i32, i32, i32
  }
}

</mosaic_0001>

<bundles_post_ra>
// kernel: dnc_forward_seq.1
= control target key start
LH: loop header
LB: loop body
LE: loop exit
PB: predicated region body
PF: predicated region fallthrough
CT: control target
= control target key end

     0   :  { %12 = vsyncpa [#allocation11], 0  ;;  %s2400_s24 = smov 0   ;;  %s3142_s0 = inlined_call_operand.vmem [shape: f32[8,2,6], index: 0, kind: input, shape index: {}]   ;;  %s3143_s1 = inlined_call_operand.hbm [shape: f32[56,128], index: 1, kind: input, shape index: {}]   ;;  %s3144_s2 = inlined_call_operand.vmem [shape: f32[1,128], index: 2, kind: input, shape index: {}]   ;;  %s3145_s3 = inlined_call_operand.vmem [shape: f32[32,58], index: 3, kind: input, shape index: {}]   ;;  %s3146_s4 = inlined_call_operand.vmem [shape: f32[1,58], index: 4, kind: input, shape index: {}]   ;;  %s3147_s5 = inlined_call_operand.vmem [shape: f32[16,5], index: 5, kind: input, shape index: {}]   ;;  %s3148_s6 = inlined_call_operand.vmem [shape: f32[1,5], index: 6, kind: input, shape index: {}]   ;;  %s3149_s7 = inlined_call_operand.vmem [shape: f32[8,2,5], index: 7, kind: output, shape index: {}]  }
   0x1 LB: > { %s212_s27 = sshll.u32 %s3143_s1, 4  ;;  %s2013_s28 = sadd.s32 4294967295, %s2307_s24   ;;  %s2307_s24 = sphi %s2400_s24, %s18_s24   ;;  %s213_s27 = int_to_ptr.hbm [resolvable:$true] %s212_s27 }
   0x2   : > { %p2015_p0 = scmp.ge.s32.totalorder %s2307_s24, 1  ;;  %p201_p1 = scmp.lt.s32.totalorder %s2307_s24, 9 }
   0x3   : > { %p2016_p2 = scmp.ne.s32.totalorder %s2013_s28, 0  ;;  %p2041_p3 = scmp.eq.s32.totalorder %s2013_s28, 0 }
   0x4   : > { %p202_p4 = pnand %p2015_p0, %p201_p1  ;;  %s2309_s29 = smov [#allocation10]  }
   0x5   : > { %s214_s30 = sshll.u32 %s2309_s29, 4  ;;  %s2310_s8 = smov 128   ;;  %s215_s30 = int_to_ptr.vmem [resolvable:$true] %s214_s30 }
   0x6   : > { %p2037_p5 = pneg %p202_p4  ;;  %s2311_s9 = smov 8  }
   0x7   : > { %252 = sbr.rel (%p202_p4) target bundleno = 3357 (0xd1d), region = 48 }
   0x8   : > { %p2038_p6 = pnand %p2041_p3, %p2037_p5 }
   0xa   : > { %2040 = dma.hbm_to_vmem [thread:$0]  (!%p2038_p6), %s213_s27, 896, %s215_s30, [#allocation11], %s2310_s8, %s2310_s8, %s2311_s9  }
   0xc   : > { %2302 = dma.done.wait (%p2041_p3), [#allocation11], 896  }
   0xd   : > { %2304 = vsyncadd (%p2041_p3), [#allocation11], 4294966400  ;;  %p283_p7 = scmp.lt.s32.totalorder %s2013_s28, 7 }
   0xe   : > { %294 = sbr.rel (%p2016_p2) target bundleno = 34 (0x22), region = 56 }
   0xf   : > { %s284_s10 = scalar_select %p283_p7, %s2013_s28, 7 }
  0x11   : > { %s2020_s11 = sshll.u32 %s284_s10, 1 }
  0x12   : > { %s286_s14 = scalar_lea.vmem %s3142_s0, %s2020_s11  ;;  %s2417_s17 = scalar_lea.vmem %s3149_s7, %s2020_s11 }
  0x13   : > { %vm295_vm0 = vcmask 451584   ;;  %vm297_vm1 = vcmask 254976   ;;  %v2312_v0 = vmov 0.0   ;;  %vm299_vm2 = vcmask 64512  }
  0x14   : > { %296 = vst.msk [vmem:[#allocation2] sm:$0x3] %vm295_vm0, %v2312_v0  ;;  %v2313_v1 = vmov 1e-06   ;;  %vm304_vm3 = vcmask 130048   ;;  %vm310_vm4 = vcmask 123904  }
  0x15   : > { %298 = vst.msk [vmem:[#allocation3] sm:$0x3] %vm297_vm1, %v2312_v0 }
  0x16   : > { %309 = vst.msk [vmem:[#allocation6] sm:$0x3] %vm297_vm1, %v2312_v0 }
  0x17   : > { %300 = vst.msk [vmem:[#allocation4] sm:$0xff] %vm299_vm2, %v2313_v1 }
  0x18   : > { %301 = vst.msk [vmem:[#allocation4 + $0x8] sm:$0xff] %vm299_vm2, %v2313_v1 }
  0x19   : > { %302 = vst.msk [vmem:[#allocation4 + $0x10] sm:$0xff] %vm299_vm2, %v2313_v1 }
  0x1a   : > { %303 = vst.msk [vmem:[#allocation4 + $0x18] sm:$0xff] %vm299_vm2, %v2313_v1 }
  0x1b   : > { %305 = vst.msk [vmem:[#allocation5] sm:$0xff] %vm304_vm3, %v2312_v0 }
  0x1c   : > { %306 = vst.msk [vmem:[#allocation5 + $0x8] sm:$0xff] %vm304_vm3, %v2312_v0 }
  0x1d   : > { %307 = vst.msk [vmem:[#allocation5 + $0x10] sm:$0xff] %vm304_vm3, %v2312_v0 }
  0x1e   : > { %308 = vst.msk [vmem:[#allocation5 + $0x18] sm:$0xff] %vm304_vm3, %v2312_v0 }
  0x1f   : > { %311 = vst.msk [vmem:[#allocation7] sm:$0x3] %vm310_vm4, %v2312_v0 }
  0x20   : > { %312 = vst.msk [vmem:[#allocation8] sm:$0x3] %vm310_vm4, %v2312_v0 }
  0x21   : > { %313 = vst.msk [vmem:[#allocation9] sm:$0x3] %vm310_vm4, %v2312_v0 }
  0x22 PF: > { %v324_v2 = vld [vmem:[#allocation10 + $0x30] sm:$0xff]  ;;  %v323_v3 = vld [vmem:[#allocation10 + $0x28] sm:$0xff]  ;;  %vm315_vm5 = vcmask 41984   ;;  %v322_v4 = vld [vmem:[#allocation10 + $0x20] sm:$0xff]  ;;  %vm329_vm6 = vcmask 457728   ;;  %s2314_s20 = smov 64  }
  0x23   : > { %342 = vmatpush.msra.mxu0 %v324_v2  ;;  %v314_v5 = vld [vmem:[%s286_s14] sm:$0x3]  ;;  %v321_v6 = vld [vmem:[#allocation10 + $0x18] sm:$0xff]  ;;  %v319_v8 = vld [vmem:[#allocation10 + $0x8] sm:$0xff]  ;;  %s2315_s21 = smov 32   ;;  %s2316_s22 = smov 96  }
  0x24   : > { %316 = vst.msk [vmem:[#allocation2] sm:$0x3] %vm315_vm5, %v314_v5  ;;  %v320_v7 = vld [vmem:[#allocation10 + $0x10] sm:$0xff]  ;;  %v318_v9 = vld [vmem:[#allocation10] sm:$0xff]  ;;  %vm399_vm11 = vcmask 254976   ;;  %v469_v37 = vld [vmem:[#allocation4] sm:$0xff]  ;;  %v684_v5 = vlaneseq }
  0x25   : > { %343 = vmatpush.msra.mxu0 %v323_v3  ;;  %v2162_v11 = vld [vmem:[%s3144_s2] ss:$0 sm:$0xff]  ;;  %v373_v15 = vld [vmem:[#allocation3] sm:$0x3]  ;;  %vm3150_vm12 = vcmask 64512   ;;  %v477_v38 = vmul.f32 %v469_v37, %v469_v37  ;;  %s2317_s23 = smov 56  }
  0x26   : > { %v2429_v42 = vld [vmem:[#allocation4 + $0x8] sm:$0xff]  ;;  %v2431_v43 = vld [vmem:[#allocation4 + $0x10] sm:$0xff]  ;;  %v2439_v48 = vld [vmem:[#allocation4 + $0x18] sm:$0xff]  ;;  %vm405_vm13 = vcmask 451776   ;;  %vm417_vm14 = vcmask 261120   ;;  %s2318_s10 = smov 5  }
  0x27   : > { %344 = vmatpush.msra.mxu0 %v322_v4  ;;  %v482_v39 = vsel %vm3150_vm12, %v477_v38, 0.0  ;;  %v478_v44 = vmul.f32 %v2429_v42, %v2429_v42  ;;  %v479_v45 = vmul.f32 %v2431_v43, %v2431_v43  ;;  %v480_v49 = vmul.f32 %v2439_v48, %v2439_v48  ;;  %v410_v51 = vld [vmem:[%s3145_s3 + $0x18] sm:$0xff]  ;;  %v409_v52 = vld [vmem:[%s3145_s3 + $0x10] sm:$0xff]  ;;  %v408_v53 = vld [vmem:[%s3145_s3 + $0x8] sm:$0xff]  ;;  %s2319_s11 = smov 13   ;;  %s2323_s14 = smov 115  }
  0x28   : > { %432 = vmatpush.msra.mxu1 %v410_v51  ;;  %v407_v54 = vld [vmem:[%s3145_s3] sm:$0xff]  ;;  %s2324_s15 = smov 123   ;;  %s2325_s16 = smov 76  }
  0x29   : > { %345 = vmatpush.msra.mxu0 %v321_v6  ;;  %v485_v46 = vsel %vm3150_vm12, %v478_v44, 0.0  ;;  %v488_v47 = vsel %vm3150_vm12, %v479_v45, 0.0  ;;  %v491_v50 = vsel %vm3150_vm12, %v480_v49, 0.0  ;;  %s2326_s18 = smov 73   ;;  %s2331_s19 = smov 103  }
  0x2a   : > { %433 = vmatpush.msra.mxu1 %v409_v52  ;;  %s2340_s25 = smov 8   ;;  %s2342_s26 = smov 16  }
  0x2b   : > { %346 = vmatpush.msra.mxu0 %v320_v7  ;;  %v317_v10 = vld [vmem:[#allocation2] sm:$0x3]  ;;  %v2457_v7 = vshrl.u32 %v684_v5, 7  ;;  %s2359_s8 = smov 94  }
  0x2c   : > { %434 = vmatpush.msra.mxu1 %v408_v53 }
  0x2d   : > { %347 = vmatpush.msra.mxu0 %v319_v8  ;;  %2102 = vset.pattern.permute.xlu0 %v2457_v7 }
  0x2e   : > { %435 = vmatpush.msra.mxu1 %v407_v54  ;;  %2104 = vset.pattern.permute.xlu1 %v2457_v7 }
  0x2f   : > { %348 = vmatpush.msra.mxu0 %v318_v9  ;;  %v2465_v9 = vld [vmem:[#allocation6] sm:$0x3] }
  0x30   : > { %2023 = vmatmul.msk.f32.vlgmr.msra.gmra.mxu0 %vm329_vm6, %v317_v10  ;;  %v2468_v10 = vperm.slane %v2465_v9, 0 }
  0xad   : > { %v350_v12 = vpop.f32.mrf.mxu0 }
  0xae   : > { %v351_v13 = vadd.f32 %v2162_v11, %v350_v12 }
  0xb0   : > { %2165 = vtanh.f32 %v351_v13  ;;  %v2024_v16 = vmul.f32 -1.442695, %v351_v13 }
  0xb2   : > { %2167 = vpow2.f32 %v2024_v16 }
  0xb6   : > { %v2166_v14 = vpop.eup %2165 }
  0xb7   : > { %380 = vrot.lane.b32.xlu0 %v2166_v14, %s2314_s20 }
  0xb8   : > { %v2168_v17 = vpop.eup %2167 }
  0xb9   : > { %v356_v18 = vadd.f32 1.0, %v2168_v17 }
  0xbb   : > { %2169 = vrcp.f32 %v356_v18  ;;  %v368_v24 = vand.u32 2147483648, %v356_v18  ;;  %vm362_vm8 = vweird.f32 %v356_v18  ;;  %v366_v25 = vand.u32 2147483647, %v356_v18 }
  0xbd   : > { %v369_v27 = vor.u32 1.1754944e-38, %v368_v24  ;;  %vm367_vm10 = vcmp.eq.f32.partialorder %v366_v25, 8.507059e+37 }
  0xbf   : > { %375 = vrot.lane.b32.xlu0 %v373_v15, %s2315_s21 }
  0xc1   : > { %v2170_v19 = vpop.eup %2169 }
  0xc2   : > { %v358_v20 = vmul.f32 %v2170_v19, %v356_v18  ;;  %vm363_vm7 = vweird.f32 %v2170_v19 }
  0xc3   : > { %vm364_vm9 = vmor %vm362_vm8, %vm363_vm7  ;;  %vm3151_vm7 = vcmask 130048   ;;  %vm972_vm8 = vcmask 468408  }
  0xc4   : > { %v359_v21 = vsub.f32 1.0, %v358_v20 }
  0xc6   : > { %v360_v22 = vmul.f32 %v2170_v19, %v359_v21 }
  0xc8   : > { %v361_v23 = vadd.f32 %v2170_v19, %v360_v22 }
  0xca   : > { %v365_v26 = vsel %vm364_vm9, %v2170_v19, %v361_v23 }
  0xcb   : > { %v370_v29 = vsel %vm367_vm10, %v369_v27, %v365_v26 }
 0x129   : > { %v381_v28 = vpop.permute.xlu0 %380 }
 0x12a   : > { %v383_v30 = vmul.f32 %v381_v28, %v370_v29 }
 0x12c   : > { %385 = vrot.lane.b32.xlu1 %v383_v30, %s2315_s21 }
 0x131   : > { %v376_v31 = vpop.permute.xlu0 %375 }
 0x132   : > { %v378_v32 = vmul.f32 %v376_v31, %v370_v29 }
 0x19e   : > { %v386_v33 = vpop.permute.xlu1 %385 }
 0x19f   : > { %v388_v34 = vadd.f32 %v386_v33, %v378_v32 }
 0x1a1   : > { %396 = vrot.lane.b32.xlu2 %v388_v34, %s2316_s22  ;;  %2171 = vtanh.f32 %v388_v34 }
 0x1a7   : > { %v2172_v35 = vpop.eup %2171 }
 0x1a8   : > { %391 = vrot.lane.b32.xlu1 %v2172_v35, %s2314_s20  ;;  %s2332_s20 = smov 25  }
 0x1d2   : > { %483 = vadd.xlane.f32.xlu1 %v482_v39 }
 0x1fb   : > { %v397_v36 = vpop.permute.xlu2 %396 }
 0x1fc   : > { %400 = vst.msk [vmem:[#allocation3] sm:$0x3] %vm399_vm11, %v397_v36 }
 0x21a   : > { %v392_v40 = vpop.permute.xlu1 %391 }
 0x21b   : > { %v394_v41 = vmul.f32 %v392_v40, %v370_v29 }
 0x21d   : > { %415 = vrot.lane.b32.xlu0 %v394_v41, %s2315_s21  ;;  %402 = vrot.lane.b32.xlu2 %v394_v41, %s2317_s23  ;;  %s2338_s21 = smov 112  }
 0x245   : > { %v484_v56 = vpop.xlane.xlu1 %483 }
 0x246   : > { %486 = vadd.xlane.f32.xlu2 %v485_v46  ;;  %2173 = vrsqrt.f32 %v484_v56  ;;  %vm501_vm15 = vcmp.eq.f32.partialorder %v484_v56, inf  ;;  %v504_v1 = vand.u32 2147483648, %v484_v56  ;;  %vm503_vm0 = vcmp.eq.f32.partialorder %v484_v56, 0.0 }
 0x247   : > { %489 = vadd.xlane.f32.xlu0 %v488_v47 }
 0x24c   : > { %v2174_v57 = vpop.eup %2173 }
 0x24d   : > { %v495_v59 = vmul.f32 %v2174_v57, %v484_v56 }
 0x24e   : > { %492 = vadd.xlane.f32.xlu2 %v491_v50 }
 0x24f   : > { %v496_v60 = vmul.f32 %v2174_v57, %v495_v59 }
 0x251   : > { %v497_v61 = vmul.f32 0.5, %v496_v60 }
 0x253   : > { %v498_v62 = vsub.f32 1.5, %v497_v61  ;;  %v2502_v61 = vadd.s32 8, %v2457_v7 }
 0x255   : > { %v499_v63 = vmul.f32 %v2174_v57, %v498_v62  ;;  %v2504_v62 = vld [vmem:[#allocation5 + $0x10] sm:$0xff]  ;;  %2103 = vset.pattern.permute.xlu2 %v2502_v61 }
 0x257   : > { %v500_v0 = vmul.f32 %v499_v63, %v484_v56  ;;  %v2320_v63 = vmov 22  }
 0x259   : > { %v502_v2 = vsel %vm501_vm15, %v484_v56, %v500_v0  ;;  %v2494_v56 = vld [vmem:[#allocation5 + $0x8] sm:$0xff]  ;;  %v2163_v0 = vld [vmem:[%s3146_s4] ss:$0 sm:$0xff]  ;;  %vm689_vm15 = vcmask 130112  }
 0x25a   : > { %v505_v3 = vsel %vm503_vm0, %v504_v1, %v502_v2  ;;  %vm3153_vm0 = vcmask 1041409  }
 0x25b   : > { %v542_v4 = vadd.f32 1e-06, %v505_v3 }
 0x25d   : > { %2175 = vrcp.f32 %v542_v4 }
 0x263   : > { %v2176_v6 = vpop.eup %2175 }
 0x264   : > { %v2459_v8 = vmul.f32 %v2176_v6, %v469_v37 }
 0x266   : > { %612 = vrot.lane.b32.xlu0 %v2459_v8, %s2318_s10 }
 0x26e   : > { %784 = vperm.xlu0 %2102, %v2468_v10  }
 0x276   : > { %1015 = vrot.lane.b32.xlu0 %v2459_v8, %s2319_s11 }
 0x277   : > { %v403_v55 = vpop.permute.xlu2 %402  ;;  %2107 = vset.pattern.permute.xlu0 %v2320_v63 }
 0x278   : > { %406 = vst.msk [vmem:[#allocation2] sm:$0x3] %vm405_vm13, %v403_v55  ;;  %vm561_vm13 = vcmask 443808  }
 0x28f   : > { %v416_v58 = vpop.permute.xlu0 %415 }
 0x290   : > { %2025 = vmatmul.msk.f32.vlgmr.msra.gmra.mxu1 %vm417_vm14, %v416_v58  ;;  %v757_v58 = vrot.slane %v2465_v9, 1 }
 0x292   : > { %v759_v60 = vperm.slane %v757_v58, 0 }
 0x294   : > { %v764_v1 = vmul.f32 %v759_v60, %v2504_v62 }
 0x296   : > { %v773_v6 = vsel %vm3151_vm7, %v764_v1, 0.0 }
 0x2b9   : > { %v487_v11 = vpop.xlane.xlu2 %486 }
 0x2ba   : > { %2177 = vrsqrt.f32 %v487_v11  ;;  %v490_v12 = vpop.xlane.xlu0 %489  ;;  %vm513_vm1 = vcmp.eq.f32.partialorder %v487_v11, inf  ;;  %v516_v28 = vand.u32 2147483648, %v487_v11  ;;  %vm515_vm2 = vcmp.eq.f32.partialorder %v487_v11, 0.0 }
 0x2bb   : > { %2179 = vrsqrt.f32 %v490_v12  ;;  %vm525_vm3 = vcmp.eq.f32.partialorder %v490_v12, inf  ;;  %v528_v32 = vand.u32 2147483648, %v490_v12  ;;  %vm527_vm4 = vcmp.eq.f32.partialorder %v490_v12, 0.0 }
 0x2c0   : > { %v2178_v13 = vpop.eup %2177 }
 0x2c1   : > { %v2180_v14 = vpop.eup %2179  ;;  %v507_v15 = vmul.f32 %v2178_v13, %v487_v11  ;;  %v493_v16 = vpop.xlane.xlu2 %492 }
 0x2c2   : > { %v519_v17 = vmul.f32 %v2180_v14, %v490_v12  ;;  %2181 = vrsqrt.f32 %v493_v16  ;;  %vm537_vm5 = vcmp.eq.f32.partialorder %v493_v16, inf  ;;  %v540_v44 = vand.u32 2147483648, %v493_v16 }
 0x2c3   : > { %v508_v18 = vmul.f32 %v2178_v13, %v507_v15  ;;  %vm539_vm6 = vcmp.eq.f32.partialorder %v493_v16, 0.0 }
 0x2c4   : > { %v520_v19 = vmul.f32 %v2180_v14, %v519_v17  ;;  %v792_v17 = vperm.slane %v2465_v9, 1 }
 0x2c5   : > { %v509_v20 = vmul.f32 0.5, %v508_v18 }
 0x2c6   : > { %v521_v21 = vmul.f32 0.5, %v520_v19 }
 0x2c7   : > { %v510_v22 = vsub.f32 1.5, %v509_v20 }
 0x2c8   : > { %v2182_v23 = vpop.eup %2181  ;;  %v522_v24 = vsub.f32 1.5, %v521_v21 }
 0x2c9   : > { %v531_v25 = vmul.f32 %v2182_v23, %v493_v16  ;;  %v511_v26 = vmul.f32 %v2178_v13, %v510_v22 }
 0x2ca   : > { %v523_v27 = vmul.f32 %v2180_v14, %v522_v24 }
 0x2cb   : > { %v532_v29 = vmul.f32 %v2182_v23, %v531_v25  ;;  %v512_v30 = vmul.f32 %v511_v26, %v487_v11 }
 0x2cc   : > { %v524_v31 = vmul.f32 %v523_v27, %v490_v12 }
 0x2cd   : > { %v533_v33 = vmul.f32 0.5, %v532_v29  ;;  %v514_v34 = vsel %vm513_vm1, %v487_v11, %v512_v30  ;;  %vm583_vm1 = vcmask 58368  }
 0x2ce   : > { %v517_v35 = vsel %vm515_vm2, %v516_v28, %v514_v34  ;;  %v526_v36 = vsel %vm525_vm3, %v490_v12, %v524_v31  ;;  %v2516_v12 = vld [vmem:[#allocation5 + $0x18] sm:$0xff]  ;;  %v2321_v28 = vmov 23   ;;  %vm572_vm2 = vcmask 17408  }
 0x2cf   : > { %v534_v37 = vsub.f32 1.5, %v533_v33  ;;  %v543_v38 = vadd.f32 1e-06, %v517_v35  ;;  %v529_v39 = vsel %vm527_vm4, %v528_v32, %v526_v36  ;;  %v765_v14 = vmul.f32 %v759_v60, %v2516_v12 }
 0x2d0   : > { %v544_v40 = vadd.f32 1e-06, %v529_v39  ;;  %v2322_v33 = vmov 21  }
 0x2d1   : > { %v535_v41 = vmul.f32 %v2182_v23, %v534_v37  ;;  %2183 = vrcp.f32 %v543_v38 }
 0x2d2   : > { %2185 = vrcp.f32 %v544_v40 }
 0x2d3   : > { %v536_v45 = vmul.f32 %v535_v41, %v493_v16 }
 0x2d5   : > { %v538_v46 = vsel %vm537_vm5, %v493_v16, %v536_v45  ;;  %v776_v16 = vsel %vm3151_vm7, %v765_v14, 0.0 }
 0x2d6   : > { %v541_v47 = vsel %vm539_vm6, %v540_v44, %v538_v46 }
 0x2d7   : > { %v2184_v49 = vpop.eup %2183  ;;  %v545_v50 = vadd.f32 1e-06, %v541_v47 }
 0x2d8   : > { %v2186_v51 = vpop.eup %2185  ;;  %v2474_v52 = vmul.f32 %v2184_v49, %v2429_v42  ;;  %v2490_v42 = vld [vmem:[#allocation5] sm:$0xff]  ;;  %v2551_v49 = vand.u32 127, %v684_v5 }
 0x2d9   : > { %v2477_v53 = vmul.f32 %v2186_v51, %v2431_v43  ;;  %2187 = vrcp.f32 %v545_v50  ;;  %v762_v43 = vmul.f32 %v2468_v10, %v2490_v42  ;;  %v2556_v51 = vpop.permute.xlu0 %612 }
 0x2da   : > { %614 = vrot.lane.b32.xlu2 %v2474_v52, %s2318_s10  ;;  %v2554_v50 = vadd.s32 4294967288, %v2551_v49 }
 0x2db   : > { %616 = vrot.lane.b32.xlu1 %v2477_v53, %s2318_s10  ;;  %v767_v57 = vsel %vm3151_vm7, %v762_v43, 0.0 }
 0x2df   : > { %v2188_v54 = vpop.eup %2187 }
 0x2e0   : > { %v2484_v55 = vmul.f32 %v2188_v54, %v2439_v48  ;;  %v763_v48 = vmul.f32 %v2468_v10, %v2494_v56 }
 0x2e2   : > { %618 = vrot.lane.b32.xlu2 %v2484_v55, %s2318_s10  ;;  %1021 = vrot.lane.b32.xlu0 %v2484_v55, %s2319_s11  ;;  %v770_v59 = vsel %vm3151_vm7, %v763_v48, 0.0 }
 0x305   : > { %768 = vadd.xlane.f32.xlu1 %v767_v57 }
 0x30b   : > { %771 = vadd.xlane.f32.xlu2 %v770_v59 }
 0x30d   : > { %v437_v2 = vpop.f32.mrf.mxu1 }
 0x30e   : > { %v2511_v3 = vadd.f32 %v2163_v0, %v437_v2  ;;  %v785_v0 = vpop.permute.xlu0 %784 }
 0x30f   : > { %v805_v1 = vmul.f32 %v785_v0, %v2490_v42 }
 0x310   : > { %v973_v4 = vsel %vm972_vm8, %v2511_v3, -inf  ;;  %v460_v11 = vand.u32 2147483647, %v2511_v3  ;;  %v2026_v20 = vmul.f32 -1.442695, %v2511_v3  ;;  %v459_v22 = vmax.f32 %v2511_v3, 0.0 }
 0x311   : > { %974 = vmax.xlane.f32.xlu0 %v973_v4  ;;  %v562_v39 = vsel %vm561_vm13, %v2511_v3, -inf  ;;  %vm1299_vm13 = vcmask 255104  }
 0x312   : > { %v461_v13 = vsub.f32 0.0, %v460_v11 }
 0x313   : > { %774 = vadd.xlane.f32.xlu2 %v773_v6  ;;  %v809_v6 = vsel %vm3151_vm7, %v805_v1, 0.0 }
 0x314   : > { %v462_v15 = vmul.f32 1.442695, %v461_v13 }
 0x316   : > { %2189 = vpow2.f32 %v462_v15 }
 0x31b   : > { %777 = vadd.xlane.f32.xlu2 %v776_v16 }
 0x31c   : > { %v2190_v18 = vpop.eup %2189 }
 0x31d   : > { %v464_v19 = vadd.f32 1.0, %v2190_v18 }
 0x31e   : > { %797 = vperm.xlu1 %2104, %v792_v17  }
 0x31f   : > { %2191 = vlog2.f32 %v464_v19 }
 0x320   : > { %2193 = vpow2.f32 %v2026_v20 }
 0x325   : > { %v2192_v21 = vpop.eup %2191 }
 0x326   : > { %1017 = vrot.lane.b32.xlu1 %v2474_v52, %s2319_s11  ;;  %v466_v23 = vmul.f32 0.6931472, %v2192_v21  ;;  %v2194_v26 = vpop.eup %2193 }
 0x327   : > { %v443_v27 = vadd.f32 1.0, %v2194_v26  ;;  %2106 = vset.pattern.permute.xlu1 %v2321_v28 }
 0x328   : > { %v467_v24 = vadd.f32 %v466_v23, %v459_v22 }
 0x329   : > { %2195 = vrcp.f32 %v443_v27  ;;  %v455_v35 = vand.u32 2147483648, %v443_v27  ;;  %vm449_vm10 = vweird.f32 %v443_v27  ;;  %v453_v36 = vand.u32 2147483647, %v443_v27 }
 0x32a   : > { %v2525_v25 = vadd.f32 1.0, %v467_v24 }
 0x32b   : > { %v456_v37 = vor.u32 1.1754944e-38, %v455_v35  ;;  %vm454_vm14 = vcmp.eq.f32.partialorder %v453_v36, 8.507059e+37 }
 0x32c   : > { %1060 = vperm.xlu0 %2107, %v2525_v25  }
 0x32f   : > { %v2196_v29 = vpop.eup %2195 }
 0x330   : > { %v445_v30 = vmul.f32 %v2196_v29, %v443_v27  ;;  %vm450_vm9 = vweird.f32 %v2196_v29 }
 0x331   : > { %vm451_vm11 = vmor %vm449_vm10, %vm450_vm9  ;;  %vm3152_vm10 = vcmask 123904  }
 0x332   : > { %v446_v31 = vsub.f32 1.0, %v445_v30 }
 0x333   : > { %790 = vperm.xlu2 %2103, %v2468_v10  }
 0x334   : > { %v447_v32 = vmul.f32 %v2196_v29, %v446_v31  ;;  %v2542_v41 = vpop.permute.xlu2 %614 }
 0x336   : > { %v448_v34 = vadd.f32 %v2196_v29, %v447_v32  ;;  %v2578_v32 = vpop.permute.xlu0 %1015 }
 0x338   : > { %v452_v10 = vsel %vm451_vm11, %v2196_v29, %v448_v34  ;;  %vm947_vm11 = vcmask 123968  }
 0x339   : > { %v2532_v38 = vsel %vm454_vm14, %v456_v37, %v452_v10  ;;  %vm1423_vm14 = vcmp.gt.s32.totalorder %v2551_v49, 1 }
 0x33a   : > { %v2537_v40 = vmul.f32 %v2532_v38, %v2532_v38 }
 0x33b   : > { %803 = vperm.xlu2 %2103, %v792_v17  }
 0x33c   : > { %v2546_v44 = vpop.permute.xlu2 %618 }
 0x343   : > { %1019 = vrot.lane.b32.xlu2 %v2477_v53, %s2319_s11 }
 0x344   : > { %2105 = vset.pattern.permute.xlu2 %v2322_v33 }
 0x34b   : > { %658 = vperm.xlu2 %2105, %v2525_v25  }
 0x34d   : > { %v2548_v46 = vpop.permute.xlu1 %616 }
 0x350   : > { %563 = vmax.xlane.f32.xlu1 %v562_v39 }
 0x353   : > { %988 = vrot.lane.b32.xlu2 %v2537_v40, %s2323_s14 }
 0x369   : > { %829 = vperm.xlu1 %2106, %v2532_v38  }
 0x371   : > { %580 = vrot.lane.b32.xlu1 %v2537_v40, %s2324_s15 }
 0x378   : > { %v769_v54 = vpop.xlane.xlu1 %768 }
 0x379   : > { %v882_v58 = vperm.slane %v769_v54, %v2551_v49 }
 0x37e   : > { %v772_v45 = vpop.xlane.xlu2 %771 }
 0x37f   : > { %v883_v43 = vperm.slane %v772_v45, %v2554_v50 }
 0x381   : > { %v884_v5 = vsel %vm689_vm15, %v883_v43, %v882_v58 }
 0x386   : > { %v775_v47 = vpop.xlane.xlu2 %774 }
 0x387   : > { %v885_v57 = vperm.slane %v775_v47, %v2551_v49 }
 0x38e   : > { %v778_v48 = vpop.xlane.xlu2 %777 }
 0x38f   : > { %v886_v59 = vperm.slane %v778_v48, %v2554_v50 }
 0x390   : > { %v798_v13 = vpop.permute.xlu1 %797 }
 0x391   : > { %v887_v60 = vsel %vm689_vm15, %v886_v59, %v885_v57  ;;  %v807_v16 = vmul.f32 %v798_v13, %v2504_v62 }
 0x392   : > { %v2565_v63 = vsel %vm3153_vm0, %v887_v60, %v884_v5 }
 0x393   : > { %v818_v20 = vsel %vm3151_vm7, %v807_v16, 0.0 }
 0x396   : > { %v791_v2 = vpop.permute.xlu2 %790 }
 0x397   : > { %v806_v4 = vmul.f32 %v791_v2, %v2494_v56 }
 0x398   : > { %v2582_v33 = vpop.permute.xlu1 %1017 }
 0x399   : > { %v810_v11 = vsel %vm3151_vm7, %v806_v4, 0.0 }
 0x39a   : > { %v811_v14 = vadd.f32 %v810_v11, %v809_v6 }
 0x39c   : > { %v812_v15 = vrot.slane %v811_v14, 4 }
 0x39e   : > { %v813_v17 = vadd.f32 %v812_v15, %v811_v14  ;;  %v804_v18 = vpop.permute.xlu2 %803 }
 0x39f   : > { %v808_v19 = vmul.f32 %v804_v18, %v2516_v12  ;;  %v2580_v12 = vpop.permute.xlu0 %1021 }
 0x3a0   : > { %v814_v21 = vrot.slane %v813_v17, 2 }
 0x3a1   : > { %v819_v42 = vsel %vm3151_vm7, %v808_v19, 0.0 }
 0x3a2   : > { %v820_v22 = vadd.f32 %v819_v42, %v818_v20  ;;  %v815_v23 = vadd.f32 %v814_v21, %v813_v17 }
 0x3a4   : > { %v821_v56 = vrot.slane %v820_v22, 4  ;;  %v816_v28 = vrot.slane %v815_v23, 1 }
 0x3a6   : > { %v822_v24 = vadd.f32 %v821_v56, %v820_v22  ;;  %v817_v30 = vadd.f32 %v816_v28, %v815_v23 }
 0x3a7   : > { %v975_v36 = vpop.xlane.xlu0 %974 }
 0x3a8   : > { %v823_v26 = vrot.slane %v822_v24, 2  ;;  %v976_v37 = vsub.f32 %v2511_v3, %v975_v36 }
 0x3aa   : > { %v824_v27 = vadd.f32 %v823_v26, %v822_v24  ;;  %v977_v39 = vmul.f32 1.442695, %v976_v37 }
 0x3ac   : > { %v825_v29 = vrot.slane %v824_v27, 1 }
 0x3ae   : > { %v826_v31 = vadd.f32 %v825_v29, %v824_v27 }
 0x3af   : > { %v2600_v2 = vpop.permute.xlu0 %1060 }
 0x3b0   : > { %v2576_v62 = vsel %vm3153_vm0, %v826_v31, %v817_v30 }
 0x3c3   : > { %v564_v34 = vpop.xlane.xlu1 %563 }
 0x3c4   : > { %v565_v35 = vsub.f32 %v2511_v3, %v564_v34  ;;  %v2595_v3 = vpop.permute.xlu2 %1019 }
 0x3c6   : > { %v566_v10 = vmul.f32 1.442695, %v565_v35 }
 0x3c8   : > { %2197 = vpow2.f32 %v566_v10 }
 0x3c9   : > { %2199 = vpow2.f32 %v977_v39 }
 0x3cc   : > { %v2597_v48 = vpop.permute.xlu2 %658 }
 0x3ce   : > { %v2586_v45 = vpop.eup %2197 }
 0x3cf   : > { %569 = vrot.lane.b32.xlu2 %v2586_v45, %s2325_s16  ;;  %v2589_v47 = vpop.eup %2199 }
 0x3d4   : > { %v989_v58 = vpop.permute.xlu2 %988 }
 0x3d5   : > { %v991_v59 = vsel %vm583_vm1, %v989_v58, 0.0  ;;  %v2328_v58 = vmov 53  }
 0x3d6   : > { %2109 = vset.pattern.permute.xlu1 %v2328_v58 }
 0x3d7   : > { %980 = vrot.lane.b32.xlu2 %v2589_v47, %s2326_s18 }
 0x3db   : > { %v2592_v54 = vpop.permute.xlu1 %829 }
 0x3e3   : > { %v581_v43 = vpop.permute.xlu1 %580 }
 0x3e4   : > { %v584_v57 = vsel %vm583_vm1, %v581_v43, 0.0 }
 0x3e5   : > { %585 = vadd.xlane.f32.xlu0 %v584_v57 }
 0x400   : > { %992 = vadd.xlane.f32.xlu2 %v991_v59 }
 0x429   : > { %v570_v5 = vpop.permute.xlu2 %569 }
 0x42a   : > { %v573_v60 = vsel %vm572_vm2, %v570_v5, 0.0 }
 0x42b   : > { %574 = vadd.xlane.f32.xlu0 %v573_v60 }
 0x431   : > { %v981_v0 = vpop.permute.xlu2 %980 }
 0x432   : > { %v983_v1 = vsel %vm572_vm2, %v981_v0, 0.0 }
 0x433   : > { %984 = vadd.xlane.f32.xlu1 %v983_v1 }
 0x458   : > { %v586_v4 = vpop.xlane.xlu0 %585 }
 0x459   : > { %2201 = vrsqrt.f32 %v586_v4  ;;  %vm594_vm3 = vcmp.eq.f32.partialorder %v586_v4, inf  ;;  %v597_v18 = vand.u32 2147483648, %v586_v4  ;;  %vm596_vm4 = vcmp.eq.f32.partialorder %v586_v4, 0.0 }
 0x45f   : > { %v2202_v6 = vpop.eup %2201 }
 0x460   : > { %v588_v11 = vmul.f32 %v2202_v6, %v586_v4 }
 0x462   : > { %v589_v13 = vmul.f32 %v2202_v6, %v588_v11 }
 0x464   : > { %v590_v14 = vmul.f32 0.5, %v589_v13 }
 0x466   : > { %v591_v15 = vsub.f32 1.5, %v590_v14 }
 0x468   : > { %v592_v16 = vmul.f32 %v2202_v6, %v591_v15  ;;  %v2329_v15 = vmov 54  }
 0x46a   : > { %v593_v17 = vmul.f32 %v592_v16, %v586_v4 }
 0x46c   : > { %v595_v19 = vsel %vm594_vm3, %v586_v4, %v593_v17 }
 0x46d   : > { %v598_v20 = vsel %vm596_vm4, %v597_v18, %v595_v19  ;;  %vm1413_vm4 = vcmp.gt.s32.totalorder %v2551_v49, 0 }
 0x46e   : > { %v599_v42 = vadd.f32 1e-06, %v598_v20 }
 0x470   : > { %2203 = vrcp.f32 %v599_v42 }
 0x473   : > { %v993_v21 = vpop.xlane.xlu2 %992 }
 0x474   : > { %2205 = vrsqrt.f32 %v993_v21  ;;  %vm1001_vm5 = vcmp.eq.f32.partialorder %v993_v21, inf  ;;  %v1004_v39 = vand.u32 2147483648, %v993_v21  ;;  %vm1003_vm6 = vcmp.eq.f32.partialorder %v993_v21, 0.0 }
 0x476   : > { %v2204_v22 = vpop.eup %2203 }
 0x477   : > { %v601_v56 = vmul.f32 %v2204_v22, %v2532_v38 }
 0x479   : > { %v604_v23 = vperm.slane %v601_v56, 0  ;;  %v603_v24 = vrot.slane %v601_v56, 1 }
 0x47a   : > { %v2206_v26 = vpop.eup %2205 }
 0x47b   : > { %v995_v27 = vmul.f32 %v2206_v26, %v993_v21  ;;  %v625_v28 = vmul.f32 %v2542_v41, %v604_v23  ;;  %v624_v29 = vmul.f32 %v2556_v51, %v604_v23  ;;  %v605_v30 = vperm.slane %v603_v24, 0 }
 0x47c   : > { %v2327_v51 = vmov 52  }
 0x47d   : > { %v996_v31 = vmul.f32 %v2206_v26, %v995_v27  ;;  %634 = vrot.lane.b32.xlu0 %v625_v28, %s2324_s15  ;;  %632 = vrot.lane.b32.xlu1 %v624_v29, %s2324_s15  ;;  %v626_v34 = vmul.f32 %v2548_v46, %v605_v30  ;;  %v627_v13 = vmul.f32 %v2546_v44, %v605_v30  ;;  %v2330_v28 = vmov 0  }
 0x47e   : > { %2108 = vset.pattern.permute.xlu2 %v2327_v51  ;;  %2112 = vset.pattern.permute.xlu0 %v2330_v28  ;;  %v660_v30 = vperm.slane %v2597_v48, 0 }
 0x47f   : > { %v997_v35 = vmul.f32 0.5, %v996_v31  ;;  %636 = vrot.lane.b32.xlu2 %v626_v34, %s2324_s15 }
 0x481   : > { %v998_v36 = vsub.f32 1.5, %v997_v35 }
 0x483   : > { %v999_v10 = vmul.f32 %v2206_v26, %v998_v36 }
 0x485   : > { %v1000_v37 = vmul.f32 %v999_v10, %v993_v21 }
 0x487   : > { %v1002_v43 = vsel %vm1001_vm5, %v993_v21, %v1000_v37 }
 0x488   : > { %v1005_v41 = vsel %vm1003_vm6, %v1004_v39, %v1002_v43  ;;  %v1062_v39 = vperm.slane %v2600_v2, 0 }
 0x489   : > { %v1006_v57 = vadd.f32 1e-06, %v1005_v41 }
 0x48b   : > { %2207 = vrcp.f32 %v1006_v57 }
 0x491   : > { %v2208_v59 = vpop.eup %2207 }
 0x492   : > { %v1008_v46 = vmul.f32 %v2208_v59, %v2532_v38  ;;  %v661_v59 = vperm.slane %v2597_v48, 1  ;;  %v2334_v48 = vmov 24  }
 0x494   : > { %v1011_v5 = vperm.slane %v1008_v46, 0  ;;  %v1010_v1 = vrot.slane %v1008_v46, 1 }
 0x496   : > { %v1027_v60 = vmul.f32 %v2578_v32, %v1011_v5  ;;  %v1028_v0 = vmul.f32 %v2582_v33, %v1011_v5  ;;  %v1012_v4 = vperm.slane %v1010_v1, 0 }
 0x498   : > { %1035 = vrot.lane.b32.xlu0 %v1027_v60, %s2323_s14  ;;  %1037 = vrot.lane.b32.xlu1 %v1028_v0, %s2323_s14  ;;  %v1029_v11 = vmul.f32 %v2595_v3, %v1012_v4  ;;  %v1030_v32 = vmul.f32 %v2580_v12, %v1012_v4  ;;  %v2333_v0 = vmov 55  }
 0x49e   : > { %v575_v6 = vpop.xlane.xlu0 %574 }
 0x49f   : > { %2209 = vrcp.f32 %v575_v6 }
 0x4a0   : > { %1039 = vrot.lane.b32.xlu0 %v1029_v11, %s2323_s14  ;;  %638 = vrot.lane.b32.xlu1 %v627_v13, %s2324_s15 }
 0x4a5   : > { %v2210_v14 = vpop.eup %2209 }
 0x4a6   : > { %v577_v33 = vmul.f32 %v2210_v14, %v2586_v45  ;;  %v985_v16 = vpop.xlane.xlu1 %984 }
 0x4a7   : > { %2211 = vrcp.f32 %v985_v16 }
 0x4a8   : > { %1041 = vrot.lane.b32.xlu1 %v1030_v32, %s2323_s14  ;;  %836 = vperm.xlu2 %2108, %v577_v33  }
 0x4ad   : > { %v2212_v1 = vpop.eup %2211 }
 0x4ae   : > { %v987_v4 = vmul.f32 %v2212_v1, %v2589_v47  ;;  %v2336_v47 = vmov 57  }
 0x4b0   : > { %845 = vperm.xlu1 %2109, %v577_v33   ;;  %2113 = vset.pattern.permute.xlu2 %v2330_v28 }
 0x4b8   : > { %2110 = vset.pattern.permute.xlu1 %v2329_v15 }
 0x4b9   : > { %875 = vperm.xlu1 %2110, %v577_v33  }
 0x4c1   : > { %2111 = vset.pattern.permute.xlu1 %v2330_v28 }
 0x4d9   : > { %v637_v3 = vpop.permute.xlu2 %636 }
 0x4da   : > { %v650_v44 = vsel %vm3150_vm12, %v637_v3, 0.0 }
 0x4e3   : > { %651 = vadd.xlane.f32.xlu1 %v650_v44 }
 0x4ef   : > { %v635_v17 = vpop.permute.xlu0 %634  ;;  %v633_v18 = vpop.permute.xlu1 %632 }
 0x4f0   : > { %v647_v19 = vsel %vm3150_vm12, %v635_v17, 0.0  ;;  %v644_v12 = vsel %vm3150_vm12, %v633_v18, 0.0 }
 0x4f1   : > { %648 = vadd.xlane.f32.xlu2 %v647_v19  ;;  %645 = vadd.xlane.f32.xlu0 %v644_v12 }
 0x502   : > { %v2632_v29 = vpop.permute.xlu2 %836 }
 0x50a   : > { %v1036_v45 = vpop.permute.xlu0 %1035  ;;  %v1038_v20 = vpop.permute.xlu1 %1037 }
 0x50b   : > { %v1047_v42 = vsel %vm3150_vm12, %v1036_v45, 0.0  ;;  %v1050_v21 = vsel %vm3150_vm12, %v1038_v20, 0.0 }
 0x50c   : > { %1048 = vadd.xlane.f32.xlu2 %v1047_v42  ;;  %1051 = vadd.xlane.f32.xlu0 %v1050_v21 }
 0x512   : > { %v1040_v22 = vpop.permute.xlu0 %1039  ;;  %v639_v56 = vpop.permute.xlu1 %638 }
 0x513   : > { %v1053_v23 = vsel %vm3150_vm12, %v1040_v22, 0.0  ;;  %v653_v24 = vsel %vm3150_vm12, %v639_v56, 0.0 }
 0x514   : > { %1054 = vadd.xlane.f32.xlu1 %v1053_v23  ;;  %654 = vadd.xlane.f32.xlu0 %v653_v24 }
 0x51a   : > { %v1042_v26 = vpop.permute.xlu1 %1041 }
 0x51b   : > { %v1056_v27 = vsel %vm3150_vm12, %v1042_v26, 0.0 }
 0x51c   : > { %1057 = vadd.xlane.f32.xlu2 %v1056_v27 }
 0x522   : > { %v2641_v10 = vpop.permute.xlu1 %845 }
 0x52b   : > { %v2643_v37 = vpop.permute.xlu1 %875 }
 0x556   : > { %v652_v58 = vpop.xlane.xlu1 %651 }
 0x557   : > { %v2653_v5 = vmul.f32 %v661_v59, %v652_v58 }
 0x564   : > { %v649_v31 = vpop.xlane.xlu2 %648  ;;  %v646_v34 = vpop.xlane.xlu0 %645 }
 0x565   : > { %v2635_v35 = vmul.f32 %v660_v30, %v649_v31  ;;  %v2637_v36 = vmul.f32 %v660_v30, %v646_v34  ;;  %v1063_v31 = vperm.slane %v2600_v2, 1 }
 0x567   : > { %673 = vperm.xlu1 %2111, %v2637_v36   ;;  %676 = vperm.xlu0 %2112, %v2635_v35  }
 0x56f   : > { %2119 = vset.pattern.permute.xlu0 %v2336_v47 }
 0x57f   : > { %v1049_v43 = vpop.xlane.xlu2 %1048  ;;  %v1052_v41 = vpop.xlane.xlu0 %1051 }
 0x580   : > { %v2646_v51 = vmul.f32 %v1062_v39, %v1049_v43  ;;  %v2648_v57 = vmul.f32 %v1062_v39, %v1052_v41 }
 0x582   : > { %1078 = vperm.xlu1 %2111, %v2648_v57   ;;  %1075 = vperm.xlu2 %2113, %v2646_v51  }
 0x587   : > { %v655_v46 = vpop.xlane.xlu0 %654 }
 0x588   : > { %v2655_v60 = vmul.f32 %v661_v59, %v655_v46  ;;  %v2337_v46 = vmov 33  }
 0x58a   : > { %682 = vperm.xlu1 %2111, %v2655_v60   ;;  %679 = vperm.xlu2 %2113, %v2653_v5  }
 0x58f   : > { %v1058_v20 = vpop.xlane.xlu2 %1057 }
 0x590   : > { %v2679_v39 = vmul.f32 %v1063_v31, %v1058_v20 }
 0x592   : > { %1584 = vrot.lane.b32.xlu1 %v2537_v40, %s2331_s19  ;;  %1617 = vrot.lane.b32.xlu2 %v2484_v55, %s2332_s20  ;;  %v2335_v40 = vmov 56   ;;  %v1055_v55 = vpop.xlane.xlu1 %1054 }
 0x593   : > { %2115 = vset.pattern.permute.xlu2 %v2333_v0  ;;  %2114 = vset.pattern.permute.xlu1 %v2334_v48  ;;  %v2677_v34 = vmul.f32 %v1063_v31, %v1055_v55 }
 0x59a   : > { %1611 = vrot.lane.b32.xlu1 %v2459_v8, %s2332_s20  ;;  %1239 = vperm.xlu2 %2115, %v987_v4  }
 0x5a2   : > { %1613 = vrot.lane.b32.xlu1 %v2474_v52, %s2332_s20  ;;  %2117 = vset.pattern.permute.xlu2 %v2330_v28 }
 0x5aa   : > { %1227 = vperm.xlu1 %2114, %v2532_v38  }
 0x5b2   : > { %2116 = vset.pattern.permute.xlu1 %v2335_v40 }
 0x5b3   : > { %1248 = vperm.xlu1 %2116, %v987_v4  }
 0x5bb   : > { %2118 = vset.pattern.permute.xlu1 %v2330_v28 }
 0x5d9   : > { %v674_v6 = vpop.permute.xlu1 %673  ;;  %v677_v52 = vpop.permute.xlu0 %676 }
 0x5da   : > { %v688_v0 = vperm.slane %v677_v52, %v2554_v50  ;;  %v686_v48 = vperm.slane %v674_v6, %v2551_v49 }
 0x5dc   : > { %v1076_v22 = vpop.permute.xlu2 %1075  ;;  %v690_v40 = vsel %vm689_vm15, %v688_v0, %v686_v48 }
 0x5e4   : > { %v680_v30 = vpop.permute.xlu2 %679 }
 0x5e5   : > { %v691_v1 = vperm.slane %v680_v30, %v2551_v49 }
 0x5ec   : > { %v1618_v58 = vpop.permute.xlu2 %1617 }
 0x5f4   : > { %v2668_v11 = vpop.permute.xlu1 %1078 }
 0x5fc   : > { %v683_v13 = vpop.permute.xlu1 %682 }
 0x5fd   : > { %v692_v2 = vperm.slane %v683_v13, %v2554_v50 }
 0x604   : > { %v1585_v8 = vpop.permute.xlu1 %1584 }
 0x605   : > { %v1587_v14 = vsel %vm583_vm1, %v1585_v8, 0.0 }
 0x606   : > { %1588 = vadd.xlane.f32.xlu0 %v1587_v14  ;;  %v2697_v14 = vpop.permute.xlu2 %1239 }
 0x60c   : > { %v1612_v42 = vpop.permute.xlu1 %1611 }
 0x614   : > { %v1614_v24 = vpop.permute.xlu1 %1613 }
 0x61a   : > { %1615 = vrot.lane.b32.xlu0 %v2477_v53, %s2332_s20 }
 0x61c   : > { %v2695_v13 = vpop.permute.xlu1 %1227 }
 0x622   : > { %1278 = vperm.xlu0 %2119, %v987_v4   ;;  %v693_v4 = vsel %vm689_vm15, %v692_v2, %v691_v1 }
 0x623   : > { %v695_v55 = vsel %vm3153_vm0, %v693_v4, %v690_v40 }
 0x624   : > { %v698_v47 = vsel %vm3152_vm10, %v695_v55, -inf }
 0x625   : > { %v2699_v6 = vpop.permute.xlu1 %1248 }
 0x62a   : > { %2122 = vset.pattern.permute.xlu0 %v2330_v28 }
 0x679   : > { %v1589_v32 = vpop.xlane.xlu0 %1588 }
 0x67a   : > { %2213 = vrsqrt.f32 %v1589_v32  ;;  %vm1597_vm8 = vcmp.eq.f32.partialorder %v1589_v32, inf  ;;  %v1600_v19 = vand.u32 2147483648, %v1589_v32  ;;  %vm1599_vm9 = vcmp.eq.f32.partialorder %v1589_v32, 0.0 }
 0x680   : > { %v2214_v33 = vpop.eup %2213 }
 0x681   : > { %v1591_v15 = vmul.f32 %v2214_v33, %v1589_v32 }
 0x683   : > { %v1592_v3 = vmul.f32 %v2214_v33, %v1591_v15 }
 0x685   : > { %v1593_v44 = vmul.f32 0.5, %v1592_v3  ;;  %v1087_v3 = vperm.slane %v2668_v11, %v2554_v50 }
 0x687   : > { %v1594_v16 = vsub.f32 1.5, %v1593_v44 }
 0x689   : > { %v1595_v17 = vmul.f32 %v2214_v33, %v1594_v16  ;;  %v1086_v16 = vperm.slane %v1076_v22, %v2551_v49 }
 0x68b   : > { %v1596_v18 = vmul.f32 %v1595_v17, %v1589_v32 }
 0x68d   : > { %v1598_v12 = vsel %vm1597_vm8, %v1589_v32, %v1596_v18 }
 0x68e   : > { %v1601_v45 = vsel %vm1599_vm9, %v1600_v19, %v1598_v12  ;;  %v1088_v19 = vsel %vm689_vm15, %v1087_v3, %v1086_v16 }
 0x68f   : > { %v1602_v53 = vadd.f32 1e-06, %v1601_v45 }
 0x691   : > { %2215 = vrcp.f32 %v1602_v53 }
 0x697   : > { %v2216_v21 = vpop.eup %2215 }
 0x698   : > { %v1604_v56 = vmul.f32 %v2216_v21, %v2532_v38 }
 0x69a   : > { %v1607_v23 = vperm.slane %v1604_v56, 0  ;;  %v1606_v43 = vrot.slane %v1604_v56, 1 }
 0x69c   : > { %v1623_v26 = vmul.f32 %v1612_v42, %v1607_v23  ;;  %v1624_v27 = vmul.f32 %v1614_v24, %v1607_v23  ;;  %v1608_v41 = vperm.slane %v1606_v43, 0 }
 0x69e   : > { %1631 = vrot.lane.b32.xlu2 %v1623_v26, %s2331_s19  ;;  %1633 = vrot.lane.b32.xlu1 %v1624_v27, %s2331_s19  ;;  %v1626_v59 = vmul.f32 %v1618_v58, %v1608_v41 }
 0x6a6   : > { %1081 = vperm.xlu2 %2117, %v2677_v34   ;;  %1084 = vperm.xlu1 %2118, %v2679_v39  }
 0x6ae   : > { %1637 = vrot.lane.b32.xlu1 %v1626_v59, %s2331_s19 }
 0x6af   : > { %2120 = vset.pattern.permute.xlu1 %v2337_v46 }
 0x6b6   : > { %1656 = vperm.xlu1 %2120, %v2525_v25   ;;  %v1616_v25 = vpop.permute.xlu0 %1615 }
 0x6b7   : > { %v1625_v8 = vmul.f32 %v1616_v25, %v1608_v41 }
 0x6be   : > { %2121 = vset.pattern.permute.xlu1 %v2330_v28  ;;  %v2745_v3 = vpop.permute.xlu0 %1278 }
 0x6cf   : > { %699 = vmax.xlane.f32.xlu2 %v698_v47 }
 0x6e7   : > { %1635 = vrot.lane.b32.xlu2 %v1625_v8, %s2331_s19 }
 0x6f8   : > { %v1632_v52 = vpop.permute.xlu2 %1631 }
 0x6f9   : > { %v1643_v32 = vsel %vm3150_vm12, %v1632_v52, 0.0 }
 0x700   : > { %v1082_v15 = vpop.permute.xlu2 %1081 }
 0x701   : > { %v1089_v17 = vperm.slane %v1082_v15, %v2551_v49 }
 0x710   : > { %1644 = vadd.xlane.f32.xlu2 %v1643_v32  ;;  %v1634_v33 = vpop.permute.xlu1 %1633 }
 0x718   : > { %v1085_v44 = vpop.permute.xlu1 %1084 }
 0x719   : > { %v1090_v18 = vperm.slane %v1085_v44, %v2554_v50 }
 0x71b   : > { %v1091_v12 = vsel %vm689_vm15, %v1090_v18, %v1089_v17 }
 0x71c   : > { %v1092_v45 = vsel %vm3153_vm0, %v1091_v12, %v1088_v19 }
 0x71d   : > { %v1094_v20 = vsel %vm3152_vm10, %v1092_v45, -inf }
 0x71e   : > { %1095 = vmax.xlane.f32.xlu2 %v1094_v20 }
 0x720   : > { %v1638_v53 = vpop.permute.xlu1 %1637 }
 0x721   : > { %v1652_v42 = vsel %vm3150_vm12, %v1638_v53, 0.0 }
 0x726   : > { %1653 = vadd.xlane.f32.xlu2 %v1652_v42 }
 0x742   : > { %v700_v11 = vpop.xlane.xlu2 %699 }
 0x743   : > { %v702_v21 = vperm.slane %v700_v11, 0  ;;  %v703_v22 = vperm.slane %v700_v11, 1 }
 0x745   : > { %v706_v56 = vsub.f32 %v2637_v36, %v702_v21  ;;  %v708_v23 = vsub.f32 %v2653_v5, %v703_v22  ;;  %v707_v27 = vsub.f32 %v2635_v35, %v702_v21  ;;  %v709_v41 = vsub.f32 %v2655_v60, %v703_v22 }
 0x746   : > { %v1646_v60 = vsel %vm3150_vm12, %v1634_v33, 0.0  ;;  %v1657_v33 = vpop.permute.xlu1 %1656 }
 0x747   : > { %v710_v24 = vmul.f32 1.442695, %v706_v56  ;;  %v714_v26 = vmul.f32 1.442695, %v708_v23  ;;  %v712_v30 = vmul.f32 1.442695, %v707_v27 }
 0x748   : > { %v716_v36 = vmul.f32 1.442695, %v709_v41  ;;  %v1659_v11 = vperm.slane %v1657_v33, 1  ;;  %v1658_v56 = vperm.slane %v1657_v33, 0 }
 0x749   : > { %2217 = vpow2.f32 %v710_v24 }
 0x74a   : > { %2219 = vpow2.f32 %v714_v26  ;;  %v1636_v58 = vpop.permute.xlu2 %1635 }
 0x74b   : > { %2221 = vpow2.f32 %v712_v30  ;;  %v1649_v59 = vsel %vm3150_vm12, %v1636_v58, 0.0 }
 0x74c   : > { %2223 = vpow2.f32 %v716_v36 }
 0x74f   : > { %v2715_v31 = vpop.eup %2217 }
 0x750   : > { %723 = vperm.xlu1 %2121, %v2715_v31   ;;  %v2718_v43 = vpop.eup %2219 }
 0x751   : > { %729 = vperm.xlu0 %2122, %v2718_v43   ;;  %v2722_v5 = vpop.eup %2221 }
 0x752   : > { %v2725_v35 = vpop.eup %2223 }
 0x758   : > { %726 = vperm.xlu1 %2121, %v2722_v5  }
 0x760   : > { %732 = vperm.xlu1 %2121, %v2725_v35  }
 0x77b   : > { %1650 = vadd.xlane.f32.xlu0 %v1649_v59 }
 0x783   : > { %v2729_v46 = vpop.xlane.xlu2 %1644 }
 0x78a   : > { %1647 = vadd.xlane.f32.xlu1 %v1646_v60 }
 0x791   : > { %v1096_v2 = vpop.xlane.xlu2 %1095 }
 0x792   : > { %v1098_v0 = vperm.slane %v1096_v2, 0  ;;  %v1099_v40 = vperm.slane %v1096_v2, 1 }
 0x794   : > { %v1102_v48 = vsub.f32 %v2646_v51, %v1098_v0  ;;  %v1103_v1 = vsub.f32 %v2648_v57, %v1098_v0  ;;  %v1104_v47 = vsub.f32 %v2677_v34, %v1099_v40  ;;  %v1105_v51 = vsub.f32 %v2679_v39, %v1099_v40 }
 0x796   : > { %v1108_v4 = vmul.f32 1.442695, %v1103_v1  ;;  %v1106_v55 = vmul.f32 1.442695, %v1102_v48  ;;  %v1110_v8 = vmul.f32 1.442695, %v1104_v47 }
 0x797   : > { %v1112_v57 = vmul.f32 1.442695, %v1105_v51 }
 0x798   : > { %2225 = vpow2.f32 %v1108_v4 }
 0x799   : > { %2227 = vpow2.f32 %v1106_v55  ;;  %v1654_v26 = vpop.xlane.xlu2 %1653 }
 0x79a   : > { %2229 = vpow2.f32 %v1110_v8  ;;  %v2761_v27 = vmul.f32 %v1659_v11, %v1654_v26  ;;  %v843_v26 = vmul.f32 %v2576_v62, %v2632_v29 }
 0x79b   : > { %2231 = vpow2.f32 %v1112_v57 }
 0x79e   : > { %v2735_v25 = vpop.eup %2225 }
 0x79f   : > { %1122 = vperm.xlu0 %2122, %v2735_v25   ;;  %v2738_v52 = vpop.eup %2227 }
 0x7a0   : > { %v2742_v32 = vpop.eup %2229 }
 0x7a1   : > { %v2232_v34 = vpop.eup %2231 }
 0x7a3   : > { %1119 = vperm.xlu1 %2121, %v2738_v52  }
 0x7ab   : > { %1125 = vperm.xlu1 %2121, %v2742_v32  }
 0x7b3   : > { %1128 = vperm.xlu1 %2121, %v2232_v34  }
 0x7c2   : > { %v724_v15 = vpop.permute.xlu1 %723 }
 0x7c3   : > { %v730_v16 = vpop.permute.xlu0 %729  ;;  %v734_v19 = vperm.slane %v724_v15, %v2551_v49 }
 0x7c4   : > { %v737_v39 = vperm.slane %v730_v16, %v2551_v49  ;;  %v2777_v16 = vmul.f32 %v1658_v56, %v2729_v46 }
 0x7ca   : > { %v727_v44 = vpop.permute.xlu1 %726 }
 0x7cb   : > { %v735_v17 = vperm.slane %v727_v44, %v2554_v50 }
 0x7cd   : > { %v736_v45 = vsel %vm689_vm15, %v735_v17, %v734_v19 }
 0x7d2   : > { %v733_v18 = vpop.permute.xlu1 %732 }
 0x7d3   : > { %v738_v12 = vperm.slane %v733_v18, %v2554_v50 }
 0x7d5   : > { %v739_v20 = vsel %vm689_vm15, %v738_v12, %v737_v39 }
 0x7d6   : > { %v740_v53 = vsel %vm3153_vm0, %v739_v20, %v736_v45 }
 0x7d7   : > { %v742_v42 = vsel %vm3152_vm10, %v740_v53, 0.0 }
 0x7d8   : > { %743 = vadd.xlane.f32.xlu0 %v742_v42 }
 0x7ee   : > { %v1651_v21 = vpop.xlane.xlu0 %1650 }
 0x7ef   : > { %v2755_v22 = vmul.f32 %v1659_v11, %v1651_v21 }
 0x7f1   : > { %1677 = vperm.xlu1 %2121, %v2755_v22  }
 0x7fd   : > { %v1648_v23 = vpop.xlane.xlu1 %1647 }
 0x7fe   : > { %v2758_v24 = vmul.f32 %v1658_v56, %v1648_v23 }
 0x800   : > { %1674 = vperm.xlu2 %2117, %v2758_v24  }
 0x808   : > { %1680 = vperm.xlu2 %2117, %v2761_v27  }
 0x811   : > { %v1123_v36 = vpop.permute.xlu0 %1122 }
 0x812   : > { %v1131_v60 = vperm.slane %v1123_v36, %v2554_v50 }
 0x815   : > { %v1120_v30 = vpop.permute.xlu1 %1119 }
 0x816   : > { %v1130_v58 = vperm.slane %v1120_v30, %v2551_v49 }
 0x818   : > { %v1132_v48 = vsel %vm689_vm15, %v1131_v60, %v1130_v58 }
 0x81d   : > { %v1126_v41 = vpop.permute.xlu1 %1125 }
 0x81e   : > { %v1133_v2 = vperm.slane %v1126_v41, %v2551_v49  ;;  %v890_v41 = vmul.f32 %v2565_v63, %v2643_v37 }
 0x825   : > { %v1129_v59 = vpop.permute.xlu1 %1128 }
 0x826   : > { %v1134_v0 = vperm.slane %v1129_v59, %v2554_v50 }
 0x828   : > { %v1135_v1 = vsel %vm689_vm15, %v1134_v0, %v1133_v2  ;;  %v1181_v2 = vadd.s32 16, %v2457_v7  ;;  %v1187_v0 = vadd.s32 24, %v2457_v7 }
 0x829   : > { %v1136_v4 = vsel %vm3153_vm0, %v1135_v1, %v1132_v48 }
 0x82a   : > { %v1138_v40 = vsel %vm3152_vm10, %v1136_v4, 0.0 }
 0x82b   : > { %1139 = vadd.xlane.f32.xlu0 %v1138_v40 }
 0x84b   : > { %v744_v55 = vpop.xlane.xlu0 %743 }
 0x84c   : > { %2233 = vrcp.f32 %v744_v55 }
 0x852   : > { %v2234_v47 = vpop.eup %2233 }
 0x853   : > { %v748_v8 = vperm.slane %v2234_v47, 1  ;;  %v747_v51 = vperm.slane %v2234_v47, 0 }
 0x855   : > { %v753_v57 = vmul.f32 %v2718_v43, %v748_v8  ;;  %v752_v33 = vmul.f32 %v2722_v5, %v747_v51  ;;  %v751_v15 = vmul.f32 %v2715_v31, %v747_v51  ;;  %v754_v44 = vmul.f32 %v2725_v35, %v748_v8 }
 0x857   : > { %859 = vperm.xlu1 %2121, %v753_v57   ;;  %856 = vperm.xlu2 %2117, %v752_v33  }
 0x858   : > { %853 = vperm.xlu0 %2122, %v751_v15  }
 0x85a   : > { %v2782_v12 = vpop.permute.xlu2 %1674 }
 0x85f   : > { %862 = vperm.xlu2 %2117, %v754_v44  }
 0x860   : > { %1671 = vperm.xlu0 %2122, %v2777_v16  }
 0x862   : > { %v2787_v46 = vpop.permute.xlu2 %1680 }
 0x89e   : > { %v1140_v17 = vpop.xlane.xlu0 %1139 }
 0x89f   : > { %2235 = vrcp.f32 %v1140_v17 }
 0x8a5   : > { %v2236_v18 = vpop.eup %2235 }
 0x8a6   : > { %v1144_v39 = vperm.slane %v2236_v18, 1  ;;  %v1143_v43 = vperm.slane %v2236_v18, 0 }
 0x8a8   : > { %v1150_v19 = vmul.f32 %v2232_v34, %v1144_v39  ;;  %v1149_v5 = vmul.f32 %v2742_v32, %v1144_v39  ;;  %v1147_v31 = vmul.f32 %v2738_v52, %v1143_v43  ;;  %v1148_v35 = vmul.f32 %v2735_v25, %v1143_v43  ;;  %v2790_v32 = vpop.permute.xlu1 %1677  ;;  %v554_v39 = vld [vmem:[%s3147_s5] sm:$0xff] }
 0x8a9   : > { %966 = vmatpush.msra.mxu2 %v554_v39  ;;  %v1399_v39 = vld [vmem:[#allocation8] sm:$0x3] }
 0x8aa   : > { %1265 = vperm.xlu1 %2121, %v1150_v19   ;;  %1262 = vperm.xlu2 %2117, %v1149_v5   ;;  %v2824_v19 = vld [vmem:[#allocation4 + $0x18] sm:$0xff] }
 0x8ab   : > { %1256 = vperm.xlu0 %2122, %v1147_v31   ;;  %v2827_v31 = vld [vmem:[#allocation4 + $0x8] sm:$0xff] }
 0x8b1   : > { %v857_v34 = vpop.permute.xlu2 %856 }
 0x8b2   : > { %2125 = vset.pattern.permute.xlu1 %v2457_v7  ;;  %2124 = vset.pattern.permute.xlu2 %v2502_v61  ;;  %v865_v25 = vperm.slane %v857_v34, %v2554_v50 }
 0x8b3   : > { %1259 = vperm.xlu0 %2122, %v1148_v35  }
 0x8b9   : > { %v863_v52 = vpop.permute.xlu2 %862 }
 0x8ba   : > { %v868_v20 = vperm.slane %v863_v52, %v2554_v50 }
 0x8bb   : > { %2123 = vset.pattern.permute.xlu0 %v2457_v7 }
 0x8c9   : > { %v860_v45 = vpop.permute.xlu1 %859 }
 0x8ca   : > { %v854_v53 = vpop.permute.xlu0 %853  ;;  %v867_v42 = vperm.slane %v860_v45, %v2551_v49 }
 0x8cb   : > { %v864_v11 = vperm.slane %v854_v53, %v2551_v49 }
 0x8cc   : > { %v869_v21 = vsel %vm689_vm15, %v868_v20, %v867_v42  ;;  %v2832_v20 = vld [vmem:[#allocation4 + $0x10] sm:$0xff]  ;;  %v2835_v42 = vld [vmem:[#allocation4] sm:$0xff] }
 0x8cd   : > { %v866_v56 = vsel %vm689_vm15, %v865_v25, %v864_v11 }
 0x8ce   : > { %v870_v23 = vsel %vm3153_vm0, %v869_v21, %v866_v56 }
 0x8cf   : > { %v872_v30 = vmul.f32 %v870_v23, %v2641_v10 }
 0x8d1   : > { %v873_v36 = vadd.f32 %v872_v30, %v843_v26 }
 0x8d2   : > { %v2810_v4 = vpop.permute.xlu0 %1671 }
 0x8d3   : > { %v891_v58 = vadd.f32 %v890_v41, %v873_v36 }
 0x8d5   : > { %v906_v59 = vperm.slane %v891_v58, 1  ;;  %892 = vst.msk [vmem:[#allocation6] sm:$0x3] %vm3152_vm10, %v891_v58  ;;  %v893_v60 = vperm.slane %v891_v58, 0 }
 0x8d7   : > { %911 = vperm.xlu1 %2125, %v906_v59   ;;  %904 = vperm.xlu2 %2124, %v893_v60  }
 0x8d8   : > { %898 = vperm.xlu0 %2123, %v893_v60  }
 0x8dc   : > { %v1151_v48 = vld [vmem:[#allocation6] sm:$0x3] }
 0x8dd   : > { %v1154_v62 = vperm.slane %v1151_v48, 0  ;;  %v1230_v63 = vmul.f32 %v2695_v13, %v1151_v48  ;;  %v1191_v29 = vperm.slane %v1151_v48, 1  ;;  %v1153_v37 = vrot.slane %v1151_v48, 1 }
 0x8df   : > { %2126 = vset.pattern.permute.xlu1 %v1181_v2  ;;  %917 = vperm.xlu2 %2124, %v906_v59   ;;  %v1231_v10 = vsub.f32 1.0, %v1230_v63  ;;  %v1155_v1 = vperm.slane %v1153_v37, 0  ;;  %v2848_v37 = vld [vmem:[#allocation5 + $0x8] sm:$0xff] }
 0x8e0   : > { %2127 = vset.pattern.permute.xlu0 %v1187_v0  ;;  %1156 = vrot.lane.b32.xlu1 %v1154_v62, %s2338_s21 }
 0x8e7   : > { %2128 = vset.pattern.permute.xlu2 %v1181_v2  ;;  %v2842_v2 = vld [vmem:[#allocation5 + $0x10] sm:$0xff] }
 0x8e8   : > { %1189 = vperm.xlu0 %2127, %v1154_v62   ;;  %1183 = vperm.xlu1 %2126, %v1154_v62   ;;  %v2339_v62 = vmov 1  }
 0x8ef   : > { %1196 = vperm.xlu2 %2128, %v1191_v29  }
 0x8f0   : > { %1233 = vrot.lane.b32.xlu0 %v1231_v10, %s2338_s21  ;;  %2129 = vset.pattern.permute.xlu1 %v1187_v0 }
 0x8f1   : > { %2134 = vset.pattern.permute.xlu0 %v2339_v62 }
 0x8f7   : > { %1158 = vrot.lane.b32.xlu2 %v1155_v1, %s2338_s21 }
 0x8f8   : > { %1202 = vperm.xlu1 %2129, %v1191_v29   ;;  %2132 = vset.pattern.permute.xlu2 %v2457_v7  ;;  %v2845_v29 = vld [vmem:[#allocation5] sm:$0xff] }
 0x900   : > { %2130 = vset.pattern.permute.xlu1 %v2457_v7 }
 0x904   : > { %v1263_v40 = vpop.permute.xlu2 %1262 }
 0x905   : > { %v1270_v47 = vperm.slane %v1263_v40, %v2551_v49 }
 0x91c   : > { %v1266_v55 = vpop.permute.xlu1 %1265 }
 0x91d   : > { %v1257_v13 = vpop.permute.xlu0 %1256  ;;  %v1271_v8 = vperm.slane %v1266_v55, %v2554_v50 }
 0x91e   : > { %v1267_v33 = vperm.slane %v1257_v13, %v2551_v49 }
 0x91f   : > { %v1272_v51 = vsel %vm689_vm15, %v1271_v8, %v1270_v47 }
 0x925   : > { %v1260_v57 = vpop.permute.xlu0 %1259 }
 0x926   : > { %v1268_v15 = vperm.slane %v1260_v57, %v2554_v50 }
 0x928   : > { %v1269_v44 = vsel %vm689_vm15, %v1268_v15, %v1267_v33  ;;  %v2854_v15 = vld [vmem:[#allocation5 + $0x18] sm:$0xff] }
 0x929   : > { %v2819_v17 = vsel %vm3153_vm0, %v1272_v51, %v1269_v44 }
 0x931   : > { %v905_v18 = vpop.permute.xlu2 %904 }
 0x932   : > { %v920_v35 = vmul.f32 %v2827_v31, %v905_v18 }
 0x934   : > { %v924_v56 = vsel %vm3150_vm12, %v920_v35, 0.0 }
 0x939   : > { %v918_v43 = vpop.permute.xlu2 %917 }
 0x93a   : > { %v922_v5 = vmul.f32 %v2824_v19, %v918_v43  ;;  %v1400_v43 = vld [vmem:[#allocation7] sm:$0x3] }
 0x93c   : > { %v933_v11 = vsel %vm3150_vm12, %v922_v5, 0.0 }
 0x949   : > { %v2830_v34 = vpop.permute.xlu2 %1196  ;;  %v912_v52 = vpop.permute.xlu1 %911 }
 0x94a   : > { %v899_v45 = vpop.permute.xlu0 %898  ;;  %v921_v53 = vmul.f32 %v2832_v20, %v912_v52 }
 0x94b   : > { %v919_v25 = vmul.f32 %v2835_v42, %v899_v45 }
 0x94c   : > { %v932_v21 = vsel %vm3150_vm12, %v921_v53, 0.0 }
 0x94d   : > { %v923_v23 = vsel %vm3150_vm12, %v919_v25, 0.0  ;;  %v934_v26 = vadd.f32 %v933_v11, %v932_v21  ;;  %v832_v11 = vmul.f32 %v2592_v54, %v2465_v9  ;;  %v1401_v21 = vadd.f32 %v1400_v43, %v1399_v39 }
 0x94e   : > { %v925_v30 = vadd.f32 %v924_v56, %v923_v23  ;;  %v1402_v56 = vmul.f32 %v1400_v43, %v1399_v39  ;;  %v1206_v9 = vmul.f32 %v2842_v2, %v2830_v34  ;;  %v2341_v39 = vmov 4  }
 0x94f   : > { %v935_v41 = vrot.slane %v934_v26, 4 }
 0x950   : > { %v926_v36 = vrot.slane %v925_v30, 4 }
 0x951   : > { %v936_v58 = vadd.f32 %v935_v41, %v934_v26  ;;  %v1159_v59 = vpop.permute.xlu2 %1158  ;;  %v833_v41 = vsub.f32 1.0, %v832_v11 }
 0x952   : > { %v927_v60 = vadd.f32 %v926_v36, %v925_v30  ;;  %v1164_v0 = vmul.f32 %v2842_v2, %v1159_v59  ;;  %v1157_v48 = vpop.permute.xlu1 %1156  ;;  %v1165_v44 = vmul.f32 %v2854_v15, %v1159_v59  ;;  %v1403_v36 = vsub.f32 %v1401_v21, %v1402_v56 }
 0x953   : > { %v937_v63 = vrot.slane %v936_v58, 2  ;;  %v1162_v10 = vmul.f32 %v2845_v29, %v1157_v48  ;;  %v1163_v1 = vmul.f32 %v2848_v37, %v1157_v48 }
 0x954   : > { %v928_v40 = vrot.slane %v927_v60, 2  ;;  %v1172_v55 = vsel %vm3151_vm7, %v1164_v0, 0.0  ;;  %v1175_v23 = vsel %vm3151_vm7, %v1165_v44, 0.0 }
 0x955   : > { %v938_v47 = vadd.f32 %v937_v63, %v936_v58  ;;  %1173 = vadd.xlane.f32.xlu2 %v1172_v55  ;;  %v1169_v13 = vsel %vm3151_vm7, %v1163_v1, 0.0  ;;  %v1166_v8 = vsel %vm3151_vm7, %v1162_v10, 0.0  ;;  %v1217_v10 = vsel %vm3151_vm7, %v1206_v9, 0.0 }
 0x956   : > { %v929_v51 = vadd.f32 %v928_v40, %v927_v60  ;;  %1170 = vadd.xlane.f32.xlu0 %v1169_v13  ;;  %1167 = vadd.xlane.f32.xlu1 %v1166_v8  ;;  %v1686_v9 = vperm.slane %v2787_v46, %v2554_v50 }
 0x957   : > { %v939_v57 = vrot.slane %v938_v47, 1 }
 0x958   : > { %v930_v33 = vrot.slane %v929_v51, 1 }
 0x959   : > { %v940_v18 = vadd.f32 %v939_v57, %v938_v47 }
 0x95a   : > { %v1190_v5 = vpop.permute.xlu0 %1189  ;;  %v1184_v35 = vpop.permute.xlu1 %1183  ;;  %v931_v52 = vadd.f32 %v930_v33, %v929_v51 }
 0x95b   : > { %v1205_v45 = vmul.f32 %v2848_v37, %v1190_v5  ;;  %v1204_v53 = vmul.f32 %v2845_v29, %v1184_v35  ;;  %v1275_v35 = vmul.f32 %v2819_v17, %v2699_v6 }
 0x95c   : > { %v943_v25 = vsel %vm3153_vm0, %v940_v18, %v931_v52 }
 0x95d   : > { %2027 = vmatmul.msk.f32.vlgmr.msra.gmra.mxu2 %vm3150_vm12, %v943_v25  ;;  %v1209_v26 = vsel %vm3151_vm7, %v1205_v45, 0.0  ;;  %v1208_v30 = vsel %vm3151_vm7, %v1204_v53, 0.0 }
 0x95e   : > { %1176 = vadd.xlane.f32.xlu0 %v1175_v23  ;;  %v1210_v58 = vadd.f32 %v1209_v26, %v1208_v30 }
 0x960   : > { %v1211_v48 = vrot.slane %v1210_v58, 4 }
 0x962   : > { %v1234_v59 = vpop.permute.xlu0 %1233  ;;  %v1212_v54 = vadd.f32 %v1211_v48, %v1210_v58  ;;  %v1683_v48 = vperm.slane %v2782_v12, %v2554_v50 }
 0x963   : > { %v1236_v60 = vmul.f32 %v1234_v59, %v833_v41 }
 0x964   : > { %v1213_v40 = vrot.slane %v1212_v54, 2 }
 0x965   : > { %v2866_v0 = vmul.f32 %v1403_v36, %v1236_v60  ;;  %v1682_v60 = vperm.slane %v2810_v4, %v2551_v49  ;;  %v2344_v4 = vmov 3  }
 0x966   : > { %v1214_v13 = vadd.f32 %v1213_v40, %v1212_v54  ;;  %v1685_v54 = vperm.slane %v2790_v32, %v2551_v49 }
 0x967   : > { %1405 = vst.msk [vmem:[#allocation8] sm:$0x3] %vm3152_vm10, %v2866_v0 }
 0x968   : > { %v1215_v57 = vrot.slane %v1214_v13, 1 }
 0x96a   : > { %v1203_v62 = vpop.permute.xlu1 %1202  ;;  %v1216_v44 = vadd.f32 %v1215_v57, %v1214_v13 }
 0x96b   : > { %v1207_v63 = vmul.f32 %v2854_v15, %v1203_v62  ;;  %v1684_v62 = vsel %vm689_vm15, %v1683_v48, %v1682_v60 }
 0x96d   : > { %v1218_v1 = vsel %vm3151_vm7, %v1207_v63, 0.0  ;;  %v1687_v63 = vsel %vm689_vm15, %v1686_v9, %v1685_v54 }
 0x96e   : > { %v1219_v55 = vadd.f32 %v1218_v1, %v1217_v10  ;;  %v1688_v10 = vsel %vm3153_vm0, %v1687_v63, %v1684_v62 }
 0x96f   : > { %944 = vrot.lane.b32.xlu1 %v943_v25, %s2340_s25  ;;  %v1690_v1 = vsel %vm3152_vm10, %v1688_v10, -inf }
 0x970   : > { %v1220_v47 = vrot.slane %v1219_v55, 4 }
 0x972   : > { %v1221_v8 = vadd.f32 %v1220_v47, %v1219_v55  ;;  %1418 = vperm.xlu0 %2134, %v2866_v0  }
 0x974   : > { %v1222_v51 = vrot.slane %v1221_v8, 2 }
 0x976   : > { %v1223_v34 = vadd.f32 %v1222_v51, %v1221_v8  ;;  %v555_v51 = vld [vmem:[%s3147_s5 + $0x8] sm:$0xff] }
 0x977   : > { %1374 = vmatpush.msra.mxu3 %v555_v51  ;;  %v2354_v51 = vmov 14  }
 0x978   : > { %v1224_v33 = vrot.slane %v1223_v34, 1 }
 0x97a   : > { %v1225_v18 = vadd.f32 %v1224_v33, %v1223_v34  ;;  %2138 = vset.pattern.permute.xlu0 %v2341_v39 }
 0x97b   : > { %1451 = vperm.xlu0 %2138, %v2866_v0  }
 0x97c   : > { %v1244_v43 = vsel %vm3153_vm0, %v1225_v18, %v1216_v44 }
 0x97d   : > { %v1246_v5 = vmul.f32 %v1244_v43, %v2697_v14 }
 0x97f   : > { %v1276_v52 = vadd.f32 %v1275_v35, %v1246_v5 }
 0x983   : > { %2140 = vset.pattern.permute.xlu0 %v2330_v28 }
 0x9c8   : > { %v1174_v25 = vpop.xlane.xlu2 %1173 }
 0x9c9   : > { %v1171_v45 = vpop.xlane.xlu0 %1170  ;;  %v1168_v53 = vpop.xlane.xlu1 %1167  ;;  %v1288_v23 = vperm.slane %v1174_v25, %v2551_v49 }
 0x9ca   : > { %v1286_v11 = vperm.slane %v1171_v45, %v2554_v50  ;;  %v1285_v21 = vperm.slane %v1168_v53, %v2551_v49 }
 0x9cc   : > { %v1287_v14 = vsel %vm689_vm15, %v1286_v11, %v1285_v21 }
 0x9d1   : > { %v1177_v56 = vpop.xlane.xlu0 %1176 }
 0x9d2   : > { %v1289_v26 = vperm.slane %v1177_v56, %v2554_v50 }
 0x9d4   : > { %v1290_v30 = vsel %vm689_vm15, %v1289_v26, %v1288_v23 }
 0x9d5   : > { %v1291_v6 = vsel %vm3153_vm0, %v1290_v30, %v1287_v14 }
 0x9d6   : > { %v1293_v17 = vmul.f32 %v1291_v6, %v2745_v3  ;;  %v2343_v3 = vmov 2  }
 0x9d8   : > { %v1294_v41 = vadd.f32 %v1293_v17, %v1276_v52 }
 0x9da   : > { %1296 = vrot.lane.b32.xlu2 %v1294_v41, %s2342_s26  ;;  %v1301_v36 = vperm.slane %v1294_v41, 0  ;;  %v1314_v58 = vperm.slane %v1294_v41, 1 }
 0x9dc   : > { %1306 = vperm.xlu1 %2130, %v1301_v36  }
 0x9e1   : > { %v945_v59 = vpop.permute.xlu1 %944 }
 0x9e2   : > { %948 = vst.msk [vmem:[#allocation2] sm:$0x3] %vm947_vm11, %v945_v59  ;;  %1319 = vperm.xlu2 %2132, %v1314_v58  }
 0x9e4   : > { %2131 = vset.pattern.permute.xlu1 %v2502_v61  ;;  %v1419_v40 = vpop.permute.xlu0 %1418 }
 0x9e5   : > { %vm1422_vm1 = vcmp.eq.f32.partialorder %v1419_v40, %v2866_v0  ;;  %vm1421_vm2 = vcmp.lt.f32.partialorder %v1419_v40, %v2866_v0 }
 0x9e6   : > { %vm1424_vm3 = vmand %vm1422_vm1, %vm1423_vm14 }
 0x9e7   : > { %vm1425_vm5 = vmor %vm1421_vm2, %vm1424_vm3 }
 0x9e8   : > { %v1426_v47 = vsel %vm1425_vm5, %v1419_v40, 1.0  ;;  %v2349_v40 = vmov 13  }
 0x9ea   : > { %2141 = vset.pattern.permute.xlu2 %v2330_v28 }
 0x9ec   : > { %1312 = vperm.xlu1 %2131, %v1301_v36  }
 0x9f4   : > { %2133 = vset.pattern.permute.xlu1 %v2330_v28 }
 0x9f5   : > { %1408 = vperm.xlu1 %2133, %v2866_v0  }
 0x9fd   : > { %2135 = vset.pattern.permute.xlu1 %v2343_v3 }
 0x9fe   : > { %1429 = vperm.xlu1 %2135, %v2866_v0  }
 0xa06   : > { %2136 = vset.pattern.permute.xlu1 %v2502_v61 }
 0xa0b   : > { %1691 = vmax.xlane.f32.xlu2 %v1690_v1 }
 0xa0e   : > { %1325 = vperm.xlu1 %2136, %v1314_v58  }
 0xa16   : > { %2137 = vset.pattern.permute.xlu1 %v2344_v4  ;;  %v2345_v4 = vmov 7  }
 0xa17   : > { %1440 = vperm.xlu1 %2137, %v2866_v0  }
 0xa1f   : > { %2139 = vset.pattern.permute.xlu1 %v2330_v28 }
 0xa34   : > { %v1297_v12 = vpop.permute.xlu2 %1296 }
 0xa35   : > { %1300 = vst.msk [vmem:[#allocation6] sm:$0x3] %vm1299_vm13, %v1297_v12  ;;  %vm1434_vm13 = vcmp.gt.s32.totalorder %v2551_v49, 2  ;;  %v2346_v12 = vmov 5  }
 0xa3c   : > { %v1320_v39 = vpop.permute.xlu2 %1319 }
 0xa3d   : > { %v1329_v11 = vmul.f32 %v2832_v20, %v1320_v39 }
 0xa3f   : > { %v1340_v6 = vsel %vm3150_vm12, %v1329_v11, 0.0 }
 0xa4e   : > { %v1307_v46 = vpop.permute.xlu1 %1306 }
 0xa4f   : > { %v1327_v33 = vmul.f32 %v2835_v42, %v1307_v46  ;;  %v2347_v46 = vmov 10  }
 0xa51   : > { %v1331_v5 = vsel %vm3150_vm12, %v1327_v33, 0.0  ;;  %v2969_v33 = vpop.permute.xlu0 %1451 }
 0xa5e   : > { %v1313_v32 = vpop.permute.xlu1 %1312 }
 0xa5f   : > { %v1328_v34 = vmul.f32 %v2827_v31, %v1313_v32  ;;  %v2348_v32 = vmov 6  }
 0xa61   : > { %v1332_v43 = vsel %vm3150_vm12, %v1328_v34, 0.0 }
 0xa62   : > { %v1333_v35 = vadd.f32 %v1332_v43, %v1331_v5 }
 0xa64   : > { %v1334_v52 = vrot.slane %v1333_v35, 4 }
 0xa66   : > { %v1335_v21 = vadd.f32 %v1334_v52, %v1333_v35 }
 0xa67   : > { %v1409_v55 = vpop.permute.xlu1 %1408 }
 0xa68   : > { %vm1411_vm6 = vcmp.lt.f32.partialorder %v1409_v55, %v2866_v0  ;;  %vm1412_vm8 = vcmp.eq.f32.partialorder %v1409_v55, %v2866_v0  ;;  %v1336_v36 = vrot.slane %v1335_v21, 2 }
 0xa69   : > { %vm1414_vm9 = vmand %vm1412_vm8, %vm1413_vm4 }
 0xa6a   : > { %vm1415_vm11 = vmor %vm1411_vm6, %vm1414_vm9 }
 0xa6b   : > { %v1416_v13 = vsel %vm1415_vm11, %v1409_v55, 1.0  ;;  %v2350_v55 = vmov 8  }
 0xa6c   : > { %v1427_v8 = vmul.f32 %v1426_v47, %v1416_v13  ;;  %v2351_v47 = vmov 9   ;;  %v2352_v13 = vmov 11  }
 0xa70   : > { %v1430_v57 = vpop.permute.xlu1 %1429 }
 0xa71   : > { %vm1432_vm14 = vcmp.lt.f32.partialorder %v1430_v57, %v2866_v0  ;;  %vm1433_vm1 = vcmp.eq.f32.partialorder %v1430_v57, %v2866_v0 }
 0xa72   : > { %vm1435_vm2 = vmand %vm1433_vm1, %vm1434_vm13 }
 0xa73   : > { %vm1436_vm3 = vmor %vm1432_vm14, %vm1435_vm2  ;;  %vm1946_vm14 = vcmask 33792   ;;  %vm1445_vm2 = vcmp.gt.s32.totalorder %v2551_v49, 3 }
 0xa74   : > { %v1437_v44 = vsel %vm1436_vm3, %v1430_v57, 1.0  ;;  %v2355_v57 = vmov 15  }
 0xa75   : > { %v2925_v18 = vmul.f32 %v1437_v44, %v1427_v8  ;;  %v2353_v8 = vmov 12  }
 0xa7e   : > { %v1692_v45 = vpop.xlane.xlu2 %1691 }
 0xa7f   : > { %v1694_v53 = vperm.slane %v1692_v45, 0  ;;  %v1695_v25 = vperm.slane %v1692_v45, 1 }
 0xa80   : > { %v1326_v31 = vpop.permute.xlu1 %1325 }
 0xa81   : > { %v1698_v56 = vsub.f32 %v2777_v16, %v1694_v53  ;;  %v1700_v42 = vsub.f32 %v2755_v22, %v1695_v25  ;;  %v1701_v23 = vsub.f32 %v2761_v27, %v1695_v25  ;;  %v1330_v26 = vmul.f32 %v2824_v19, %v1326_v31 }
 0xa82   : > { %v1699_v20 = vsub.f32 %v2758_v24, %v1694_v53  ;;  %v1337_v22 = vadd.f32 %v1336_v36, %v1335_v21  ;;  %v2164_v21 = vld [vmem:[%s3148_s6] ss:$0 sm:$0xff] }
 0xa83   : > { %v1702_v14 = vmul.f32 1.442695, %v1698_v56  ;;  %v1706_v30 = vmul.f32 1.442695, %v1700_v42  ;;  %v1708_v17 = vmul.f32 1.442695, %v1701_v23  ;;  %v968_v56 = vpop.f32.mrf.mxu2 }
 0xa84   : > { %v1341_v41 = vsel %vm3150_vm12, %v1330_v26, 0.0  ;;  %v1704_v59 = vmul.f32 1.442695, %v1699_v20  ;;  %v1338_v9 = vrot.slane %v1337_v22, 1  ;;  %v971_v42 = vadd.f32 %v2164_v21, %v968_v56 }
 0xa85   : > { %2237 = vpow2.f32 %v1702_v14  ;;  %v1342_v58 = vadd.f32 %v1341_v41, %v1340_v6 }
 0xa86   : > { %2239 = vpow2.f32 %v1706_v30  ;;  %v1339_v62 = vadd.f32 %v1338_v9, %v1337_v22 }
 0xa87   : > { %v1343_v16 = vrot.slane %v1342_v58, 4  ;;  %2241 = vpow2.f32 %v1708_v17 }
 0xa88   : > { %2243 = vpow2.f32 %v1704_v59 }
 0xa89   : > { %v1344_v27 = vadd.f32 %v1343_v16, %v1342_v58  ;;  %v2967_v34 = vpop.permute.xlu1 %1440 }
 0xa8a   : > { %vm1444_vm3 = vcmp.eq.f32.partialorder %v2967_v34, %v2866_v0 }
 0xa8b   : > { %v2937_v3 = vpop.eup %2237  ;;  %v1345_v19 = vrot.slane %v1344_v27, 2 }
 0xa8c   : > { %1715 = vperm.xlu1 %2139, %v2937_v3   ;;  %v2940_v60 = vpop.eup %2239 }
 0xa8d   : > { %v1346_v48 = vadd.f32 %v1345_v19, %v1344_v27  ;;  %v2942_v54 = vpop.eup %2241  ;;  %1721 = vperm.xlu0 %2140, %v2940_v60  }
 0xa8e   : > { %1724 = vperm.xlu2 %2141, %v2942_v54   ;;  %v2946_v10 = vpop.eup %2243 }
 0xa8f   : > { %v1347_v24 = vrot.slane %v1346_v48, 1 }
 0xa91   : > { %v1348_v63 = vadd.f32 %v1347_v24, %v1346_v48 }
 0xa93   : > { %v2949_v1 = vsel %vm3153_vm0, %v1348_v63, %v1339_v62 }
 0xa94   : > { %2028 = vmatmul.msk.f32.vlgmr.msra.gmra.mxu3 %vm3150_vm12, %v2949_v1  ;;  %1718 = vperm.xlu1 %2139, %v2946_v10   ;;  %vm1478_vm12 = vcmp.gt.s32.totalorder %v2551_v49, 6 }
 0xa95   : > { %2144 = vset.pattern.permute.xlu0 %v2345_v4 }
 0xa96   : > { %1484 = vperm.xlu0 %2144, %v2866_v0  }
 0xa9c   : > { %2142 = vset.pattern.permute.xlu1 %v2346_v12 }
 0xa9d   : > { %1462 = vperm.xlu1 %2142, %v2866_v0  }
 0xa9e   : > { %2147 = vset.pattern.permute.xlu0 %v2347_v46 }
 0xa9f   : > { %1517 = vperm.xlu0 %2147, %v2866_v0  }
 0xaa5   : > { %2143 = vset.pattern.permute.xlu1 %v2348_v32 }
 0xaa6   : > { %1473 = vperm.xlu1 %2143, %v2866_v0  }
 0xaa7   : > { %2150 = vset.pattern.permute.xlu0 %v2349_v40 }
 0xaa8   : > { %1550 = vperm.xlu0 %2150, %v2866_v0  }
 0xaae   : > { %2145 = vset.pattern.permute.xlu1 %v2350_v55 }
 0xaaf   : > { %1495 = vperm.xlu1 %2145, %v2866_v0  }
 0xab0   : > { %2153 = vset.pattern.permute.xlu0 %v2330_v28 }
 0xab7   : > { %2146 = vset.pattern.permute.xlu1 %v2351_v47 }
 0xab8   : > { %1506 = vperm.xlu1 %2146, %v2866_v0  }
 0xac0   : > { %2148 = vset.pattern.permute.xlu1 %v2352_v13 }
 0xac1   : > { %1528 = vperm.xlu1 %2148, %v2866_v0  }
 0xac9   : > { %2149 = vset.pattern.permute.xlu1 %v2353_v8 }
 0xaca   : > { %1539 = vperm.xlu1 %2149, %v2866_v0  }
 0xad2   : > { %2151 = vset.pattern.permute.xlu1 %v2354_v51 }
 0xad3   : > { %1561 = vperm.xlu1 %2151, %v2866_v0  }
 0xadb   : > { %2152 = vset.pattern.permute.xlu1 %v2355_v57 }
 0xadc   : > { %1572 = vperm.xlu1 %2152, %v2866_v0  }
 0xae4   : > { %2154 = vset.pattern.permute.xlu1 %v2330_v28 }
 0xae8   : > { %v1725_v43 = vpop.permute.xlu2 %1724 }
 0xae9   : > { %v1730_v52 = vperm.slane %v1725_v43, %v2554_v50 }
 0xafe   : > { %v1716_v44 = vpop.permute.xlu1 %1715 }
 0xaff   : > { %v1722_v39 = vpop.permute.xlu0 %1721  ;;  %v1726_v45 = vperm.slane %v1716_v44, %v2551_v49 }
 0xb00   : > { %v1729_v5 = vperm.slane %v1722_v39, %v2551_v49 }
 0xb02   : > { %v1731_v28 = vsel %vm689_vm15, %v1730_v52, %v1729_v5 }
 0xb06   : > { %v1719_v35 = vpop.permute.xlu1 %1718 }
 0xb07   : > { %v1727_v53 = vperm.slane %v1719_v35, %v2554_v50 }
 0xb09   : > { %v1728_v25 = vsel %vm689_vm15, %v1727_v53, %v1726_v45  ;;  %v2356_v45 = vmov 51   ;;  %v2357_v53 = vmov 50  }
 0xb0a   : > { %v1732_v11 = vsel %vm3153_vm0, %v1731_v28, %v1728_v25 }
 0xb0b   : > { %v1734_v31 = vsel %vm3152_vm10, %v1732_v11, 0.0 }
 0xb0c   : > { %1735 = vadd.xlane.f32.xlu2 %v1734_v31  ;;  %v1485_v31 = vpop.permute.xlu0 %1484 }
 0xb17   : > { %v1376_v23 = vpop.f32.mrf.mxu3 }
 0xb18   : > { %v1379_v26 = vadd.f32 %v1376_v23, %v971_v42 }
 0xb1a   : > { %v2029_v14 = vmul.f32 -1.442695, %v1379_v26 }
 0xb1c   : > { %2245 = vpow2.f32 %v2029_v14 }
 0xb22   : > { %v2246_v30 = vpop.eup %2245 }
 0xb23   : > { %v1383_v6 = vadd.f32 1.0, %v2246_v30  ;;  %v1518_v30 = vpop.permute.xlu0 %1517 }
 0xb25   : > { %2247 = vrcp.f32 %v1383_v6  ;;  %v1395_v20 = vand.u32 2147483648, %v1383_v6  ;;  %v1393_v16 = vand.u32 2147483647, %v1383_v6  ;;  %vm1389_vm5 = vweird.f32 %v1383_v6 }
 0xb27   : > { %v1396_v59 = vor.u32 1.1754944e-38, %v1395_v20  ;;  %vm1394_vm8 = vcmp.eq.f32.partialorder %v1393_v16, 8.507059e+37 }
 0xb2b   : > { %v2248_v17 = vpop.eup %2247 }
 0xb2c   : > { %v1385_v41 = vmul.f32 %v2248_v17, %v1383_v6  ;;  %vm1390_vm4 = vweird.f32 %v2248_v17 }
 0xb2d   : > { %vm1391_vm6 = vmor %vm1389_vm5, %vm1390_vm4  ;;  %vm1443_vm4 = vcmp.lt.f32.partialorder %v2967_v34, %v2866_v0 }
 0xb2e   : > { %v1386_v36 = vsub.f32 1.0, %v1385_v41  ;;  %vm1446_vm5 = vmand %vm1444_vm3, %vm1445_vm2 }
 0xb30   : > { %v1387_v58 = vmul.f32 %v2248_v17, %v1386_v36 }
 0xb32   : > { %v1388_v22 = vadd.f32 %v2248_v17, %v1387_v58 }
 0xb34   : > { %v1392_v27 = vsel %vm1391_vm6, %v2248_v17, %v1388_v22  ;;  %vm1456_vm6 = vcmp.gt.s32.totalorder %v2551_v49, 4 }
 0xb35   : > { %v1397_v19 = vsel %vm1394_vm8, %v1396_v59, %v1392_v27  ;;  %vm1455_vm8 = vcmp.eq.f32.partialorder %v2969_v33, %v2866_v0  ;;  %v1551_v27 = vpop.permute.xlu0 %1550 }
 0xb36   : > { %v1926_v48 = vadd.f32 %v1397_v19, %v2532_v38 }
 0xb38   : > { %v2030_v9 = vmul.f32 -1.442695, %v1926_v48 }
 0xb3a   : > { %2249 = vpow2.f32 %v2030_v9 }
 0xb40   : > { %v2250_v24 = vpop.eup %2249 }
 0xb41   : > { %v1930_v62 = vadd.f32 1.0, %v2250_v24 }
 0xb43   : > { %2251 = vrcp.f32 %v1930_v62  ;;  %v1942_v46 = vand.u32 2147483648, %v1930_v62  ;;  %v1940_v40 = vand.u32 2147483647, %v1930_v62  ;;  %vm1936_vm11 = vweird.f32 %v1930_v62 }
 0xb45   : > { %v1943_v47 = vor.u32 1.1754944e-38, %v1942_v46  ;;  %vm1941_vm1 = vcmp.eq.f32.partialorder %v1940_v40, 8.507059e+37 }
 0xb49   : > { %v2252_v63 = vpop.eup %2251 }
 0xb4a   : > { %v1932_v4 = vmul.f32 %v2252_v63, %v1930_v62  ;;  %vm1937_vm9 = vweird.f32 %v2252_v63 }
 0xb4b   : > { %vm1938_vm13 = vmor %vm1936_vm11, %vm1937_vm9  ;;  %vm1467_vm11 = vcmp.gt.s32.totalorder %v2551_v49, 5 }
 0xb4c   : > { %v1933_v12 = vsub.f32 1.0, %v1932_v4  ;;  %vm1447_vm9 = vmor %vm1443_vm4, %vm1446_vm5 }
 0xb4d   : > { %v1448_v21 = vsel %vm1447_vm9, %v2967_v34, 1.0 }
 0xb4e   : > { %v1934_v32 = vmul.f32 %v2252_v63, %v1933_v12  ;;  %v1449_v42 = vmul.f32 %v1448_v21, %v2925_v18 }
 0xb50   : > { %v1935_v55 = vadd.f32 %v2252_v63, %v1934_v32 }
 0xb52   : > { %v1939_v13 = vsel %vm1938_vm13, %v2252_v63, %v1935_v55 }
 0xb53   : > { %v1944_v8 = vsel %vm1941_vm1, %v1943_v47, %v1939_v13  ;;  %vm1457_vm1 = vmand %vm1455_vm8, %vm1456_vm6  ;;  %vm1489_vm6 = vcmp.gt.s32.totalorder %v2551_v49, 7  ;;  %vm1488_vm8 = vcmp.eq.f32.partialorder %v1485_v31, %v2866_v0 }
 0xb54   : > { %1947 = vst.msk [vmem:[%s2417_s17] sm:$0x3] %vm1946_vm14, %v1944_v8  ;;  %vm1454_vm14 = vcmp.lt.f32.partialorder %v2969_v33, %v2866_v0  ;;  %s2358_s17 = smov 86  }
 0xb55   : > { %vm3018_vm10 = vmor %vm1454_vm14, %vm1457_vm1  ;;  %vm1511_vm14 = vcmp.gt.s32.totalorder %v2551_v49, 9 }
 0xb56   : > { %v1459_v18 = vsel %vm3018_vm10, %v2969_v33, 1.0 }
 0xb57   : > { %v1460_v6 = vmul.f32 %v1459_v18, %v1449_v42 }
 0xb7f   : > { %v1736_v51 = vpop.xlane.xlu2 %1735 }
 0xb80   : > { %2253 = vrcp.f32 %v1736_v51 }
 0xb86   : > { %v2254_v57 = vpop.eup %2253 }
 0xb87   : > { %v1740_v44 = vperm.slane %v2254_v57, 1  ;;  %v1739_v39 = vperm.slane %v2254_v57, 0 }
 0xb89   : > { %v1745_v43 = vmul.f32 %v2940_v60, %v1740_v44  ;;  %v1744_v5 = vmul.f32 %v2946_v10, %v1739_v39  ;;  %v1743_v35 = vmul.f32 %v2937_v3, %v1739_v39  ;;  %v1746_v52 = vmul.f32 %v2942_v54, %v1740_v44  ;;  %v1463_v3 = vpop.permute.xlu1 %1462 }
 0xb8a   : > { %v1752_v60 = vsub.f32 1.0, %v2532_v38  ;;  %vm1466_vm13 = vcmp.eq.f32.partialorder %v1463_v3, %v2866_v0  ;;  %vm1465_vm3 = vcmp.lt.f32.partialorder %v1463_v3, %v2866_v0 }
 0xb8b   : > { %1769 = vperm.xlu1 %2154, %v1745_v43   ;;  %1766 = vperm.xlu2 %2141, %v1744_v5   ;;  %vm1468_vm7 = vmand %vm1466_vm13, %vm1467_vm11  ;;  %vm1500_vm11 = vcmp.gt.s32.totalorder %v2551_v49, 8 }
 0xb8c   : > { %1763 = vperm.xlu0 %2153, %v1743_v35   ;;  %vm3026_vm0 = vmor %vm1465_vm3, %vm1468_vm7 }
 0xb8d   : > { %vm1490_vm7 = vmand %vm1488_vm8, %vm1489_vm6  ;;  %v1470_v14 = vsel %vm3026_vm0, %v1463_v3, 1.0  ;;  %vm1521_vm6 = vcmp.eq.f32.partialorder %v1518_v30, %v2866_v0 }
 0xb8e   : > { %v1471_v33 = vmul.f32 %v1470_v14, %v1460_v6 }
 0xb91   : > { %v1474_v54 = vpop.permute.xlu1 %1473 }
 0xb92   : > { %vm1477_vm2 = vcmp.eq.f32.partialorder %v1474_v54, %v2866_v0  ;;  %vm1476_vm4 = vcmp.lt.f32.partialorder %v1474_v54, %v2866_v0 }
 0xb93   : > { %1772 = vperm.xlu1 %2154, %v1746_v52   ;;  %2157 = vset.pattern.permute.xlu2 %v2356_v45  ;;  %vm1479_vm5 = vmand %vm1477_vm2, %vm1478_vm12  ;;  %vm1487_vm12 = vcmp.lt.f32.partialorder %v1485_v31, %v2866_v0 }
 0xb94   : > { %2155 = vset.pattern.permute.xlu0 %v2357_v53  ;;  %1785 = vperm.xlu2 %2157, %v2532_v38   ;;  %vm3030_vm9 = vmor %vm1476_vm4, %vm1479_vm5  ;;  %vm1522_vm5 = vcmp.gt.s32.totalorder %v2551_v49, 10 }
 0xb95   : > { %1748 = vperm.xlu0 %2155, %v2532_v38   ;;  %v1481_v17 = vsel %vm3030_vm9, %v1474_v54, 1.0  ;;  %vm1491_vm3 = vmor %vm1487_vm12, %vm1490_vm7  ;;  %vm1520_vm12 = vcmp.lt.f32.partialorder %v1518_v30, %v2866_v0 }
 0xb96   : > { %v1482_v41 = vmul.f32 %v1481_v17, %v1471_v33  ;;  %v1492_v58 = vsel %vm1491_vm3, %v1485_v31, 1.0  ;;  %vm1523_vm7 = vmand %vm1521_vm6, %vm1522_vm5  ;;  %vm1555_vm5 = vcmp.gt.s32.totalorder %v2551_v49, 13  ;;  %vm1554_vm6 = vcmp.eq.f32.partialorder %v1551_v27, %v2866_v0 }
 0xb97   : > { %vm1524_vm3 = vmor %vm1520_vm12, %vm1523_vm7  ;;  %vm1553_vm12 = vcmp.lt.f32.partialorder %v1551_v27, %v2866_v0  ;;  %v1816_v17 = vrot.slane %v2532_v38, 1 }
 0xb98   : > { %v1493_v22 = vmul.f32 %v1492_v58, %v1482_v41  ;;  %v1525_v63 = vsel %vm1524_vm3, %v1518_v30, 1.0  ;;  %vm1556_vm7 = vmand %vm1554_vm6, %vm1555_vm5 }
 0xb99   : > { %v2994_v10 = vpop.permute.xlu1 %1495  ;;  %vm1557_vm3 = vmor %vm1553_vm12, %vm1556_vm7  ;;  %v1818_v20 = vperm.slane %v1816_v17, 0  ;;  %vm1916_vm12 = vcmp.eq.s32.totalorder %v2457_v7, %v2551_v49  ;;  %vm1917_vm7 = vcmp.eq.s32.totalorder %v2502_v61, %v2551_v49 }
 0xb9a   : > { %vm1499_vm13 = vcmp.eq.f32.partialorder %v2994_v10, %v2866_v0  ;;  %vm1498_vm2 = vcmp.lt.f32.partialorder %v2994_v10, %v2866_v0  ;;  %v1558_v13 = vsel %vm1557_vm3, %v1551_v27, 1.0  ;;  %vm3176_vm3 = vcmask 64512  }
 0xb9b   : > { %2156 = vset.pattern.permute.xlu1 %v2357_v53  ;;  %vm1501_vm10 = vmand %vm1499_vm13, %vm1500_vm11  ;;  %vm1533_vm11 = vcmp.gt.s32.totalorder %v2551_v49, 11 }
 0xb9c   : > { %1755 = vperm.xlu1 %2156, %v1752_v60   ;;  %2160 = vset.pattern.permute.xlu2 %v2457_v7  ;;  %vm3056_vm8 = vmor %vm1498_vm2, %vm1501_vm10  ;;  %v1582_v60 = vsub.f32 1.0, %v2866_v0 }
 0xb9d   : > { %2159 = vset.pattern.permute.xlu0 %v2502_v61  ;;  %v1503_v16 = vsel %vm3056_vm8, %v2994_v10, 1.0 }
 0xb9e   : > { %v1504_v48 = vmul.f32 %v1503_v16, %v1493_v22 }
 0xba1   : > { %v2996_v25 = vpop.permute.xlu1 %1506 }
 0xba2   : > { %vm1510_vm1 = vcmp.eq.f32.partialorder %v2996_v25, %v2866_v0  ;;  %vm1509_vm4 = vcmp.lt.f32.partialorder %v2996_v25, %v2866_v0 }
 0xba3   : > { %vm1512_vm0 = vmand %vm1510_vm1, %vm1511_vm14  ;;  %vm1544_vm14 = vcmp.gt.s32.totalorder %v2551_v49, 12 }
 0xba4   : > { %2158 = vset.pattern.permute.xlu1 %v2457_v7  ;;  %vm3060_vm9 = vmor %vm1509_vm4, %vm1512_vm0 }
 0xba5   : > { %v1514_v19 = vsel %vm3060_vm9, %v2996_v25, 1.0 }
 0xba6   : > { %v1515_v9 = vmul.f32 %v1514_v19, %v1504_v48  ;;  %v1873_v48 = vld [vmem:[#allocation9] sm:$0x3] }
 0xba8   : > { %v1526_v12 = vmul.f32 %v1525_v63, %v1515_v9 }
 0xba9   : > { %v2998_v28 = vpop.permute.xlu1 %1528 }
 0xbaa   : > { %vm1532_vm13 = vcmp.eq.f32.partialorder %v2998_v28, %v2866_v0  ;;  %vm1531_vm2 = vcmp.lt.f32.partialorder %v2998_v28, %v2866_v0 }
 0xbab   : > { %vm1534_vm10 = vmand %vm1532_vm13, %vm1533_vm11  ;;  %vm1566_vm11 = vcmp.gt.s32.totalorder %v2551_v49, 14 }
 0xbac   : > { %vm3083_vm8 = vmor %vm1531_vm2, %vm1534_vm10 }
 0xbad   : > { %v1536_v4 = vsel %vm3083_vm8, %v2998_v28, 1.0  ;;  %vm3168_vm8 = vcmask 1041409  }
 0xbae   : > { %v1537_v40 = vmul.f32 %v1536_v4, %v1526_v12 }
 0xbb1   : > { %v3008_v11 = vpop.permute.xlu1 %1539 }
 0xbb2   : > { %vm1543_vm1 = vcmp.eq.f32.partialorder %v3008_v11, %v2866_v0  ;;  %vm1542_vm4 = vcmp.lt.f32.partialorder %v3008_v11, %v2866_v0 }
 0xbb3   : > { %vm1545_vm0 = vmand %vm1543_vm1, %vm1544_vm14  ;;  %vm1577_vm14 = vcmp.gt.s32.totalorder %v2551_v49, 15 }
 0xbb4   : > { %vm3087_vm9 = vmor %vm1542_vm4, %vm1545_vm0 }
 0xbb5   : > { %v1547_v32 = vsel %vm3087_vm9, %v3008_v11, 1.0  ;;  %vm3169_vm9 = vcmask 123904  }
 0xbb6   : > { %v1548_v55 = vmul.f32 %v1547_v32, %v1537_v40 }
 0xbb8   : > { %v1559_v51 = vmul.f32 %v1558_v13, %v1548_v55 }
 0xbb9   : > { %v3037_v26 = vpop.permute.xlu1 %1561 }
 0xbba   : > { %vm1565_vm13 = vcmp.eq.f32.partialorder %v3037_v26, %v2866_v0  ;;  %vm1564_vm2 = vcmp.lt.f32.partialorder %v3037_v26, %v2866_v0 }
 0xbbb   : > { %vm1567_vm10 = vmand %vm1565_vm13, %vm1566_vm11  ;;  %vm1355_vm11 = vcmask 189568  }
 0xbbc   : > { %vm1568_vm5 = vmor %vm1564_vm2, %vm1567_vm10 }
 0xbbd   : > { %v1569_v8 = vsel %vm1568_vm5, %v3037_v26, 1.0  ;;  %v1817_v26 = vperm.slane %v2532_v38, 0  ;;  %vm3171_vm13 = vmmov %vm3169_vm9 }
 0xbbe   : > { %v1570_v39 = vmul.f32 %v1569_v8, %v1559_v51 }
 0xbc1   : > { %v1573_v59 = vpop.permute.xlu1 %1572 }
 0xbc2   : > { %vm1576_vm1 = vcmp.eq.f32.partialorder %v1573_v59, %v2866_v0  ;;  %vm1575_vm4 = vcmp.lt.f32.partialorder %v1573_v59, %v2866_v0 }
 0xbc3   : > { %vm1578_vm0 = vmand %vm1576_vm1, %vm1577_vm14  ;;  %vm3172_vm14 = vcmask 130048  }
 0xbc4   : > { %vm1579_vm6 = vmor %vm1575_vm4, %vm1578_vm0 }
 0xbc5   : > { %v1580_v44 = vsel %vm1579_vm6, %v1573_v59, 1.0  ;;  %vm3173_vm1 = vmmov %vm3172_vm14 }
 0xbc6   : > { %v1581_v45 = vmul.f32 %v1580_v44, %v1570_v39  ;;  %vm3174_vm2 = vmmov %vm3173_vm1 }
 0xbc7   : > { %vm3175_vm10 = vmmov %vm3173_vm1 }
 0xbc8   : > { %v1583_v10 = vmul.f32 %v1582_v60, %v1581_v45  ;;  %vm3177_vm4 = vmmov %vm3176_vm3 }
 0xbc9   : > { %vm3178_vm0 = vmmov %vm3176_vm3 }
 0xbca   : > { %vm3179_vm5 = vmmov %vm3178_vm0 }
 0xbe5   : > { %v1767_v5 = vpop.permute.xlu2 %1766 }
 0xbe6   : > { %v1775_v53 = vperm.slane %v1767_v5, %v2554_v50 }
 0xbee   : > { %v1786_v42 = vpop.permute.xlu2 %1785 }
 0xbfd   : > { %v1770_v46 = vpop.permute.xlu1 %1769 }
 0xbfe   : > { %v1764_v47 = vpop.permute.xlu0 %1763  ;;  %v1777_v52 = vperm.slane %v1770_v46, %v2551_v49 }
 0xbff   : > { %v1774_v35 = vperm.slane %v1764_v47, %v2551_v49 }
 0xc01   : > { %v1776_v25 = vsel %vm689_vm15, %v1775_v53, %v1774_v35 }
 0xc05   : > { %v1773_v57 = vpop.permute.xlu1 %1772 }
 0xc06   : > { %v1778_v43 = vperm.slane %v1773_v57, %v2554_v50 }
 0xc07   : > { %v1749_v54 = vpop.permute.xlu0 %1748 }
 0xc08   : > { %v1779_v3 = vsel %vm689_vm15, %v1778_v43, %v1777_v52  ;;  %v1751_v31 = vmul.f32 %v1749_v54, %v1583_v10  ;;  %vm3170_vm15 = vmmov %vm3169_vm9 }
 0xc09   : > { %v1780_v28 = vsel %vm3168_vm8, %v1779_v3, %v1776_v25 }
 0xc0e   : > { %v1756_v11 = vpop.permute.xlu1 %1755 }
 0xc0f   : > { %v1782_v21 = vmul.f32 %v1780_v28, %v1756_v11 }
 0xc11   : > { %v1783_v56 = vadd.f32 %v1782_v21, %v1751_v31  ;;  %v2264_v31 = vld [vmem:[#allocation4] sm:$0xff] }
 0xc13   : > { %v1788_v23 = vmul.f32 %v1786_v42, %v1783_v56 }
 0xc15   : > { %1789 = vst.msk [vmem:[#allocation7] sm:$0x3] %vm3169_vm9, %v1788_v23  ;;  %v1803_v34 = vperm.slane %v1788_v23, 1  ;;  %v1790_v50 = vperm.slane %v1788_v23, 0  ;;  %v1874_v0 = vsel %vm3170_vm15, %v1788_v23, 0.0  ;;  %v1889_v19 = vrot.slane %v1788_v23, 1 }
 0xc17   : > { %1808 = vperm.xlu2 %2160, %v1803_v34   ;;  %1801 = vperm.xlu0 %2159, %v1790_v50   ;;  %v1891_v46 = vperm.slane %v1889_v19, 0 }
 0xc18   : > { %1795 = vperm.xlu1 %2158, %v1790_v50  }
 0xc1f   : > { %1352 = vrot.lane.b32.xlu0 %v2949_v1, %s2342_s26 }
 0xc20   : > { %2161 = vset.pattern.permute.xlu1 %v2502_v61 }
 0xc28   : > { %1814 = vperm.xlu1 %2161, %v1803_v34  }
 0xc40   : > { %1875 = vadd.xlane.f32.xlu2 %v1874_v0 }
 0xc71   : > { %v1809_v36 = vpop.permute.xlu2 %1808 }
 0xc72   : > { %v1823_v58 = vmul.f32 %v1818_v20, %v1809_v36  ;;  %v1886_v63 = vsub.f32 1.0, %v1809_v36 }
 0xc74   : > { %v1827_v22 = vsub.f32 1.0, %v1823_v58  ;;  %v1896_v47 = vsub.f32 %v1886_v63, %v1891_v46 }
 0xc76   : > { %v1900_v35 = vmul.f32 %v2842_v2, %v1896_v47 }
 0xc89   : > { %v1802_v18 = vpop.permute.xlu0 %1801 }
 0xc8a   : > { %v1822_v14 = vmul.f32 %v1817_v26, %v1802_v18  ;;  %v1796_v30 = vpop.permute.xlu1 %1795  ;;  %v1885_v38 = vsub.f32 1.0, %v1802_v18 }
 0xc8b   : > { %v1821_v6 = vmul.f32 %v1817_v26, %v1796_v30  ;;  %v1884_v24 = vsub.f32 1.0, %v1796_v30 }
 0xc8c   : > { %1855 = vrot.lane.b32.xlu0 %v1822_v14, %s2358_s17  ;;  %v1826_v1 = vsub.f32 1.0, %v1822_v14  ;;  %v1895_v32 = vsub.f32 %v1885_v38, %v1790_v50 }
 0xc8d   : > { %1853 = vrot.lane.b32.xlu1 %v1821_v6, %s2358_s17  ;;  %v1825_v41 = vsub.f32 1.0, %v1821_v6  ;;  %v1894_v40 = vsub.f32 %v1884_v24, %v1790_v50  ;;  %v2265_v50 = vld [vmem:[#allocation4 + $0x10] sm:$0xff] }
 0xc8e   : > { %v1899_v57 = vmul.f32 %v2848_v37, %v1895_v32 }
 0xc8f   : > { %v1898_v44 = vmul.f32 %v2845_v29, %v1894_v40 }
 0xc91   : > { %v1353_v33 = vpop.permute.xlu0 %1352 }
 0xc92   : > { %1356 = vst.msk [vmem:[#allocation2] sm:$0x3] %vm1355_vm11, %v1353_v33 }
 0xc94   : > { %1835 = vrot.lane.b32.xlu0 %v1826_v1, %s2359_s8 }
 0xc95   : > { %1833 = vrot.lane.b32.xlu1 %v1825_v41, %s2359_s8 }
 0xc9a   : > { %v1815_v16 = vpop.permute.xlu1 %1814 }
 0xc9b   : > { %v1824_v59 = vmul.f32 %v1818_v20, %v1815_v16  ;;  %v1887_v4 = vsub.f32 1.0, %v1815_v16 }
 0xc9d   : > { %1837 = vrot.lane.b32.xlu1 %v1827_v22, %s2359_s8  ;;  %v1828_v27 = vsub.f32 1.0, %v1824_v59  ;;  %v1897_v13 = vsub.f32 %v1887_v4, %v1891_v46 }
 0xc9f   : > { %1839 = vrot.lane.b32.xlu0 %v1828_v27, %s2359_s8  ;;  %v1901_v52 = vmul.f32 %v2854_v15, %v1897_v13  ;;  %v2263_v15 = vld [vmem:[#allocation4 + $0x8] sm:$0xff] }
 0xca5   : > { %1857 = vrot.lane.b32.xlu1 %v1823_v58, %s2358_s17 }
 0xca7   : > { %1859 = vrot.lane.b32.xlu0 %v1824_v59, %s2358_s17 }
 0xcb3   : > { %v1876_v9 = vpop.xlane.xlu2 %1875 }
 0xcb4   : > { %v1877_v62 = vsub.f32 1.0, %v1876_v9 }
 0xcb6   : > { %v1878_v12 = vmul.f32 %v1877_v62, %v1873_v48 }
 0xcb8   : > { %v1879_v55 = vadd.f32 %v1878_v12, %v1788_v23 }
 0xcba   : > { %1880 = vst.msk [vmem:[#allocation9] sm:$0x3] %vm3171_vm13, %v1879_v55  ;;  %v1903_v8 = vrot.slane %v1879_v55, 1  ;;  %v1904_v51 = vperm.slane %v1879_v55, 0 }
 0xcbc   : > { %v1905_v39 = vperm.slane %v1903_v8, 0  ;;  %v1908_v43 = vmul.f32 %v1904_v51, %v1796_v30  ;;  %v1909_v5 = vmul.f32 %v1904_v51, %v1802_v18  ;;  %v2266_v18 = vld [vmem:[#allocation4 + $0x18] sm:$0xff] }
 0xcbe   : > { %v1910_v45 = vmul.f32 %v1905_v39, %v1809_v36  ;;  %v1911_v53 = vmul.f32 %v1905_v39, %v1815_v16  ;;  %v1912_v60 = vadd.f32 %v1908_v43, %v1898_v44  ;;  %v1913_v3 = vadd.f32 %v1909_v5, %v1899_v57 }
 0xcc0   : > { %v1914_v37 = vadd.f32 %v1910_v45, %v1900_v35  ;;  %v1915_v54 = vadd.f32 %v1911_v53, %v1901_v52  ;;  %v1918_v29 = vsel %vm1916_vm12, 0.0, %v1912_v60  ;;  %v1919_v10 = vsel %vm1917_vm7, 0.0, %v1913_v3 }
 0xcc1   : > { %1922 = vst.msk [vmem:[#allocation5] sm:$0xff] %vm3172_vm14, %v1918_v29 }
 0xcc2   : > { %v1920_v25 = vsel %vm1916_vm12, 0.0, %v1914_v37  ;;  %v1921_v2 = vsel %vm1917_vm7, 0.0, %v1915_v54  ;;  %1923 = vst.msk [vmem:[#allocation5 + $0x8] sm:$0xff] %vm3173_vm1, %v1919_v10 }
 0xcc3   : > { %1924 = vst.msk [vmem:[#allocation5 + $0x10] sm:$0xff] %vm3174_vm2, %v1920_v25 }
 0xcc4   : > { %1925 = vst.msk [vmem:[#allocation5 + $0x18] sm:$0xff] %vm3175_vm10, %v1921_v2 }
 0xcfe   : > { %v1856_v7 = vpop.permute.xlu0 %1855 }
 0xcff   : > { %v1854_v61 = vpop.permute.xlu1 %1853 }
 0xd06   : > { %v1836_v49 = vpop.permute.xlu0 %1835 }
 0xd07   : > { %v1846_v28 = vmul.f32 %v2263_v15, %v1836_v49  ;;  %v1834_v11 = vpop.permute.xlu1 %1833 }
 0xd08   : > { %v1845_v21 = vmul.f32 %v2264_v31, %v1834_v11 }
 0xd09   : > { %v1866_v56 = vadd.f32 %v1856_v7, %v1846_v28 }
 0xd0a   : > { %v1865_v42 = vadd.f32 %v1854_v61, %v1845_v21 }
 0xd0b   : > { %1870 = vst.msk [vmem:[#allocation4 + $0x8] sm:$0xff] %vm3176_vm3, %v1866_v56 }
 0xd0c   : > { %1869 = vst.msk [vmem:[#allocation4] sm:$0xff] %vm3177_vm4, %v1865_v42 }
 0xd0f   : > { %v1838_v23 = vpop.permute.xlu1 %1837 }
 0xd10   : > { %v1847_v0 = vmul.f32 %v2265_v50, %v1838_v23 }
 0xd11   : > { %v1840_v34 = vpop.permute.xlu0 %1839 }
 0xd12   : > { %v1848_v14 = vmul.f32 %v2266_v18, %v1840_v34 }
 0xd17   : > { %v1858_v26 = vpop.permute.xlu1 %1857 }
 0xd18   : > { %v1867_v30 = vadd.f32 %v1858_v26, %v1847_v0 }
 0xd19   : > { %v1860_v6 = vpop.permute.xlu0 %1859 }
 0xd1a   : > { %1871 = vst.msk [vmem:[#allocation4 + $0x10] sm:$0xff] %vm3178_vm0, %v1867_v30  ;;  %v1868_v17 = vadd.f32 %v1860_v6, %v1848_v14 }
 0xd1c   : > { %1872 = vst.msk [vmem:[#allocation4 + $0x18] sm:$0xff] %vm3179_vm5, %v1868_v17 }
 0xd1d PF: > { %s18_s24 = sadd.s32 1, %s2307_s24  }
 0xd1e   : > { %p15_p8 = scmp.ge.s32.totalorder %s18_s24, 10  }
 0xd20   :  { %17 = sbr.rel (!%p15_p8) target bundleno = 1 (0x1), region = 87 }
 0xd25   :  { %1967 = vsyncpa [#allocation11], 1 }
 0xd26   :  { %1969 = vsyncpa [#allocation11 + $0x1], 1 }

</bundles_post_ra>
